<compile_context>
chip_gen: v7x
topology: tpu7x:2x2x1
jax: 0.10.0
libtpu: 0.0.40
codegen_flags: <defaults>
</compile_context>

<pallas_src>
import functools

import jax
import jax.numpy as jnp
from jax.experimental import pallas as pl
from jax.experimental.pallas import tpu as pltpu


def cbam_kernel(ws_ref, x_ref, w1t_ref, w2t_ref, cmask_ref, o_ref, *, W, K):
    """One grid step = one (Nb, C, H*W) lane-dense slab of the batch.

    ws_ref    : (2*K*K,) f32 SMEM -- 7x7 conv weights, [channel, ky, kx] flat
    x_ref     : (Nb, C, HW) VMEM input slab (input dtype)
    w1t_ref   : (C, mid)  channel-MLP conv1 weight, transposed
    w2t_ref   : (mid, C)  channel-MLP conv2 weight, transposed
    cmask_ref : (K, HW) f32 column-validity masks (one row per kx)
    o_ref     : (Nb, C, HW) output slab
    """
    nb, _, HW = x_ref.shape
    pad = K // 2
    PAD = pad * W + pad                          # worst-case |flattened tap shift|

    x = x_ref[...]                               # (nb, C, HW), input dtype
    xf = x.astype(jnp.float32)

    # ---- channel attention (whole slab at once) --------------------------
    avg = jnp.mean(xf, axis=2)                   # (nb, C)
    mx = jnp.max(xf, axis=2)                     # (nb, C)
    pooled = jnp.concatenate([avg, mx], axis=0)  # (2*nb, C)
    h = jnp.maximum(
        jnp.dot(pooled, w1t_ref[...], preferred_element_type=jnp.float32), 0.0)
    h = h[:nb] + h[nb:]                          # (nb, mid)  (conv2 has no bias)
    ca = jax.nn.sigmoid(
        jnp.dot(h, w2t_ref[...], preferred_element_type=jnp.float32))  # (nb, C)

    xg = x * ca.astype(x.dtype)[:, :, None]      # (nb, C, HW), input dtype

    # ---- spatial attention: 7x7 conv on channel-compressed maps ----------
    xg32 = xg.astype(jnp.float32)
    cmean = jnp.mean(xg32, axis=1)               # (nb, HW)
    cmax = jnp.max(xg32, axis=1)                 # (nb, HW)

    # Zero padding of the flattened maps handles row overflow of the conv;
    # column wrap is handled by the per-kx masks (precomputed in wrapper).
    zpad = jnp.zeros((nb, PAD), jnp.float32)
    pm = jnp.concatenate([zpad, cmean, zpad], axis=1)   # (nb, HW + 2*PAD)
    px = jnp.concatenate([zpad, cmax, zpad], axis=1)
    cmasks = cmask_ref[...]                              # (K, HW)

    acc = jnp.zeros((nb, HW), jnp.float32)
    for kx in range(K):                          # static unroll over 7x7 taps
        dx = kx - pad
        acc_kx = jnp.zeros((nb, HW), jnp.float32)
        for ky in range(K):
            s = PAD + (ky - pad) * W + dx        # static slice start
            w_mean = ws_ref[ky * K + kx]         # scalars from SMEM
            w_max = ws_ref[K * K + ky * K + kx]
            acc_kx = acc_kx + (w_mean * pm[:, s:s + HW]
                               + w_max * px[:, s:s + HW])
        acc = acc + acc_kx * cmasks[kx:kx + 1, :]   # column mask once per kx
    sa = jax.nn.sigmoid(acc)                     # (nb, HW)

    # ---- out = (x * ca) * sa ---------------------------------------------
    o_ref[...] = (xg * sa.astype(x.dtype)[:, None, :]).astype(o_ref.dtype)


def _tpu_generation_info():
    """Return (vmem_capacity_bytes, tensorcores_per_chip) with safe fallbacks."""
    vmem = None
    try:
        vmem = getattr(pltpu.get_tpu_info(), "vmem_capacity_bytes", None)
    except Exception:
        vmem = None
    kind = ""
    try:
        kind = jax.devices()[0].device_kind.lower()
    except Exception:
        pass
    num_tc = 2 if "v7" in kind else 1
    if vmem is None:
        vmem = (64 << 20) if num_tc == 2 else (128 << 20)
    return int(vmem), num_tc


def _pick_block_n(N, C, HW, in_itemsize, vmem_cap, num_tc):
    """Largest divisor of N whose per-step VMEM footprint fits the budget.

    Footprint model: the x and out blocks are each double-buffered by the
    pipeline (4 * tile) plus ~3 tile-sized f32 intermediates (cast, xg,
    padded maps).  On multi-TC chips prefer a grid-step count divisible by
    the TC count so the "parallel" batch axis splits evenly across cores.
    """
    budget = min(vmem_cap // 2, 48 << 20)

    def step_bytes(nb):
        tile_in = nb * C * HW * in_itemsize
        tile_f32 = nb * C * HW * 4
        return 4 * tile_in + 3 * tile_f32

    divisors = [d for d in range(1, N + 1) if N % d == 0]
    fitting = [d for d in divisors if step_bytes(d) <= budget]
    if not fitting:
        # TODO(synk): add an HW/C-tiled two-pass fallback for (C, HW) slabs
        # that do not fit VMEM even at block_n=1.
        return 1
    if num_tc > 1:
        balanced = [d for d in fitting if (N // d) % num_tc == 0]
        if balanced:
            return max(balanced)
    return max(fitting)


def cbam(x, w1, w2, ws, *, block_n=None):
    """CBAM forward.  x: (N, C, H, W); w1: (mid, C); w2: (C, mid); ws: (1, 2, K, K)."""
    N, C, H, W = x.shape
    mid = w1.shape[0]
    K = ws.shape[-1]
    HW = H * W
    pad = K // 2

    vmem_cap, num_tc = _tpu_generation_info()
    if block_n is None:
        block_n = _pick_block_n(N, C, HW, x.dtype.itemsize, vmem_cap, num_tc)
    grid = (N // block_n,)

    # Lane-dense layout: flatten spatial dims so the lane axis is H*W.
    xf = x.reshape(N, C, HW)
    ws_flat = ws.reshape(-1).astype(jnp.float32)     # (2*K*K,) -> SMEM prefetch
    w1t = jnp.asarray(w1).T                          # (C, mid)
    w2t = jnp.asarray(w2).T                          # (mid, C)

    # Column-validity masks of the flattened conv (one row per kx), built once
    # in the wrapper instead of iota+compare every grid step.
    col = jnp.arange(HW, dtype=jnp.int32) % W
    cmask = jnp.stack(
        [((col + (kx - pad) >= 0) & (col + (kx - pad) < W)).astype(jnp.float32)
         for kx in range(K)], axis=0)                # (K, HW)

    # Scoped VMEM limit: ~40 MiB on 64-MiB v7x, up to ~80 MiB on v5e/v6e.
    vmem_limit = int(min(vmem_cap * 5 // 8, 80 << 20))

    kernel = functools.partial(cbam_kernel, W=W, K=K)

    out = pl.pallas_call(
        kernel,
        out_shape=jax.ShapeDtypeStruct((N, C, HW), x.dtype),
        grid_spec=pltpu.PrefetchScalarGridSpec(
            num_scalar_prefetch=1,                   # ws_flat -> SMEM
            grid=grid,
            in_specs=[
                pl.BlockSpec((block_n, C, HW), lambda i, ws: (i, 0, 0)),  # x
                pl.BlockSpec((C, mid), lambda i, ws: (0, 0)),             # w1.T
                pl.BlockSpec((mid, C), lambda i, ws: (0, 0)),             # w2.T
                pl.BlockSpec((K, HW), lambda i, ws: (0, 0)),              # col masks
            ],
            out_specs=pl.BlockSpec((block_n, C, HW), lambda i, ws: (i, 0, 0)),
        ),
        compiler_params=pltpu.CompilerParams(
            dimension_semantics=("parallel",),
            vmem_limit_bytes=vmem_limit,
        ),
    )(ws_flat, xf, w1t, w2t, cmask)

    return out.reshape(N, C, H, W)


def _reference(x, w1, w2, ws):
    """Pure-JAX reference of the PyTorch CBAM forward."""
    avg = jnp.mean(x, axis=(2, 3))                   # (N, C)
    mx = jnp.max(x, axis=(2, 3))                     # (N, C)

    def mlp(v):
        h = jnp.maximum(v @ w1.T, 0.0)               # (N, mid)
        return h @ w2.T                              # (N, C)

    ca = jax.nn.sigmoid(mlp(avg) + mlp(mx))          # (N, C)
    xg = x * ca[:, :, None, None]

    comp = jnp.concatenate([jnp.mean(xg, axis=1, keepdims=True),
                            jnp.max(xg, axis=1, keepdims=True)], axis=1)
    sa = jax.lax.conv_general_dilated(
        comp, ws, window_strides=(1, 1), padding="SAME",
        dimension_numbers=("NCHW", "OIHW", "NCHW"))
    sa = jax.nn.sigmoid(sa)                          # (N, 1, H, W)
    return xg * sa


if __name__ == "__main__":
    key = jax.random.PRNGKey(0)
    # Small shapes consistent with the module: CBAM(in_channels=16, reduction=4).
    N, C, H, W = 4, 16, 16, 16
    reduction = 4
    K = 7
    mid = C // reduction                             # = 4

    keys = jax.random.split(key, 4)
    x = jax.random.normal(keys[0], (N, C, H, W), jnp.float32)
    # 1x1 conv weights (PyTorch shape (out, in, 1, 1), squeezed to matmul form).
    w1 = 0.2 * jax.random.normal(keys[1], (mid, C), jnp.float32)   # mlp conv1
    w2 = 0.2 * jax.random.normal(keys[2], (C, mid), jnp.float32)   # mlp conv2
    # 7x7 spatial conv weight, PyTorch shape (1, 2, 7, 7), no bias.
    ws = 0.2 * jax.random.normal(keys[3], (1, 2, K, K), jnp.float32)

    out = cbam(x, w1, w2, ws)
    out = jax.block_until_ready(out)

    expected = _reference(x, w1, w2, ws)
    assert out.shape == (N, C, H, W)
    assert jnp.allclose(out, expected, atol=1e-4, rtol=1e-4), "mismatch vs reference"

    print("KERNEL_OK")
</pallas_src>

<mosaic_0001>
module attributes {stable_mosaic.version = 11 : i64} {
  func.func @cbam_kernel(%arg0: i32, %arg1: memref<98xf32, #tpu.memory_space<smem>>, %arg2: memref<4x16x256xf32, #tpu.memory_space<vmem>>, %arg3: memref<16x4xf32, #tpu.memory_space<vmem>>, %arg4: memref<4x16xf32, #tpu.memory_space<vmem>>, %arg5: memref<7x256xf32, #tpu.memory_space<vmem>>, %arg6: memref<4x16x256xf32, #tpu.memory_space<vmem>>) attributes {dimension_semantics = [#tpu.dimension_semantics<parallel>], iteration_bounds = array<i64: 1>, scalar_prefetch = 1 : i64, scratch_operands = 0 : i64, tpu.core_type = #tpu.core_type<tc>, window_params = [{transform_indices = @transform_0, window_bounds = array<i64: 4, 16, 256>}, {pipeline_mode = #tpu.pipeline_mode<synchronous>, transform_indices = @transform_1, window_bounds = array<i64: 16, 4>}, {pipeline_mode = #tpu.pipeline_mode<synchronous>, transform_indices = @transform_2, window_bounds = array<i64: 4, 16>}, {pipeline_mode = #tpu.pipeline_mode<synchronous>, transform_indices = @transform_3, window_bounds = array<i64: 7, 256>}, {transform_indices = @transform_4, window_bounds = array<i64: 4, 16, 256>}]} {
    %c0 = arith.constant 0 : index
    %c0_0 = arith.constant 0 : index
    %c0_1 = arith.constant 0 : index
    %0 = vector.load %arg2[%c0, %c0_0, %c0_1] : memref<4x16x256xf32, #tpu.memory_space<vmem>>, vector<4x16x256xf32>
    %cst = arith.constant dense<0.000000e+00> : vector<4x16xf32>
    %1 = vector.multi_reduction <add>, %0, %cst [2] : vector<4x16x256xf32> to vector<4x16xf32>
    %cst_2 = arith.constant 2.560000e+02 : f32
    %2 = vector.broadcast %cst_2 : f32 to vector<4x16xf32>
    %3 = arith.divf %1, %2 : vector<4x16xf32>
    %cst_3 = arith.constant dense<0xFF800000> : vector<4x16xf32>
    %4 = vector.multi_reduction <maximumf>, %0, %cst_3 [2] : vector<4x16x256xf32> to vector<4x16xf32>
    %5 = tpu.concatenate %3, %4 in 0 : vector<4x16xf32>, vector<4x16xf32> -> vector<8x16xf32>
    %c0_4 = arith.constant 0 : index
    %c0_5 = arith.constant 0 : index
    %6 = vector.load %arg3[%c0_4, %c0_5] : memref<16x4xf32, #tpu.memory_space<vmem>>, vector<16x4xf32>
    %cst_6 = arith.constant dense<0.000000e+00> : vector<8x4xf32>
    %7 = tpu.matmul %5, %6, %cst_6 {dimension_numbers = #tpu.dot_dimension_numbers<[1], [0], [0], [1], [0, 0, 1, 1], [], []>} : vector<8x16xf32>, vector<16x4xf32>, vector<8x4xf32> -> vector<8x4xf32>
    %cst_7 = arith.constant 0.000000e+00 : f32
    %8 = vector.broadcast %cst_7 : f32 to vector<8x4xf32>
    %9 = arith.maximumf %7, %8 : vector<8x4xf32>
    %10 = vector.extract_strided_slice %9 {offsets = [0, 0], sizes = [4, 4], strides = [1, 1]} : vector<8x4xf32> to vector<4x4xf32>
    %11 = vector.extract_strided_slice %9 {offsets = [4, 0], sizes = [4, 4], strides = [1, 1]} : vector<8x4xf32> to vector<4x4xf32>
    %12 = arith.addf %10, %11 : vector<4x4xf32>
    %c0_8 = arith.constant 0 : index
    %c0_9 = arith.constant 0 : index
    %13 = vector.load %arg4[%c0_8, %c0_9] : memref<4x16xf32, #tpu.memory_space<vmem>>, vector<4x16xf32>
    %cst_10 = arith.constant dense<0.000000e+00> : vector<4x16xf32>
    %14 = tpu.matmul %12, %13, %cst_10 {dimension_numbers = #tpu.dot_dimension_numbers<[1], [0], [0], [1], [0, 0, 1, 1], [], []>} : vector<4x4xf32>, vector<4x16xf32>, vector<4x16xf32> -> vector<4x16xf32>
    %15 = arith.negf %14 : vector<4x16xf32>
    %16 = math.exp %15 : vector<4x16xf32>
    %cst_11 = arith.constant 1.000000e+00 : f32
    %17 = vector.broadcast %cst_11 : f32 to vector<4x16xf32>
    %18 = arith.addf %17, %16 : vector<4x16xf32>
    %19 = arith.divf %17, %18 : vector<4x16xf32>
    %20 = vector.shape_cast %19 : vector<4x16xf32> to vector<4x16x1xf32>
    %21 = vector.broadcast %20 : vector<4x16x1xf32> to vector<4x16x256xf32>
    %22 = arith.mulf %0, %21 : vector<4x16x256xf32>
    %cst_12 = arith.constant dense<0.000000e+00> : vector<4x256xf32>
    %23 = vector.multi_reduction <add>, %22, %cst_12 [1] : vector<4x16x256xf32> to vector<4x256xf32>
    %cst_13 = arith.constant 1.600000e+01 : f32
    %24 = vector.broadcast %cst_13 : f32 to vector<4x256xf32>
    %25 = arith.divf %23, %24 : vector<4x256xf32>
    %cst_14 = arith.constant dense<0xFF800000> : vector<4x256xf32>
    %26 = vector.multi_reduction <maximumf>, %22, %cst_14 [1] : vector<4x16x256xf32> to vector<4x256xf32>
    %cst_15 = arith.constant 0.000000e+00 : f32
    %27 = vector.broadcast %cst_15 : f32 to vector<4x51xf32>
    %28 = tpu.concatenate %27, %25, %27 in 1 : vector<4x51xf32>, vector<4x256xf32>, vector<4x51xf32> -> vector<4x358xf32>
    %29 = tpu.concatenate %27, %26, %27 in 1 : vector<4x51xf32>, vector<4x256xf32>, vector<4x51xf32> -> vector<4x358xf32>
    %c0_16 = arith.constant 0 : index
    %c0_17 = arith.constant 0 : index
    %30 = vector.load %arg5[%c0_16, %c0_17] : memref<7x256xf32, #tpu.memory_space<vmem>>, vector<7x256xf32>
    %cst_18 = arith.constant 0.000000e+00 : f32
    %31 = vector.broadcast %cst_18 : f32 to vector<4x256xf32>
    %cst_19 = arith.constant 0.000000e+00 : f32
    %32 = vector.broadcast %cst_19 : f32 to vector<4x256xf32>
    %c0_20 = arith.constant 0 : index
    %33 = memref.load %arg1[%c0_20] : memref<98xf32, #tpu.memory_space<smem>>
    %c49 = arith.constant 49 : index
    %34 = memref.load %arg1[%c49] : memref<98xf32, #tpu.memory_space<smem>>
    %35 = vector.extract_strided_slice %28 {offsets = [0, 0], sizes = [4, 256], strides = [1, 1]} : vector<4x358xf32> to vector<4x256xf32>
    %36 = vector.broadcast %33 : f32 to vector<4x256xf32>
    %37 = arith.mulf %36, %35 : vector<4x256xf32>
    %38 = vector.extract_strided_slice %29 {offsets = [0, 0], sizes = [4, 256], strides = [1, 1]} : vector<4x358xf32> to vector<4x256xf32>
    %39 = vector.broadcast %34 : f32 to vector<4x256xf32>
    %40 = arith.mulf %39, %38 : vector<4x256xf32>
    %41 = arith.addf %37, %40 : vector<4x256xf32>
    %42 = arith.addf %32, %41 : vector<4x256xf32>
    %c7 = arith.constant 7 : index
    %43 = memref.load %arg1[%c7] : memref<98xf32, #tpu.memory_space<smem>>
    %c56 = arith.constant 56 : index
    %44 = memref.load %arg1[%c56] : memref<98xf32, #tpu.memory_space<smem>>
    %45 = vector.extract_strided_slice %28 {offsets = [0, 16], sizes = [4, 256], strides = [1, 1]} : vector<4x358xf32> to vector<4x256xf32>
    %46 = vector.broadcast %43 : f32 to vector<4x256xf32>
    %47 = arith.mulf %46, %45 : vector<4x256xf32>
    %48 = vector.extract_strided_slice %29 {offsets = [0, 16], sizes = [4, 256], strides = [1, 1]} : vector<4x358xf32> to vector<4x256xf32>
    %49 = vector.broadcast %44 : f32 to vector<4x256xf32>
    %50 = arith.mulf %49, %48 : vector<4x256xf32>
    %51 = arith.addf %47, %50 : vector<4x256xf32>
    %52 = arith.addf %42, %51 : vector<4x256xf32>
    %c14 = arith.constant 14 : index
    %53 = memref.load %arg1[%c14] : memref<98xf32, #tpu.memory_space<smem>>
    %c63 = arith.constant 63 : index
    %54 = memref.load %arg1[%c63] : memref<98xf32, #tpu.memory_space<smem>>
    %55 = vector.extract_strided_slice %28 {offsets = [0, 32], sizes = [4, 256], strides = [1, 1]} : vector<4x358xf32> to vector<4x256xf32>
    %56 = vector.broadcast %53 : f32 to vector<4x256xf32>
    %57 = arith.mulf %56, %55 : vector<4x256xf32>
    %58 = vector.extract_strided_slice %29 {offsets = [0, 32], sizes = [4, 256], strides = [1, 1]} : vector<4x358xf32> to vector<4x256xf32>
    %59 = vector.broadcast %54 : f32 to vector<4x256xf32>
    %60 = arith.mulf %59, %58 : vector<4x256xf32>
    %61 = arith.addf %57, %60 : vector<4x256xf32>
    %62 = arith.addf %52, %61 : vector<4x256xf32>
    %c21 = arith.constant 21 : index
    %63 = memref.load %arg1[%c21] : memref<98xf32, #tpu.memory_space<smem>>
    %c70 = arith.constant 70 : index
    %64 = memref.load %arg1[%c70] : memref<98xf32, #tpu.memory_space<smem>>
    %65 = vector.extract_strided_slice %28 {offsets = [0, 48], sizes = [4, 256], strides = [1, 1]} : vector<4x358xf32> to vector<4x256xf32>
    %66 = vector.broadcast %63 : f32 to vector<4x256xf32>
    %67 = arith.mulf %66, %65 : vector<4x256xf32>
    %68 = vector.extract_strided_slice %29 {offsets = [0, 48], sizes = [4, 256], strides = [1, 1]} : vector<4x358xf32> to vector<4x256xf32>
    %69 = vector.broadcast %64 : f32 to vector<4x256xf32>
    %70 = arith.mulf %69, %68 : vector<4x256xf32>
    %71 = arith.addf %67, %70 : vector<4x256xf32>
    %72 = arith.addf %62, %71 : vector<4x256xf32>
    %c28 = arith.constant 28 : index
    %73 = memref.load %arg1[%c28] : memref<98xf32, #tpu.memory_space<smem>>
    %c77 = arith.constant 77 : index
    %74 = memref.load %arg1[%c77] : memref<98xf32, #tpu.memory_space<smem>>
    %75 = vector.extract_strided_slice %28 {offsets = [0, 64], sizes = [4, 256], strides = [1, 1]} : vector<4x358xf32> to vector<4x256xf32>
    %76 = vector.broadcast %73 : f32 to vector<4x256xf32>
    %77 = arith.mulf %76, %75 : vector<4x256xf32>
    %78 = vector.extract_strided_slice %29 {offsets = [0, 64], sizes = [4, 256], strides = [1, 1]} : vector<4x358xf32> to vector<4x256xf32>
    %79 = vector.broadcast %74 : f32 to vector<4x256xf32>
    %80 = arith.mulf %79, %78 : vector<4x256xf32>
    %81 = arith.addf %77, %80 : vector<4x256xf32>
    %82 = arith.addf %72, %81 : vector<4x256xf32>
    %c35 = arith.constant 35 : index
    %83 = memref.load %arg1[%c35] : memref<98xf32, #tpu.memory_space<smem>>
    %c84 = arith.constant 84 : index
    %84 = memref.load %arg1[%c84] : memref<98xf32, #tpu.memory_space<smem>>
    %85 = vector.extract_strided_slice %28 {offsets = [0, 80], sizes = [4, 256], strides = [1, 1]} : vector<4x358xf32> to vector<4x256xf32>
    %86 = vector.broadcast %83 : f32 to vector<4x256xf32>
    %87 = arith.mulf %86, %85 : vector<4x256xf32>
    %88 = vector.extract_strided_slice %29 {offsets = [0, 80], sizes = [4, 256], strides = [1, 1]} : vector<4x358xf32> to vector<4x256xf32>
    %89 = vector.broadcast %84 : f32 to vector<4x256xf32>
    %90 = arith.mulf %89, %88 : vector<4x256xf32>
    %91 = arith.addf %87, %90 : vector<4x256xf32>
    %92 = arith.addf %82, %91 : vector<4x256xf32>
    %c42 = arith.constant 42 : index
    %93 = memref.load %arg1[%c42] : memref<98xf32, #tpu.memory_space<smem>>
    %c91 = arith.constant 91 : index
    %94 = memref.load %arg1[%c91] : memref<98xf32, #tpu.memory_space<smem>>
    %95 = vector.extract_strided_slice %28 {offsets = [0, 96], sizes = [4, 256], strides = [1, 1]} : vector<4x358xf32> to vector<4x256xf32>
    %96 = vector.broadcast %93 : f32 to vector<4x256xf32>
    %97 = arith.mulf %96, %95 : vector<4x256xf32>
    %98 = vector.extract_strided_slice %29 {offsets = [0, 96], sizes = [4, 256], strides = [1, 1]} : vector<4x358xf32> to vector<4x256xf32>
    %99 = vector.broadcast %94 : f32 to vector<4x256xf32>
    %100 = arith.mulf %99, %98 : vector<4x256xf32>
    %101 = arith.addf %97, %100 : vector<4x256xf32>
    %102 = arith.addf %92, %101 : vector<4x256xf32>
    %103 = vector.extract_strided_slice %30 {offsets = [0, 0], sizes = [1, 256], strides = [1, 1]} : vector<7x256xf32> to vector<1x256xf32>
    %104 = vector.broadcast %103 : vector<1x256xf32> to vector<4x256xf32>
    %105 = arith.mulf %102, %104 : vector<4x256xf32>
    %106 = arith.addf %31, %105 : vector<4x256xf32>
    %cst_21 = arith.constant 0.000000e+00 : f32
    %107 = vector.broadcast %cst_21 : f32 to vector<4x256xf32>
    %c1 = arith.constant 1 : index
    %108 = memref.load %arg1[%c1] : memref<98xf32, #tpu.memory_space<smem>>
    %c50 = arith.constant 50 : index
    %109 = memref.load %arg1[%c50] : memref<98xf32, #tpu.memory_space<smem>>
    %110 = vector.extract_strided_slice %28 {offsets = [0, 1], sizes = [4, 256], strides = [1, 1]} : vector<4x358xf32> to vector<4x256xf32>
    %111 = vector.broadcast %108 : f32 to vector<4x256xf32>
    %112 = arith.mulf %111, %110 : vector<4x256xf32>
    %113 = vector.extract_strided_slice %29 {offsets = [0, 1], sizes = [4, 256], strides = [1, 1]} : vector<4x358xf32> to vector<4x256xf32>
    %114 = vector.broadcast %109 : f32 to vector<4x256xf32>
    %115 = arith.mulf %114, %113 : vector<4x256xf32>
    %116 = arith.addf %112, %115 : vector<4x256xf32>
    %117 = arith.addf %107, %116 : vector<4x256xf32>
    %c8 = arith.constant 8 : index
    %118 = memref.load %arg1[%c8] : memref<98xf32, #tpu.memory_space<smem>>
    %c57 = arith.constant 57 : index
    %119 = memref.load %arg1[%c57] : memref<98xf32, #tpu.memory_space<smem>>
    %120 = vector.extract_strided_slice %28 {offsets = [0, 17], sizes = [4, 256], strides = [1, 1]} : vector<4x358xf32> to vector<4x256xf32>
    %121 = vector.broadcast %118 : f32 to vector<4x256xf32>
    %122 = arith.mulf %121, %120 : vector<4x256xf32>
    %123 = vector.extract_strided_slice %29 {offsets = [0, 17], sizes = [4, 256], strides = [1, 1]} : vector<4x358xf32> to vector<4x256xf32>
    %124 = vector.broadcast %119 : f32 to vector<4x256xf32>
    %125 = arith.mulf %124, %123 : vector<4x256xf32>
    %126 = arith.addf %122, %125 : vector<4x256xf32>
    %127 = arith.addf %117, %126 : vector<4x256xf32>
    %c15 = arith.constant 15 : index
    %128 = memref.load %arg1[%c15] : memref<98xf32, #tpu.memory_space<smem>>
    %c64 = arith.constant 64 : index
    %129 = memref.load %arg1[%c64] : memref<98xf32, #tpu.memory_space<smem>>
    %130 = vector.extract_strided_slice %28 {offsets = [0, 33], sizes = [4, 256], strides = [1, 1]} : vector<4x358xf32> to vector<4x256xf32>
    %131 = vector.broadcast %128 : f32 to vector<4x256xf32>
    %132 = arith.mulf %131, %130 : vector<4x256xf32>
    %133 = vector.extract_strided_slice %29 {offsets = [0, 33], sizes = [4, 256], strides = [1, 1]} : vector<4x358xf32> to vector<4x256xf32>
    %134 = vector.broadcast %129 : f32 to vector<4x256xf32>
    %135 = arith.mulf %134, %133 : vector<4x256xf32>
    %136 = arith.addf %132, %135 : vector<4x256xf32>
    %137 = arith.addf %127, %136 : vector<4x256xf32>
    %c22 = arith.constant 22 : index
    %138 = memref.load %arg1[%c22] : memref<98xf32, #tpu.memory_space<smem>>
    %c71 = arith.constant 71 : index
    %139 = memref.load %arg1[%c71] : memref<98xf32, #tpu.memory_space<smem>>
    %140 = vector.extract_strided_slice %28 {offsets = [0, 49], sizes = [4, 256], strides = [1, 1]} : vector<4x358xf32> to vector<4x256xf32>
    %141 = vector.broadcast %138 : f32 to vector<4x256xf32>
    %142 = arith.mulf %141, %140 : vector<4x256xf32>
    %143 = vector.extract_strided_slice %29 {offsets = [0, 49], sizes = [4, 256], strides = [1, 1]} : vector<4x358xf32> to vector<4x256xf32>
    %144 = vector.broadcast %139 : f32 to vector<4x256xf32>
    %145 = arith.mulf %144, %143 : vector<4x256xf32>
    %146 = arith.addf %142, %145 : vector<4x256xf32>
    %147 = arith.addf %137, %146 : vector<4x256xf32>
    %c29 = arith.constant 29 : index
    %148 = memref.load %arg1[%c29] : memref<98xf32, #tpu.memory_space<smem>>
    %c78 = arith.constant 78 : index
    %149 = memref.load %arg1[%c78] : memref<98xf32, #tpu.memory_space<smem>>
    %150 = vector.extract_strided_slice %28 {offsets = [0, 65], sizes = [4, 256], strides = [1, 1]} : vector<4x358xf32> to vector<4x256xf32>
    %151 = vector.broadcast %148 : f32 to vector<4x256xf32>
    %152 = arith.mulf %151, %150 : vector<4x256xf32>
    %153 = vector.extract_strided_slice %29 {offsets = [0, 65], sizes = [4, 256], strides = [1, 1]} : vector<4x358xf32> to vector<4x256xf32>
    %154 = vector.broadcast %149 : f32 to vector<4x256xf32>
    %155 = arith.mulf %154, %153 : vector<4x256xf32>
    %156 = arith.addf %152, %155 : vector<4x256xf32>
    %157 = arith.addf %147, %156 : vector<4x256xf32>
    %c36 = arith.constant 36 : index
    %158 = memref.load %arg1[%c36] : memref<98xf32, #tpu.memory_space<smem>>
    %c85 = arith.constant 85 : index
    %159 = memref.load %arg1[%c85] : memref<98xf32, #tpu.memory_space<smem>>
    %160 = vector.extract_strided_slice %28 {offsets = [0, 81], sizes = [4, 256], strides = [1, 1]} : vector<4x358xf32> to vector<4x256xf32>
    %161 = vector.broadcast %158 : f32 to vector<4x256xf32>
    %162 = arith.mulf %161, %160 : vector<4x256xf32>
    %163 = vector.extract_strided_slice %29 {offsets = [0, 81], sizes = [4, 256], strides = [1, 1]} : vector<4x358xf32> to vector<4x256xf32>
    %164 = vector.broadcast %159 : f32 to vector<4x256xf32>
    %165 = arith.mulf %164, %163 : vector<4x256xf32>
    %166 = arith.addf %162, %165 : vector<4x256xf32>
    %167 = arith.addf %157, %166 : vector<4x256xf32>
    %c43 = arith.constant 43 : index
    %168 = memref.load %arg1[%c43] : memref<98xf32, #tpu.memory_space<smem>>
    %c92 = arith.constant 92 : index
    %169 = memref.load %arg1[%c92] : memref<98xf32, #tpu.memory_space<smem>>
    %170 = vector.extract_strided_slice %28 {offsets = [0, 97], sizes = [4, 256], strides = [1, 1]} : vector<4x358xf32> to vector<4x256xf32>
    %171 = vector.broadcast %168 : f32 to vector<4x256xf32>
    %172 = arith.mulf %171, %170 : vector<4x256xf32>
    %173 = vector.extract_strided_slice %29 {offsets = [0, 97], sizes = [4, 256], strides = [1, 1]} : vector<4x358xf32> to vector<4x256xf32>
    %174 = vector.broadcast %169 : f32 to vector<4x256xf32>
    %175 = arith.mulf %174, %173 : vector<4x256xf32>
    %176 = arith.addf %172, %175 : vector<4x256xf32>
    %177 = arith.addf %167, %176 : vector<4x256xf32>
    %178 = vector.extract_strided_slice %30 {offsets = [1, 0], sizes = [1, 256], strides = [1, 1]} : vector<7x256xf32> to vector<1x256xf32>
    %179 = vector.broadcast %178 : vector<1x256xf32> to vector<4x256xf32>
    %180 = arith.mulf %177, %179 : vector<4x256xf32>
    %181 = arith.addf %106, %180 : vector<4x256xf32>
    %cst_22 = arith.constant 0.000000e+00 : f32
    %182 = vector.broadcast %cst_22 : f32 to vector<4x256xf32>
    %c2 = arith.constant 2 : index
    %183 = memref.load %arg1[%c2] : memref<98xf32, #tpu.memory_space<smem>>
    %c51 = arith.constant 51 : index
    %184 = memref.load %arg1[%c51] : memref<98xf32, #tpu.memory_space<smem>>
    %185 = vector.extract_strided_slice %28 {offsets = [0, 2], sizes = [4, 256], strides = [1, 1]} : vector<4x358xf32> to vector<4x256xf32>
    %186 = vector.broadcast %183 : f32 to vector<4x256xf32>
    %187 = arith.mulf %186, %185 : vector<4x256xf32>
    %188 = vector.extract_strided_slice %29 {offsets = [0, 2], sizes = [4, 256], strides = [1, 1]} : vector<4x358xf32> to vector<4x256xf32>
    %189 = vector.broadcast %184 : f32 to vector<4x256xf32>
    %190 = arith.mulf %189, %188 : vector<4x256xf32>
    %191 = arith.addf %187, %190 : vector<4x256xf32>
    %192 = arith.addf %182, %191 : vector<4x256xf32>
    %c9 = arith.constant 9 : index
    %193 = memref.load %arg1[%c9] : memref<98xf32, #tpu.memory_space<smem>>
    %c58 = arith.constant 58 : index
    %194 = memref.load %arg1[%c58] : memref<98xf32, #tpu.memory_space<smem>>
    %195 = vector.extract_strided_slice %28 {offsets = [0, 18], sizes = [4, 256], strides = [1, 1]} : vector<4x358xf32> to vector<4x256xf32>
    %196 = vector.broadcast %193 : f32 to vector<4x256xf32>
    %197 = arith.mulf %196, %195 : vector<4x256xf32>
    %198 = vector.extract_strided_slice %29 {offsets = [0, 18], sizes = [4, 256], strides = [1, 1]} : vector<4x358xf32> to vector<4x256xf32>
    %199 = vector.broadcast %194 : f32 to vector<4x256xf32>
    %200 = arith.mulf %199, %198 : vector<4x256xf32>
    %201 = arith.addf %197, %200 : vector<4x256xf32>
    %202 = arith.addf %192, %201 : vector<4x256xf32>
    %c16 = arith.constant 16 : index
    %203 = memref.load %arg1[%c16] : memref<98xf32, #tpu.memory_space<smem>>
    %c65 = arith.constant 65 : index
    %204 = memref.load %arg1[%c65] : memref<98xf32, #tpu.memory_space<smem>>
    %205 = vector.extract_strided_slice %28 {offsets = [0, 34], sizes = [4, 256], strides = [1, 1]} : vector<4x358xf32> to vector<4x256xf32>
    %206 = vector.broadcast %203 : f32 to vector<4x256xf32>
    %207 = arith.mulf %206, %205 : vector<4x256xf32>
    %208 = vector.extract_strided_slice %29 {offsets = [0, 34], sizes = [4, 256], strides = [1, 1]} : vector<4x358xf32> to vector<4x256xf32>
    %209 = vector.broadcast %204 : f32 to vector<4x256xf32>
    %210 = arith.mulf %209, %208 : vector<4x256xf32>
    %211 = arith.addf %207, %210 : vector<4x256xf32>
    %212 = arith.addf %202, %211 : vector<4x256xf32>
    %c23 = arith.constant 23 : index
    %213 = memref.load %arg1[%c23] : memref<98xf32, #tpu.memory_space<smem>>
    %c72 = arith.constant 72 : index
    %214 = memref.load %arg1[%c72] : memref<98xf32, #tpu.memory_space<smem>>
    %215 = vector.extract_strided_slice %28 {offsets = [0, 50], sizes = [4, 256], strides = [1, 1]} : vector<4x358xf32> to vector<4x256xf32>
    %216 = vector.broadcast %213 : f32 to vector<4x256xf32>
    %217 = arith.mulf %216, %215 : vector<4x256xf32>
    %218 = vector.extract_strided_slice %29 {offsets = [0, 50], sizes = [4, 256], strides = [1, 1]} : vector<4x358xf32> to vector<4x256xf32>
    %219 = vector.broadcast %214 : f32 to vector<4x256xf32>
    %220 = arith.mulf %219, %218 : vector<4x256xf32>
    %221 = arith.addf %217, %220 : vector<4x256xf32>
    %222 = arith.addf %212, %221 : vector<4x256xf32>
    %c30 = arith.constant 30 : index
    %223 = memref.load %arg1[%c30] : memref<98xf32, #tpu.memory_space<smem>>
    %c79 = arith.constant 79 : index
    %224 = memref.load %arg1[%c79] : memref<98xf32, #tpu.memory_space<smem>>
    %225 = vector.extract_strided_slice %28 {offsets = [0, 66], sizes = [4, 256], strides = [1, 1]} : vector<4x358xf32> to vector<4x256xf32>
    %226 = vector.broadcast %223 : f32 to vector<4x256xf32>
    %227 = arith.mulf %226, %225 : vector<4x256xf32>
    %228 = vector.extract_strided_slice %29 {offsets = [0, 66], sizes = [4, 256], strides = [1, 1]} : vector<4x358xf32> to vector<4x256xf32>
    %229 = vector.broadcast %224 : f32 to vector<4x256xf32>
    %230 = arith.mulf %229, %228 : vector<4x256xf32>
    %231 = arith.addf %227, %230 : vector<4x256xf32>
    %232 = arith.addf %222, %231 : vector<4x256xf32>
    %c37 = arith.constant 37 : index
    %233 = memref.load %arg1[%c37] : memref<98xf32, #tpu.memory_space<smem>>
    %c86 = arith.constant 86 : index
    %234 = memref.load %arg1[%c86] : memref<98xf32, #tpu.memory_space<smem>>
    %235 = vector.extract_strided_slice %28 {offsets = [0, 82], sizes = [4, 256], strides = [1, 1]} : vector<4x358xf32> to vector<4x256xf32>
    %236 = vector.broadcast %233 : f32 to vector<4x256xf32>
    %237 = arith.mulf %236, %235 : vector<4x256xf32>
    %238 = vector.extract_strided_slice %29 {offsets = [0, 82], sizes = [4, 256], strides = [1, 1]} : vector<4x358xf32> to vector<4x256xf32>
    %239 = vector.broadcast %234 : f32 to vector<4x256xf32>
    %240 = arith.mulf %239, %238 : vector<4x256xf32>
    %241 = arith.addf %237, %240 : vector<4x256xf32>
    %242 = arith.addf %232, %241 : vector<4x256xf32>
    %c44 = arith.constant 44 : index
    %243 = memref.load %arg1[%c44] : memref<98xf32, #tpu.memory_space<smem>>
    %c93 = arith.constant 93 : index
    %244 = memref.load %arg1[%c93] : memref<98xf32, #tpu.memory_space<smem>>
    %245 = vector.extract_strided_slice %28 {offsets = [0, 98], sizes = [4, 256], strides = [1, 1]} : vector<4x358xf32> to vector<4x256xf32>
    %246 = vector.broadcast %243 : f32 to vector<4x256xf32>
    %247 = arith.mulf %246, %245 : vector<4x256xf32>
    %248 = vector.extract_strided_slice %29 {offsets = [0, 98], sizes = [4, 256], strides = [1, 1]} : vector<4x358xf32> to vector<4x256xf32>
    %249 = vector.broadcast %244 : f32 to vector<4x256xf32>
    %250 = arith.mulf %249, %248 : vector<4x256xf32>
    %251 = arith.addf %247, %250 : vector<4x256xf32>
    %252 = arith.addf %242, %251 : vector<4x256xf32>
    %253 = vector.extract_strided_slice %30 {offsets = [2, 0], sizes = [1, 256], strides = [1, 1]} : vector<7x256xf32> to vector<1x256xf32>
    %254 = vector.broadcast %253 : vector<1x256xf32> to vector<4x256xf32>
    %255 = arith.mulf %252, %254 : vector<4x256xf32>
    %256 = arith.addf %181, %255 : vector<4x256xf32>
    %cst_23 = arith.constant 0.000000e+00 : f32
    %257 = vector.broadcast %cst_23 : f32 to vector<4x256xf32>
    %c3 = arith.constant 3 : index
    %258 = memref.load %arg1[%c3] : memref<98xf32, #tpu.memory_space<smem>>
    %c52 = arith.constant 52 : index
    %259 = memref.load %arg1[%c52] : memref<98xf32, #tpu.memory_space<smem>>
    %260 = vector.extract_strided_slice %28 {offsets = [0, 3], sizes = [4, 256], strides = [1, 1]} : vector<4x358xf32> to vector<4x256xf32>
    %261 = vector.broadcast %258 : f32 to vector<4x256xf32>
    %262 = arith.mulf %261, %260 : vector<4x256xf32>
    %263 = vector.extract_strided_slice %29 {offsets = [0, 3], sizes = [4, 256], strides = [1, 1]} : vector<4x358xf32> to vector<4x256xf32>
    %264 = vector.broadcast %259 : f32 to vector<4x256xf32>
    %265 = arith.mulf %264, %263 : vector<4x256xf32>
    %266 = arith.addf %262, %265 : vector<4x256xf32>
    %267 = arith.addf %257, %266 : vector<4x256xf32>
    %c10 = arith.constant 10 : index
    %268 = memref.load %arg1[%c10] : memref<98xf32, #tpu.memory_space<smem>>
    %c59 = arith.constant 59 : index
    %269 = memref.load %arg1[%c59] : memref<98xf32, #tpu.memory_space<smem>>
    %270 = vector.extract_strided_slice %28 {offsets = [0, 19], sizes = [4, 256], strides = [1, 1]} : vector<4x358xf32> to vector<4x256xf32>
    %271 = vector.broadcast %268 : f32 to vector<4x256xf32>
    %272 = arith.mulf %271, %270 : vector<4x256xf32>
    %273 = vector.extract_strided_slice %29 {offsets = [0, 19], sizes = [4, 256], strides = [1, 1]} : vector<4x358xf32> to vector<4x256xf32>
    %274 = vector.broadcast %269 : f32 to vector<4x256xf32>
    %275 = arith.mulf %274, %273 : vector<4x256xf32>
    %276 = arith.addf %272, %275 : vector<4x256xf32>
    %277 = arith.addf %267, %276 : vector<4x256xf32>
    %c17 = arith.constant 17 : index
    %278 = memref.load %arg1[%c17] : memref<98xf32, #tpu.memory_space<smem>>
    %c66 = arith.constant 66 : index
    %279 = memref.load %arg1[%c66] : memref<98xf32, #tpu.memory_space<smem>>
    %280 = vector.extract_strided_slice %28 {offsets = [0, 35], sizes = [4, 256], strides = [1, 1]} : vector<4x358xf32> to vector<4x256xf32>
    %281 = vector.broadcast %278 : f32 to vector<4x256xf32>
    %282 = arith.mulf %281, %280 : vector<4x256xf32>
    %283 = vector.extract_strided_slice %29 {offsets = [0, 35], sizes = [4, 256], strides = [1, 1]} : vector<4x358xf32> to vector<4x256xf32>
    %284 = vector.broadcast %279 : f32 to vector<4x256xf32>
    %285 = arith.mulf %284, %283 : vector<4x256xf32>
    %286 = arith.addf %282, %285 : vector<4x256xf32>
    %287 = arith.addf %277, %286 : vector<4x256xf32>
    %c24 = arith.constant 24 : index
    %288 = memref.load %arg1[%c24] : memref<98xf32, #tpu.memory_space<smem>>
    %c73 = arith.constant 73 : index
    %289 = memref.load %arg1[%c73] : memref<98xf32, #tpu.memory_space<smem>>
    %290 = vector.extract_strided_slice %28 {offsets = [0, 51], sizes = [4, 256], strides = [1, 1]} : vector<4x358xf32> to vector<4x256xf32>
    %291 = vector.broadcast %288 : f32 to vector<4x256xf32>
    %292 = arith.mulf %291, %290 : vector<4x256xf32>
    %293 = vector.extract_strided_slice %29 {offsets = [0, 51], sizes = [4, 256], strides = [1, 1]} : vector<4x358xf32> to vector<4x256xf32>
    %294 = vector.broadcast %289 : f32 to vector<4x256xf32>
    %295 = arith.mulf %294, %293 : vector<4x256xf32>
    %296 = arith.addf %292, %295 : vector<4x256xf32>
    %297 = arith.addf %287, %296 : vector<4x256xf32>
    %c31 = arith.constant 31 : index
    %298 = memref.load %arg1[%c31] : memref<98xf32, #tpu.memory_space<smem>>
    %c80 = arith.constant 80 : index
    %299 = memref.load %arg1[%c80] : memref<98xf32, #tpu.memory_space<smem>>
    %300 = vector.extract_strided_slice %28 {offsets = [0, 67], sizes = [4, 256], strides = [1, 1]} : vector<4x358xf32> to vector<4x256xf32>
    %301 = vector.broadcast %298 : f32 to vector<4x256xf32>
    %302 = arith.mulf %301, %300 : vector<4x256xf32>
    %303 = vector.extract_strided_slice %29 {offsets = [0, 67], sizes = [4, 256], strides = [1, 1]} : vector<4x358xf32> to vector<4x256xf32>
    %304 = vector.broadcast %299 : f32 to vector<4x256xf32>
    %305 = arith.mulf %304, %303 : vector<4x256xf32>
    %306 = arith.addf %302, %305 : vector<4x256xf32>
    %307 = arith.addf %297, %306 : vector<4x256xf32>
    %c38 = arith.constant 38 : index
    %308 = memref.load %arg1[%c38] : memref<98xf32, #tpu.memory_space<smem>>
    %c87 = arith.constant 87 : index
    %309 = memref.load %arg1[%c87] : memref<98xf32, #tpu.memory_space<smem>>
    %310 = vector.extract_strided_slice %28 {offsets = [0, 83], sizes = [4, 256], strides = [1, 1]} : vector<4x358xf32> to vector<4x256xf32>
    %311 = vector.broadcast %308 : f32 to vector<4x256xf32>
    %312 = arith.mulf %311, %310 : vector<4x256xf32>
    %313 = vector.extract_strided_slice %29 {offsets = [0, 83], sizes = [4, 256], strides = [1, 1]} : vector<4x358xf32> to vector<4x256xf32>
    %314 = vector.broadcast %309 : f32 to vector<4x256xf32>
    %315 = arith.mulf %314, %313 : vector<4x256xf32>
    %316 = arith.addf %312, %315 : vector<4x256xf32>
    %317 = arith.addf %307, %316 : vector<4x256xf32>
    %c45 = arith.constant 45 : index
    %318 = memref.load %arg1[%c45] : memref<98xf32, #tpu.memory_space<smem>>
    %c94 = arith.constant 94 : index
    %319 = memref.load %arg1[%c94] : memref<98xf32, #tpu.memory_space<smem>>
    %320 = vector.extract_strided_slice %28 {offsets = [0, 99], sizes = [4, 256], strides = [1, 1]} : vector<4x358xf32> to vector<4x256xf32>
    %321 = vector.broadcast %318 : f32 to vector<4x256xf32>
    %322 = arith.mulf %321, %320 : vector<4x256xf32>
    %323 = vector.extract_strided_slice %29 {offsets = [0, 99], sizes = [4, 256], strides = [1, 1]} : vector<4x358xf32> to vector<4x256xf32>
    %324 = vector.broadcast %319 : f32 to vector<4x256xf32>
    %325 = arith.mulf %324, %323 : vector<4x256xf32>
    %326 = arith.addf %322, %325 : vector<4x256xf32>
    %327 = arith.addf %317, %326 : vector<4x256xf32>
    %328 = vector.extract_strided_slice %30 {offsets = [3, 0], sizes = [1, 256], strides = [1, 1]} : vector<7x256xf32> to vector<1x256xf32>
    %329 = vector.broadcast %328 : vector<1x256xf32> to vector<4x256xf32>
    %330 = arith.mulf %327, %329 : vector<4x256xf32>
    %331 = arith.addf %256, %330 : vector<4x256xf32>
    %cst_24 = arith.constant 0.000000e+00 : f32
    %332 = vector.broadcast %cst_24 : f32 to vector<4x256xf32>
    %c4 = arith.constant 4 : index
    %333 = memref.load %arg1[%c4] : memref<98xf32, #tpu.memory_space<smem>>
    %c53 = arith.constant 53 : index
    %334 = memref.load %arg1[%c53] : memref<98xf32, #tpu.memory_space<smem>>
    %335 = vector.extract_strided_slice %28 {offsets = [0, 4], sizes = [4, 256], strides = [1, 1]} : vector<4x358xf32> to vector<4x256xf32>
    %336 = vector.broadcast %333 : f32 to vector<4x256xf32>
    %337 = arith.mulf %336, %335 : vector<4x256xf32>
    %338 = vector.extract_strided_slice %29 {offsets = [0, 4], sizes = [4, 256], strides = [1, 1]} : vector<4x358xf32> to vector<4x256xf32>
    %339 = vector.broadcast %334 : f32 to vector<4x256xf32>
    %340 = arith.mulf %339, %338 : vector<4x256xf32>
    %341 = arith.addf %337, %340 : vector<4x256xf32>
    %342 = arith.addf %332, %341 : vector<4x256xf32>
    %c11 = arith.constant 11 : index
    %343 = memref.load %arg1[%c11] : memref<98xf32, #tpu.memory_space<smem>>
    %c60 = arith.constant 60 : index
    %344 = memref.load %arg1[%c60] : memref<98xf32, #tpu.memory_space<smem>>
    %345 = vector.extract_strided_slice %28 {offsets = [0, 20], sizes = [4, 256], strides = [1, 1]} : vector<4x358xf32> to vector<4x256xf32>
    %346 = vector.broadcast %343 : f32 to vector<4x256xf32>
    %347 = arith.mulf %346, %345 : vector<4x256xf32>
    %348 = vector.extract_strided_slice %29 {offsets = [0, 20], sizes = [4, 256], strides = [1, 1]} : vector<4x358xf32> to vector<4x256xf32>
    %349 = vector.broadcast %344 : f32 to vector<4x256xf32>
    %350 = arith.mulf %349, %348 : vector<4x256xf32>
    %351 = arith.addf %347, %350 : vector<4x256xf32>
    %352 = arith.addf %342, %351 : vector<4x256xf32>
    %c18 = arith.constant 18 : index
    %353 = memref.load %arg1[%c18] : memref<98xf32, #tpu.memory_space<smem>>
    %c67 = arith.constant 67 : index
    %354 = memref.load %arg1[%c67] : memref<98xf32, #tpu.memory_space<smem>>
    %355 = vector.extract_strided_slice %28 {offsets = [0, 36], sizes = [4, 256], strides = [1, 1]} : vector<4x358xf32> to vector<4x256xf32>
    %356 = vector.broadcast %353 : f32 to vector<4x256xf32>
    %357 = arith.mulf %356, %355 : vector<4x256xf32>
    %358 = vector.extract_strided_slice %29 {offsets = [0, 36], sizes = [4, 256], strides = [1, 1]} : vector<4x358xf32> to vector<4x256xf32>
    %359 = vector.broadcast %354 : f32 to vector<4x256xf32>
    %360 = arith.mulf %359, %358 : vector<4x256xf32>
    %361 = arith.addf %357, %360 : vector<4x256xf32>
    %362 = arith.addf %352, %361 : vector<4x256xf32>
    %c25 = arith.constant 25 : index
    %363 = memref.load %arg1[%c25] : memref<98xf32, #tpu.memory_space<smem>>
    %c74 = arith.constant 74 : index
    %364 = memref.load %arg1[%c74] : memref<98xf32, #tpu.memory_space<smem>>
    %365 = vector.extract_strided_slice %28 {offsets = [0, 52], sizes = [4, 256], strides = [1, 1]} : vector<4x358xf32> to vector<4x256xf32>
    %366 = vector.broadcast %363 : f32 to vector<4x256xf32>
    %367 = arith.mulf %366, %365 : vector<4x256xf32>
    %368 = vector.extract_strided_slice %29 {offsets = [0, 52], sizes = [4, 256], strides = [1, 1]} : vector<4x358xf32> to vector<4x256xf32>
    %369 = vector.broadcast %364 : f32 to vector<4x256xf32>
    %370 = arith.mulf %369, %368 : vector<4x256xf32>
    %371 = arith.addf %367, %370 : vector<4x256xf32>
    %372 = arith.addf %362, %371 : vector<4x256xf32>
    %c32 = arith.constant 32 : index
    %373 = memref.load %arg1[%c32] : memref<98xf32, #tpu.memory_space<smem>>
    %c81 = arith.constant 81 : index
    %374 = memref.load %arg1[%c81] : memref<98xf32, #tpu.memory_space<smem>>
    %375 = vector.extract_strided_slice %28 {offsets = [0, 68], sizes = [4, 256], strides = [1, 1]} : vector<4x358xf32> to vector<4x256xf32>
    %376 = vector.broadcast %373 : f32 to vector<4x256xf32>
    %377 = arith.mulf %376, %375 : vector<4x256xf32>
    %378 = vector.extract_strided_slice %29 {offsets = [0, 68], sizes = [4, 256], strides = [1, 1]} : vector<4x358xf32> to vector<4x256xf32>
    %379 = vector.broadcast %374 : f32 to vector<4x256xf32>
    %380 = arith.mulf %379, %378 : vector<4x256xf32>
    %381 = arith.addf %377, %380 : vector<4x256xf32>
    %382 = arith.addf %372, %381 : vector<4x256xf32>
    %c39 = arith.constant 39 : index
    %383 = memref.load %arg1[%c39] : memref<98xf32, #tpu.memory_space<smem>>
    %c88 = arith.constant 88 : index
    %384 = memref.load %arg1[%c88] : memref<98xf32, #tpu.memory_space<smem>>
    %385 = vector.extract_strided_slice %28 {offsets = [0, 84], sizes = [4, 256], strides = [1, 1]} : vector<4x358xf32> to vector<4x256xf32>
    %386 = vector.broadcast %383 : f32 to vector<4x256xf32>
    %387 = arith.mulf %386, %385 : vector<4x256xf32>
    %388 = vector.extract_strided_slice %29 {offsets = [0, 84], sizes = [4, 256], strides = [1, 1]} : vector<4x358xf32> to vector<4x256xf32>
    %389 = vector.broadcast %384 : f32 to vector<4x256xf32>
    %390 = arith.mulf %389, %388 : vector<4x256xf32>
    %391 = arith.addf %387, %390 : vector<4x256xf32>
    %392 = arith.addf %382, %391 : vector<4x256xf32>
    %c46 = arith.constant 46 : index
    %393 = memref.load %arg1[%c46] : memref<98xf32, #tpu.memory_space<smem>>
    %c95 = arith.constant 95 : index
    %394 = memref.load %arg1[%c95] : memref<98xf32, #tpu.memory_space<smem>>
    %395 = vector.extract_strided_slice %28 {offsets = [0, 100], sizes = [4, 256], strides = [1, 1]} : vector<4x358xf32> to vector<4x256xf32>
    %396 = vector.broadcast %393 : f32 to vector<4x256xf32>
    %397 = arith.mulf %396, %395 : vector<4x256xf32>
    %398 = vector.extract_strided_slice %29 {offsets = [0, 100], sizes = [4, 256], strides = [1, 1]} : vector<4x358xf32> to vector<4x256xf32>
    %399 = vector.broadcast %394 : f32 to vector<4x256xf32>
    %400 = arith.mulf %399, %398 : vector<4x256xf32>
    %401 = arith.addf %397, %400 : vector<4x256xf32>
    %402 = arith.addf %392, %401 : vector<4x256xf32>
    %403 = vector.extract_strided_slice %30 {offsets = [4, 0], sizes = [1, 256], strides = [1, 1]} : vector<7x256xf32> to vector<1x256xf32>
    %404 = vector.broadcast %403 : vector<1x256xf32> to vector<4x256xf32>
    %405 = arith.mulf %402, %404 : vector<4x256xf32>
    %406 = arith.addf %331, %405 : vector<4x256xf32>
    %cst_25 = arith.constant 0.000000e+00 : f32
    %407 = vector.broadcast %cst_25 : f32 to vector<4x256xf32>
    %c5 = arith.constant 5 : index
    %408 = memref.load %arg1[%c5] : memref<98xf32, #tpu.memory_space<smem>>
    %c54 = arith.constant 54 : index
    %409 = memref.load %arg1[%c54] : memref<98xf32, #tpu.memory_space<smem>>
    %410 = vector.extract_strided_slice %28 {offsets = [0, 5], sizes = [4, 256], strides = [1, 1]} : vector<4x358xf32> to vector<4x256xf32>
    %411 = vector.broadcast %408 : f32 to vector<4x256xf32>
    %412 = arith.mulf %411, %410 : vector<4x256xf32>
    %413 = vector.extract_strided_slice %29 {offsets = [0, 5], sizes = [4, 256], strides = [1, 1]} : vector<4x358xf32> to vector<4x256xf32>
    %414 = vector.broadcast %409 : f32 to vector<4x256xf32>
    %415 = arith.mulf %414, %413 : vector<4x256xf32>
    %416 = arith.addf %412, %415 : vector<4x256xf32>
    %417 = arith.addf %407, %416 : vector<4x256xf32>
    %c12 = arith.constant 12 : index
    %418 = memref.load %arg1[%c12] : memref<98xf32, #tpu.memory_space<smem>>
    %c61 = arith.constant 61 : index
    %419 = memref.load %arg1[%c61] : memref<98xf32, #tpu.memory_space<smem>>
    %420 = vector.extract_strided_slice %28 {offsets = [0, 21], sizes = [4, 256], strides = [1, 1]} : vector<4x358xf32> to vector<4x256xf32>
    %421 = vector.broadcast %418 : f32 to vector<4x256xf32>
    %422 = arith.mulf %421, %420 : vector<4x256xf32>
    %423 = vector.extract_strided_slice %29 {offsets = [0, 21], sizes = [4, 256], strides = [1, 1]} : vector<4x358xf32> to vector<4x256xf32>
    %424 = vector.broadcast %419 : f32 to vector<4x256xf32>
    %425 = arith.mulf %424, %423 : vector<4x256xf32>
    %426 = arith.addf %422, %425 : vector<4x256xf32>
    %427 = arith.addf %417, %426 : vector<4x256xf32>
    %c19 = arith.constant 19 : index
    %428 = memref.load %arg1[%c19] : memref<98xf32, #tpu.memory_space<smem>>
    %c68 = arith.constant 68 : index
    %429 = memref.load %arg1[%c68] : memref<98xf32, #tpu.memory_space<smem>>
    %430 = vector.extract_strided_slice %28 {offsets = [0, 37], sizes = [4, 256], strides = [1, 1]} : vector<4x358xf32> to vector<4x256xf32>
    %431 = vector.broadcast %428 : f32 to vector<4x256xf32>
    %432 = arith.mulf %431, %430 : vector<4x256xf32>
    %433 = vector.extract_strided_slice %29 {offsets = [0, 37], sizes = [4, 256], strides = [1, 1]} : vector<4x358xf32> to vector<4x256xf32>
    %434 = vector.broadcast %429 : f32 to vector<4x256xf32>
    %435 = arith.mulf %434, %433 : vector<4x256xf32>
    %436 = arith.addf %432, %435 : vector<4x256xf32>
    %437 = arith.addf %427, %436 : vector<4x256xf32>
    %c26 = arith.constant 26 : index
    %438 = memref.load %arg1[%c26] : memref<98xf32, #tpu.memory_space<smem>>
    %c75 = arith.constant 75 : index
    %439 = memref.load %arg1[%c75] : memref<98xf32, #tpu.memory_space<smem>>
    %440 = vector.extract_strided_slice %28 {offsets = [0, 53], sizes = [4, 256], strides = [1, 1]} : vector<4x358xf32> to vector<4x256xf32>
    %441 = vector.broadcast %438 : f32 to vector<4x256xf32>
    %442 = arith.mulf %441, %440 : vector<4x256xf32>
    %443 = vector.extract_strided_slice %29 {offsets = [0, 53], sizes = [4, 256], strides = [1, 1]} : vector<4x358xf32> to vector<4x256xf32>
    %444 = vector.broadcast %439 : f32 to vector<4x256xf32>
    %445 = arith.mulf %444, %443 : vector<4x256xf32>
    %446 = arith.addf %442, %445 : vector<4x256xf32>
    %447 = arith.addf %437, %446 : vector<4x256xf32>
    %c33 = arith.constant 33 : index
    %448 = memref.load %arg1[%c33] : memref<98xf32, #tpu.memory_space<smem>>
    %c82 = arith.constant 82 : index
    %449 = memref.load %arg1[%c82] : memref<98xf32, #tpu.memory_space<smem>>
    %450 = vector.extract_strided_slice %28 {offsets = [0, 69], sizes = [4, 256], strides = [1, 1]} : vector<4x358xf32> to vector<4x256xf32>
    %451 = vector.broadcast %448 : f32 to vector<4x256xf32>
    %452 = arith.mulf %451, %450 : vector<4x256xf32>
    %453 = vector.extract_strided_slice %29 {offsets = [0, 69], sizes = [4, 256], strides = [1, 1]} : vector<4x358xf32> to vector<4x256xf32>
    %454 = vector.broadcast %449 : f32 to vector<4x256xf32>
    %455 = arith.mulf %454, %453 : vector<4x256xf32>
    %456 = arith.addf %452, %455 : vector<4x256xf32>
    %457 = arith.addf %447, %456 : vector<4x256xf32>
    %c40 = arith.constant 40 : index
    %458 = memref.load %arg1[%c40] : memref<98xf32, #tpu.memory_space<smem>>
    %c89 = arith.constant 89 : index
    %459 = memref.load %arg1[%c89] : memref<98xf32, #tpu.memory_space<smem>>
    %460 = vector.extract_strided_slice %28 {offsets = [0, 85], sizes = [4, 256], strides = [1, 1]} : vector<4x358xf32> to vector<4x256xf32>
    %461 = vector.broadcast %458 : f32 to vector<4x256xf32>
    %462 = arith.mulf %461, %460 : vector<4x256xf32>
    %463 = vector.extract_strided_slice %29 {offsets = [0, 85], sizes = [4, 256], strides = [1, 1]} : vector<4x358xf32> to vector<4x256xf32>
    %464 = vector.broadcast %459 : f32 to vector<4x256xf32>
    %465 = arith.mulf %464, %463 : vector<4x256xf32>
    %466 = arith.addf %462, %465 : vector<4x256xf32>
    %467 = arith.addf %457, %466 : vector<4x256xf32>
    %c47 = arith.constant 47 : index
    %468 = memref.load %arg1[%c47] : memref<98xf32, #tpu.memory_space<smem>>
    %c96 = arith.constant 96 : index
    %469 = memref.load %arg1[%c96] : memref<98xf32, #tpu.memory_space<smem>>
    %470 = vector.extract_strided_slice %28 {offsets = [0, 101], sizes = [4, 256], strides = [1, 1]} : vector<4x358xf32> to vector<4x256xf32>
    %471 = vector.broadcast %468 : f32 to vector<4x256xf32>
    %472 = arith.mulf %471, %470 : vector<4x256xf32>
    %473 = vector.extract_strided_slice %29 {offsets = [0, 101], sizes = [4, 256], strides = [1, 1]} : vector<4x358xf32> to vector<4x256xf32>
    %474 = vector.broadcast %469 : f32 to vector<4x256xf32>
    %475 = arith.mulf %474, %473 : vector<4x256xf32>
    %476 = arith.addf %472, %475 : vector<4x256xf32>
    %477 = arith.addf %467, %476 : vector<4x256xf32>
    %478 = vector.extract_strided_slice %30 {offsets = [5, 0], sizes = [1, 256], strides = [1, 1]} : vector<7x256xf32> to vector<1x256xf32>
    %479 = vector.broadcast %478 : vector<1x256xf32> to vector<4x256xf32>
    %480 = arith.mulf %477, %479 : vector<4x256xf32>
    %481 = arith.addf %406, %480 : vector<4x256xf32>
    %cst_26 = arith.constant 0.000000e+00 : f32
    %482 = vector.broadcast %cst_26 : f32 to vector<4x256xf32>
    %c6 = arith.constant 6 : index
    %483 = memref.load %arg1[%c6] : memref<98xf32, #tpu.memory_space<smem>>
    %c55 = arith.constant 55 : index
    %484 = memref.load %arg1[%c55] : memref<98xf32, #tpu.memory_space<smem>>
    %485 = vector.extract_strided_slice %28 {offsets = [0, 6], sizes = [4, 256], strides = [1, 1]} : vector<4x358xf32> to vector<4x256xf32>
    %486 = vector.broadcast %483 : f32 to vector<4x256xf32>
    %487 = arith.mulf %486, %485 : vector<4x256xf32>
    %488 = vector.extract_strided_slice %29 {offsets = [0, 6], sizes = [4, 256], strides = [1, 1]} : vector<4x358xf32> to vector<4x256xf32>
    %489 = vector.broadcast %484 : f32 to vector<4x256xf32>
    %490 = arith.mulf %489, %488 : vector<4x256xf32>
    %491 = arith.addf %487, %490 : vector<4x256xf32>
    %492 = arith.addf %482, %491 : vector<4x256xf32>
    %c13 = arith.constant 13 : index
    %493 = memref.load %arg1[%c13] : memref<98xf32, #tpu.memory_space<smem>>
    %c62 = arith.constant 62 : index
    %494 = memref.load %arg1[%c62] : memref<98xf32, #tpu.memory_space<smem>>
    %495 = vector.extract_strided_slice %28 {offsets = [0, 22], sizes = [4, 256], strides = [1, 1]} : vector<4x358xf32> to vector<4x256xf32>
    %496 = vector.broadcast %493 : f32 to vector<4x256xf32>
    %497 = arith.mulf %496, %495 : vector<4x256xf32>
    %498 = vector.extract_strided_slice %29 {offsets = [0, 22], sizes = [4, 256], strides = [1, 1]} : vector<4x358xf32> to vector<4x256xf32>
    %499 = vector.broadcast %494 : f32 to vector<4x256xf32>
    %500 = arith.mulf %499, %498 : vector<4x256xf32>
    %501 = arith.addf %497, %500 : vector<4x256xf32>
    %502 = arith.addf %492, %501 : vector<4x256xf32>
    %c20 = arith.constant 20 : index
    %503 = memref.load %arg1[%c20] : memref<98xf32, #tpu.memory_space<smem>>
    %c69 = arith.constant 69 : index
    %504 = memref.load %arg1[%c69] : memref<98xf32, #tpu.memory_space<smem>>
    %505 = vector.extract_strided_slice %28 {offsets = [0, 38], sizes = [4, 256], strides = [1, 1]} : vector<4x358xf32> to vector<4x256xf32>
    %506 = vector.broadcast %503 : f32 to vector<4x256xf32>
    %507 = arith.mulf %506, %505 : vector<4x256xf32>
    %508 = vector.extract_strided_slice %29 {offsets = [0, 38], sizes = [4, 256], strides = [1, 1]} : vector<4x358xf32> to vector<4x256xf32>
    %509 = vector.broadcast %504 : f32 to vector<4x256xf32>
    %510 = arith.mulf %509, %508 : vector<4x256xf32>
    %511 = arith.addf %507, %510 : vector<4x256xf32>
    %512 = arith.addf %502, %511 : vector<4x256xf32>
    %c27 = arith.constant 27 : index
    %513 = memref.load %arg1[%c27] : memref<98xf32, #tpu.memory_space<smem>>
    %c76 = arith.constant 76 : index
    %514 = memref.load %arg1[%c76] : memref<98xf32, #tpu.memory_space<smem>>
    %515 = vector.extract_strided_slice %28 {offsets = [0, 54], sizes = [4, 256], strides = [1, 1]} : vector<4x358xf32> to vector<4x256xf32>
    %516 = vector.broadcast %513 : f32 to vector<4x256xf32>
    %517 = arith.mulf %516, %515 : vector<4x256xf32>
    %518 = vector.extract_strided_slice %29 {offsets = [0, 54], sizes = [4, 256], strides = [1, 1]} : vector<4x358xf32> to vector<4x256xf32>
    %519 = vector.broadcast %514 : f32 to vector<4x256xf32>
    %520 = arith.mulf %519, %518 : vector<4x256xf32>
    %521 = arith.addf %517, %520 : vector<4x256xf32>
    %522 = arith.addf %512, %521 : vector<4x256xf32>
    %c34 = arith.constant 34 : index
    %523 = memref.load %arg1[%c34] : memref<98xf32, #tpu.memory_space<smem>>
    %c83 = arith.constant 83 : index
    %524 = memref.load %arg1[%c83] : memref<98xf32, #tpu.memory_space<smem>>
    %525 = vector.extract_strided_slice %28 {offsets = [0, 70], sizes = [4, 256], strides = [1, 1]} : vector<4x358xf32> to vector<4x256xf32>
    %526 = vector.broadcast %523 : f32 to vector<4x256xf32>
    %527 = arith.mulf %526, %525 : vector<4x256xf32>
    %528 = vector.extract_strided_slice %29 {offsets = [0, 70], sizes = [4, 256], strides = [1, 1]} : vector<4x358xf32> to vector<4x256xf32>
    %529 = vector.broadcast %524 : f32 to vector<4x256xf32>
    %530 = arith.mulf %529, %528 : vector<4x256xf32>
    %531 = arith.addf %527, %530 : vector<4x256xf32>
    %532 = arith.addf %522, %531 : vector<4x256xf32>
    %c41 = arith.constant 41 : index
    %533 = memref.load %arg1[%c41] : memref<98xf32, #tpu.memory_space<smem>>
    %c90 = arith.constant 90 : index
    %534 = memref.load %arg1[%c90] : memref<98xf32, #tpu.memory_space<smem>>
    %535 = vector.extract_strided_slice %28 {offsets = [0, 86], sizes = [4, 256], strides = [1, 1]} : vector<4x358xf32> to vector<4x256xf32>
    %536 = vector.broadcast %533 : f32 to vector<4x256xf32>
    %537 = arith.mulf %536, %535 : vector<4x256xf32>
    %538 = vector.extract_strided_slice %29 {offsets = [0, 86], sizes = [4, 256], strides = [1, 1]} : vector<4x358xf32> to vector<4x256xf32>
    %539 = vector.broadcast %534 : f32 to vector<4x256xf32>
    %540 = arith.mulf %539, %538 : vector<4x256xf32>
    %541 = arith.addf %537, %540 : vector<4x256xf32>
    %542 = arith.addf %532, %541 : vector<4x256xf32>
    %c48 = arith.constant 48 : index
    %543 = memref.load %arg1[%c48] : memref<98xf32, #tpu.memory_space<smem>>
    %c97 = arith.constant 97 : index
    %544 = memref.load %arg1[%c97] : memref<98xf32, #tpu.memory_space<smem>>
    %545 = vector.extract_strided_slice %28 {offsets = [0, 102], sizes = [4, 256], strides = [1, 1]} : vector<4x358xf32> to vector<4x256xf32>
    %546 = vector.broadcast %543 : f32 to vector<4x256xf32>
    %547 = arith.mulf %546, %545 : vector<4x256xf32>
    %548 = vector.extract_strided_slice %29 {offsets = [0, 102], sizes = [4, 256], strides = [1, 1]} : vector<4x358xf32> to vector<4x256xf32>
    %549 = vector.broadcast %544 : f32 to vector<4x256xf32>
    %550 = arith.mulf %549, %548 : vector<4x256xf32>
    %551 = arith.addf %547, %550 : vector<4x256xf32>
    %552 = arith.addf %542, %551 : vector<4x256xf32>
    %553 = vector.extract_strided_slice %30 {offsets = [6, 0], sizes = [1, 256], strides = [1, 1]} : vector<7x256xf32> to vector<1x256xf32>
    %554 = vector.broadcast %553 : vector<1x256xf32> to vector<4x256xf32>
    %555 = arith.mulf %552, %554 : vector<4x256xf32>
    %556 = arith.addf %481, %555 : vector<4x256xf32>
    %557 = arith.negf %556 : vector<4x256xf32>
    %558 = math.exp %557 : vector<4x256xf32>
    %cst_27 = arith.constant 1.000000e+00 : f32
    %559 = vector.broadcast %cst_27 : f32 to vector<4x256xf32>
    %560 = arith.addf %559, %558 : vector<4x256xf32>
    %561 = arith.divf %559, %560 : vector<4x256xf32>
    %562 = vector.shape_cast %561 : vector<4x256xf32> to vector<4x1x256xf32>
    %563 = vector.broadcast %562 : vector<4x1x256xf32> to vector<4x16x256xf32>
    %564 = arith.mulf %22, %563 : vector<4x16x256xf32>
    %c0_28 = arith.constant 0 : index
    %c0_29 = arith.constant 0 : index
    %c0_30 = arith.constant 0 : index
    %565 = vector.load %arg6[%c0_28, %c0_29, %c0_30] : memref<4x16x256xf32, #tpu.memory_space<vmem>>, vector<4x16x256xf32>
    tpu.vector_store %arg6[%c0_28, %c0_29, %c0_30], %564 {strides = array<i32>} : memref<4x16x256xf32, #tpu.memory_space<vmem>>, vector<4x16x256xf32>,
    return
  }
  func.func @transform_0(%arg0: i32, %arg1: memref<98xf32, #tpu.memory_space<smem>>) -> (i32, i32, i32) {
    %c0_i32 = arith.constant 0 : i32
    %c0_i32_0 = arith.constant 0 : i32
    %c0_i32_1 = arith.constant 0 : i32
    return %arg0, %c0_i32, %c0_i32_0 : i32, i32, i32
  }
  func.func @transform_1(%arg0: i32, %arg1: memref<98xf32, #tpu.memory_space<smem>>) -> (i32, i32) {
    %c0_i32 = arith.constant 0 : i32
    %c0_i32_0 = arith.constant 0 : i32
    %c0_i32_1 = arith.constant 0 : i32
    return %c0_i32, %c0_i32_0 : i32, i32
  }
  func.func @transform_2(%arg0: i32, %arg1: memref<98xf32, #tpu.memory_space<smem>>) -> (i32, i32) {
    %c0_i32 = arith.constant 0 : i32
    %c0_i32_0 = arith.constant 0 : i32
    %c0_i32_1 = arith.constant 0 : i32
    return %c0_i32, %c0_i32_0 : i32, i32
  }
  func.func @transform_3(%arg0: i32, %arg1: memref<98xf32, #tpu.memory_space<smem>>) -> (i32, i32) {
    %c0_i32 = arith.constant 0 : i32
    %c0_i32_0 = arith.constant 0 : i32
    %c0_i32_1 = arith.constant 0 : i32
    return %c0_i32, %c0_i32_0 : i32, i32
  }
  func.func @transform_4(%arg0: i32, %arg1: memref<98xf32, #tpu.memory_space<smem>>) -> (i32, i32, i32) {
    %c0_i32 = arith.constant 0 : i32
    %c0_i32_0 = arith.constant 0 : i32
    %c0_i32_1 = arith.constant 0 : i32
    return %arg0, %c0_i32, %c0_i32_0 : i32, i32, i32
  }
}

</mosaic_0001>

<bundles_post_ra>
// kernel: tpu_custom_call.1
= control target key start
LH: loop header
LB: loop body
LE: loop exit
PB: predicated region body
PF: predicated region fallthrough
CT: control target
= control target key end

     0   :  { %s4026_s0 = inlined_call_operand.hbm [shape: f32[98], index: 0, kind: input, shape index: {}]   ;;  %s4027_s1 = inlined_call_operand.hbm [shape: f32[4,16,256], index: 1, kind: input, shape index: {}]   ;;  %s4028_s2 = inlined_call_operand.hbm [shape: f32[16,4], index: 2, kind: input, shape index: {}]   ;;  %s4029_s3 = inlined_call_operand.hbm [shape: f32[4,16], index: 3, kind: input, shape index: {}]   ;;  %s4030_s4 = inlined_call_operand.hbm [shape: f32[7,256], index: 4, kind: input, shape index: {}]   ;;  %s4031_s5 = inlined_call_operand.hbm [shape: f32[4,16,256], index: 5, kind: output, shape index: {}]  }
   0x1   :  { %s2553_s20 = scalar_lea.hbm %s4026_s0, 16 }
   0x2   :  { %p2554_p0 = scmp.ne.s32.totalorder %s4026_s0, %s2553_s20  ;;  %p2557_p1 = scmp.lt.u32.totalorder %s2553_s20, %s4026_s0 }
   0x4   :  { %p2559_p2 = pnand %p2557_p1, %p2554_p0 }
   0x6   :  { %2562 = shalt.err (!%p2559_p2)  }
   0x7   :  { %s2683_s25 = smov [#allocation3]  }
   0x8   :  { %11 = dma.hbm_to_smem %s4026_s0, 16, %s2683_s25, [#allocation2] }
   0x9   :  { %2673 = dma.done.wait [#allocation2], 16 }
   0xa   :  { %2674 = vsyncadd [#allocation2], 4294967280 }
   0xb   :  { %13 = sfence }
   0xc   :  { %14 = vsyncpa [#allocation5], 0 }
   0xd   :  { %15 = vsyncpa [#allocation8], 0 }
   0xe   :  { %16 = vsyncpa [#allocation11], 0 }
   0xf   :  { %17 = vsyncpa [#allocation6], 0  ;;  %s2684_s28 = smov [#allocation7]   ;;  %s2563_s7 = scalar_lea.hbm %s4028_s2, 256 }
  0x10   :  { %s35_s29 = sshll.u32 %s2684_s28, 4  ;;  %p2564_p3 = scmp.ne.s32.totalorder %s4028_s2, %s2563_s7  ;;  %s36_s29 = int_to_ptr.vmem [resolvable:$true] %s35_s29 }
  0x11   :  { %p2567_p4 = scmp.lt.u32.totalorder %s2563_s7, %s4028_s2 }
  0x13   :  { %p2569_p5 = pnand %p2567_p4, %p2564_p3 }
  0x15   :  { %2572 = shalt.err (!%p2569_p5)
}
  0x16   :  { %s2573_s11 = scalar_lea.vmem %s36_s29, 256  ;;  %p2578_p7 = scmp.lt.s32.totalorder %s36_s29, %s36_s29 }
  0x17   :  { %p2574_p6 = scmp.ne.s32.totalorder %s36_s29, %s2573_s11  ;;  %p2579_p8 = scmp.lt.s32.totalorder %s2573_s11, %s2573_s11 }
  0x19   :  { %p2580_p9 = por %p2579_p8, %p2578_p7 }
  0x1b   :  { %p2581_p10 = pnand %p2580_p9, %p2574_p6 }
  0x1d   :  { %2584 = shalt.err (!%p2581_p10)
}
  0x1e   :  { %s2685_s12 = smov 128   ;;  %s2686_s13 = smov 8  }
  0x1f   :  { %41 = dma.hbm_to_vmem [thread:$0]  %s4028_s2, 256, %s36_s29, [#allocation8], %s2685_s12, %s2685_s12, %s2686_s13  }
  0x20   :  { %s2687_s16 = smov [#allocation4]   ;;  %s2585_s20 = scalar_lea.hbm %s4027_s1, 2048 }
  0x21   :  { %s23_s17 = sshll.u32 %s2687_s16, 4  ;;  %p2586_p11 = scmp.ne.s32.totalorder %s4027_s1, %s2585_s20  ;;  %s24_s17 = int_to_ptr.vmem [resolvable:$true] %s23_s17 }
  0x22   :  { %p2589_p12 = scmp.lt.u32.totalorder %s2585_s20, %s4027_s1 }
  0x24   :  { %p2591_p13 = pnand %p2589_p12, %p2586_p11 }
  0x26   :  { %2594 = shalt.err (!%p2591_p13)
}
  0x27   :  { %s2595_s25 = scalar_lea.vmem %s24_s17, 2048  ;;  %p2600_p1 = scmp.lt.s32.totalorder %s24_s17, %s24_s17 }
  0x28   :  { %p2596_p0 = scmp.ne.s32.totalorder %s24_s17, %s2595_s25  ;;  %p2601_p2 = scmp.lt.s32.totalorder %s2595_s25, %s2595_s25 }
  0x2a   :  { %p2602_p3 = por %p2601_p2, %p2600_p1 }
  0x2c   :  { %p2603_p4 = pnand %p2602_p3, %p2596_p0 }
  0x2e   :  { %2606 = shalt.err (!%p2603_p4)
}
  0x2f   :  { %s2688_s2 = smov 256   ;;  %s2689_s26 = smov 16  }
  0x30   :  { %29 = dma.hbm_to_vmem [thread:$0]  %s4027_s1, 2048, %s24_s17, [#allocation5], %s2688_s2, %s2688_s2, %s2689_s26  }
  0x31   :  { %s2690_s29 = smov [#allocation9]   ;;  %s2691_s6 = smov [#allocation10]  }
  0x32   :  { %s48_s30 = sshll.u32 %s2690_s29, 4  ;;  %s58_s7 = sshll.u32 %s2691_s6, 4  ;;  %s49_s30 = int_to_ptr.vmem [resolvable:$true] %s48_s30  ;;  %s59_s7 = int_to_ptr.vmem [resolvable:$true] %s58_s7 }
  0x33   :  { %s2607_s10 = scalar_lea.hbm %s4029_s3, 64 }
  0x34   :  { %p2608_p5 = scmp.ne.s32.totalorder %s4029_s3, %s2607_s10  ;;  %p2611_p6 = scmp.lt.u32.totalorder %s2607_s10, %s4029_s3 }
  0x36   :  { %p2613_p7 = pnand %p2611_p6, %p2608_p5 }
  0x38   :  { %2616 = shalt.err (!%p2613_p7)
}
  0x39   :  { %s2617_s1 = scalar_lea.vmem %s49_s30, 64  ;;  %p2622_p9 = scmp.lt.s32.totalorder %s49_s30, %s49_s30 }
  0x3a   :  { %p2618_p8 = scmp.ne.s32.totalorder %s49_s30, %s2617_s1  ;;  %p2623_p10 = scmp.lt.s32.totalorder %s2617_s1, %s2617_s1 }
  0x3c   :  { %p2624_p11 = por %p2623_p10, %p2622_p9 }
  0x3e   :  { %p2625_p12 = pnand %p2624_p11, %p2618_p8 }
  0x40   :  { %2628 = shalt.err (!%p2625_p12)
}
  0x41   :  { %51 = dma.hbm_to_vmem [thread:$0]  %s4029_s3, 64, %s49_s30, [#allocation8]  }
  0x42   :  { %s2629_s18 = scalar_lea.hbm %s4030_s4, 256 }
  0x43   :  { %p2630_p13 = scmp.ne.s32.totalorder %s4030_s4, %s2629_s18  ;;  %p2633_p0 = scmp.lt.u32.totalorder %s2629_s18, %s4030_s4 }
  0x45   :  { %p2635_p1 = pnand %p2633_p0, %p2630_p13 }
  0x47   :  { %2638 = shalt.err (!%p2635_p1)
}
  0x48   :  { %s2639_s23 = scalar_lea.vmem %s59_s7, 256  ;;  %p2644_p3 = scmp.lt.s32.totalorder %s59_s7, %s59_s7 }
  0x49   :  { %p2640_p2 = scmp.ne.s32.totalorder %s59_s7, %s2639_s23  ;;  %p2645_p4 = scmp.lt.s32.totalorder %s2639_s23, %s2639_s23 }
  0x4b   :  { %p2646_p5 = por %p2645_p4, %p2644_p3 }
  0x4d   :  { %p2647_p6 = pnand %p2646_p5, %p2640_p2 }
  0x4f   :  { %2650 = shalt.err (!%p2647_p6)
}
  0x50   :  { %61 = dma.hbm_to_vmem [thread:$0]  %s4030_s4, 256, %s59_s7, [#allocation11]  }
  0x51   :  { %2675 = dma.done.wait [#allocation5], 2048  }
  0x52   :  { %2676 = vsyncadd [#allocation5], 4294965248 }
  0x53   :  { %2677 = dma.done.wait [#allocation8], 320  }
  0x54   :  { %2678 = vsyncadd [#allocation8], 4294966976 }
  0x55   :  { %2679 = dma.done.wait [#allocation11], 256  }
  0x56   :  { %2680 = vsyncadd [#allocation11], 4294967040  ;;  %v2809_v0 = vld [vmem:[#allocation4 + $0x20] sm:$0xff]  ;;  %v2811_v1 = vld [vmem:[#allocation4 + $0x28] sm:$0xff]  ;;  %v2692_v35 = vmov 0.0|0.0   ;;  %vm2693_vm0 = vmmov 0   ;;  %v155_v43 = vlaneseq }
  0x57   :  { %v2813_v2 = vld [vmem:[#allocation4] sm:$0xff]  ;;  %v96_v3 = vadd.f32 %v2811_v1, %v2809_v0  ;;  %v2817_v4 = vld [vmem:[#allocation4 + $0x8] sm:$0xff]  ;;  %v2819_v5 = vld [vmem:[#allocation4 + $0x30] sm:$0xff]  ;;  %v129_v27 = vmax.f32 %v2809_v0, %v2811_v1  ;;  %2503 = vmatprep.subr.bf16.mxu0 %v2692_v35  ;;  %v2694_v36 = vmov 0.0   ;;  %vm166_vm1 = vcmask 130112   ;;  %s2695_s4 = smov 1  }
  0x58   :  { %v2821_v6 = vld [vmem:[#allocation4 + $0x38] sm:$0xff]  ;;  %v90_v7 = vadd.f32 %v2817_v4, %v2813_v2  ;;  %v2825_v8 = vld [vmem:[#allocation4 + $0x10] sm:$0xff]  ;;  %v2837_v14 = vld [vmem:[#allocation4 + $0x40] sm:$0xff]  ;;  %v123_v25 = vmax.f32 %v2813_v2, %v2817_v4  ;;  %2495 = vmatprep.mubr.msk.f32.mxu0 %vm2693_vm0, %v2694_v36  ;;  %2498 = vmatprep.subr.mxu1 %v2694_v36  ;;  %v156_v46 = vand.u32 127, %v155_v43  ;;  %v2873_v47 = vshrl.u32 %v155_v43, 7  ;;  %s2696_s25 = smov 2  }
  0x59   :  { %v2827_v9 = vld [vmem:[#allocation4 + $0x18] sm:$0xff]  ;;  %97 = vadd.xlane.f32.xlu1 %v96_v3  ;;  %v99_v10 = vadd.f32 %v2821_v6, %v2819_v5  ;;  %v2833_v12 = vld [vmem:[#allocation4 + $0x50] sm:$0xff]  ;;  %v2839_v15 = vld [vmem:[#allocation4 + $0x48] sm:$0xff]  ;;  %v132_v26 = vmax.f32 %v2819_v5, %v2821_v6  ;;  %2500 = vmatprep.mubr.msk.f32.mxu1 %vm2693_vm0, %v2694_v36  ;;  %vm195_vm2 = vcmask 1041409   ;;  %vm197_vm3 = vcmask 1042434   ;;  %s2697_s27 = smov 3  }
  0x5a   :  { %91 = vadd.xlane.f32.xlu0 %v90_v7  ;;  %v93_v11 = vadd.f32 %v2827_v9, %v2825_v8  ;;  %v2835_v13 = vld [vmem:[#allocation4 + $0x58] sm:$0xff]  ;;  %v102_v17 = vadd.f32 %v2839_v15, %v2837_v14  ;;  %v2845_v18 = vld [vmem:[#allocation4 + $0x70] sm:$0xff]  ;;  %v2849_v20 = vld [vmem:[#allocation4 + $0x60] sm:$0xff]  ;;  %v126_v24 = vmax.f32 %v2825_v8, %v2827_v9  ;;  %v135_v29 = vmax.f32 %v2837_v14, %v2839_v15  ;;  %s2698_s28 = smov 4   ;;  %s2699_s29 = smov 5  }
  0x5b   :  { %v105_v16 = vadd.f32 %v2835_v13, %v2833_v12  ;;  %v2847_v19 = vld [vmem:[#allocation4 + $0x78] sm:$0xff]  ;;  %v2851_v21 = vld [vmem:[#allocation4 + $0x68] sm:$0xff]  ;;  %v138_v28 = vmax.f32 %v2833_v12, %v2835_v13  ;;  %v255_v32 = vld [vmem:[#allocation7] sm:$0xff]  ;;  %4068 = vst [vmem:[#allocation18_spill] sm:$0xff] %v2873_v47  ;;  %v161_v48 = vadd.s32 4294967288, %v156_v46  ;;  %v159_v51 = vsub.s32 %v156_v46, %v2873_v47  ;;  %s2700_s30 = smov 51  }
  0x5c   :  { %v111_v22 = vadd.f32 %v2847_v19, %v2845_v18  ;;  %v108_v23 = vadd.f32 %v2851_v21, %v2849_v20  ;;  %v144_v30 = vmax.f32 %v2845_v18, %v2847_v19  ;;  %v141_v31 = vmax.f32 %v2849_v20, %v2851_v21  ;;  %v256_v33 = vld [vmem:[#allocation7 + $0x8] sm:$0xff]  ;;  %s2388_s6 = sld [smem:[#allocation3 + $0x7]]  ;;  %s2389_s7 = sld [smem:[#allocation3 + $0x38]] }
  0x5d   :  { %100 = vadd.xlane.f32.xlu1 %v99_v10  ;;  %v2504_v34 = vpack.c.bf16 %v256_v33, %v255_v32  ;;  %v164_v54 = vsub.s32 %v161_v48, %v2873_v47  ;;  %vm199_vm4 = vcmask 1043459   ;;  %vm246_vm5 = vcmask 1045509   ;;  %s2390_s8 = sld [smem:[#allocation3 + $0xe]]  ;;  %s2391_s9 = sld [smem:[#allocation3 + $0x3f]] }
  0x5e   :  { %94 = vadd.xlane.f32.xlu0 %v93_v11  ;;  %vm248_vm6 = vcmask 1046534   ;;  %vm250_vm7 = vcmask 1047559   ;;  %vm253_vm8 = vcmask 1043456   ;;  %vm257_vm9 = vcmask 130048   ;;  %s2392_s10 = sld [smem:[#allocation3 + $0x15]]  ;;  %s2393_s0 = sld [smem:[#allocation3 + $0x46]] }
  0x5f   :  { %2505 = vmatpush3.bf16.msra.mxu0 %v2504_v34  ;;  %vm337_vm10 = vcmask 31744   ;;  %vm619_vm11 = vcmask 416768   ;;  %s2394_s11 = sld [smem:[#allocation3 + $0x1c]]  ;;  %s2701_s12 = smov 112   ;;  %vm686_vm12 = vcmask 916480   ;;  %vm715_vm13 = vcmask 785408  }
  0x60   :  { %s2395_s13 = sld [smem:[#allocation3 + $0x4d]]  ;;  %s2702_s1 = smov 96   ;;  %vm744_vm14 = vcmask 654336   ;;  %vm773_vm15 = vcmask 523264   ;;  %vm802_vm0 = vcmask 392192  }
  0x61   :  { %106 = vadd.xlane.f32.xlu1 %v105_v16  ;;  %s2396_s14 = sld [smem:[#allocation3 + $0x23]]  ;;  %s2397_s15 = sld [smem:[#allocation3 + $0x54]] }
  0x62   :  { %103 = vadd.xlane.f32.xlu0 %v102_v17  ;;  %s2398_s16 = sld [smem:[#allocation3 + $0x2a]]  ;;  %s2703_s17 = smov 80  }
  0x63   :  { %s2399_s18 = sld [smem:[#allocation3 + $0x5b]]  ;;  %s2704_s19 = smov 64  }
  0x64   :  { %s2402_s20 = sld [smem:[#allocation3 + $0x8]]  ;;  %s2403_s21 = sld [smem:[#allocation3 + $0x39]] }
  0x65   :  { %112 = vadd.xlane.f32.xlu1 %v111_v22  ;;  %s2404_s22 = sld [smem:[#allocation3 + $0xf]]  ;;  %s2705_s23 = smov 48  }
  0x66   :  { %109 = vadd.xlane.f32.xlu0 %v108_v23  ;;  %s2405_s3 = sld [smem:[#allocation3 + $0x40]]  ;;  %s2706_s24 = smov 32  }
  0x69   :  { %127 = vmax.xlane.f32.xlu1 %v126_v24 }
  0x6a   :  { %124 = vmax.xlane.f32.xlu0 %v123_v25 }
  0x6d   :  { %133 = vmax.xlane.f32.xlu1 %v132_v26 }
  0x6e   :  { %130 = vmax.xlane.f32.xlu0 %v129_v27 }
  0x71   :  { %139 = vmax.xlane.f32.xlu1 %v138_v28 }
  0x72   :  { %136 = vmax.xlane.f32.xlu0 %v135_v29 }
  0x75   :  { %145 = vmax.xlane.f32.xlu1 %v144_v30 }
  0x76   :  { %142 = vmax.xlane.f32.xlu0 %v141_v31 }
  0xe6   :  { %v98_v37 = vpop.xlane.xlu1 %97 }
  0xe7   :  { %v92_v38 = vpop.xlane.xlu0 %91  ;;  %v117_v52 = vmul.f32 0.00390625, %v98_v37 }
  0xe8   :  { %v115_v53 = vmul.f32 0.00390625, %v92_v38 }
  0xe9   :  { %v171_v63 = vrot.slane %v117_v52, %v159_v51  ;;  %v336_v52 = vld [vmem:[#allocation9] sm:$0xf] }
  0xea   :  { %v101_v39 = vpop.xlane.xlu1 %100  ;;  %v160_v3 = vrot.slane %v115_v53, %v159_v51  ;;  %2499 = vmatpush3.msk.msra.mxu1 %vm253_vm8, %v336_v52 }
  0xeb   :  { %v95_v40 = vpop.xlane.xlu0 %94  ;;  %v118_v55 = vmul.f32 0.00390625, %v101_v39 }
  0xec   :  { %v116_v56 = vmul.f32 0.00390625, %v95_v40 }
  0xed   :  { %v175_v7 = vrot.slane %v118_v55, %v164_v54 }
  0xee   :  { %v107_v41 = vpop.xlane.xlu1 %106  ;;  %v165_v10 = vrot.slane %v116_v56, %v164_v54 }
  0xef   :  { %v104_v42 = vpop.xlane.xlu0 %103  ;;  %v120_v58 = vmul.f32 0.00390625, %v107_v41  ;;  %v176_v31 = vsel %vm166_vm1, %v175_v7, %v171_v63  ;;  %v455_v7 = vsub.s32 3, %v2873_v47 }
  0xf0   :  { %v119_v59 = vmul.f32 0.00390625, %v104_v42  ;;  %v167_v32 = vsel %vm166_vm1, %v165_v10, %v160_v3 }
  0xf1   :  { %v184_v22 = vrot.slane %v120_v58, %v164_v54  ;;  %v196_v43 = vsel %vm195_vm2, %v176_v31, %v167_v32  ;;  %v651_v58 = vld [vmem:[#allocation10 + $0x8] sm:$0x7f]  ;;  %v2899_v31 = vsub.s32 0, %v2873_v47 }
  0xf2   :  { %v113_v44 = vpop.xlane.xlu1 %112  ;;  %v180_v23 = vrot.slane %v119_v59, %v159_v51  ;;  %v650_v59 = vld [vmem:[#allocation10] sm:$0x7f]  ;;  %v1521_v10 = vrot.slane %v651_v58, %v455_v7 }
  0xf3   :  { %v110_v45 = vpop.xlane.xlu0 %109  ;;  %v122_v60 = vmul.f32 0.00390625, %v113_v44  ;;  %4070 = vst [vmem:[#allocation20_spill] sm:$0xff] %v2899_v31 }
  0xf4   :  { %v121_v62 = vmul.f32 0.00390625, %v110_v45  ;;  %v185_v35 = vsel %vm166_vm1, %v184_v22, %v180_v23 }
  0xf5   :  { %v193_v24 = vrot.slane %v122_v60, %v164_v54  ;;  %v198_v45 = vsel %vm197_vm3, %v185_v35, %v196_v43 }
  0xf6   :  { %v128_v49 = vpop.xlane.xlu1 %127  ;;  %v189_v27 = vrot.slane %v121_v62, %v159_v51  ;;  %v444_v62 = vsub.s32 2, %v2873_v47 }
  0xf7   :  { %v125_v50 = vpop.xlane.xlu0 %124  ;;  %v217_v28 = vrot.slane %v128_v49, %v164_v54 }
  0xf8   :  { %v213_v29 = vrot.slane %v125_v50, %v159_v51  ;;  %v194_v41 = vsel %vm166_vm1, %v193_v24, %v189_v27  ;;  %v1283_v63 = vrot.slane %v650_v59, %v444_v62  ;;  %v1287_v3 = vrot.slane %v651_v58, %v444_v62 }
  0xf9   :  { %v200_v48 = vsel %vm199_vm4, %v194_v41, %v198_v45 }
  0xfa   :  { %v134_v57 = vpop.xlane.xlu1 %133  ;;  %v218_v39 = vsel %vm166_vm1, %v217_v28, %v213_v29 }
  0xfb   :  { %v131_v61 = vpop.xlane.xlu0 %130  ;;  %v226_v11 = vrot.slane %v134_v57, %v164_v54  ;;  %v2890_v57 = vsub.s32 1, %v2873_v47 }
  0xfc   :  { %v222_v16 = vrot.slane %v131_v61, %v159_v51 }
  0xfd   :  { %4069 = vst [vmem:[#allocation19_spill] sm:$0xff] %v2890_v57  ;;  %v1053_v60 = vrot.slane %v651_v58, %v2890_v57  ;;  %v1049_v61 = vrot.slane %v650_v59, %v2890_v57 }
  0xfe   :  { %v140_v17 = vpop.xlane.xlu1 %139  ;;  %v227_v33 = vsel %vm166_vm1, %v226_v11, %v222_v16  ;;  %v1517_v11 = vrot.slane %v650_v59, %v455_v7  ;;  %v1750_v16 = vsub.s32 4, %v2873_v47 }
  0xff   :  { %v235_v25 = vrot.slane %v140_v17, %v164_v54  ;;  %v137_v26 = vpop.xlane.xlu0 %136  ;;  %v247_v42 = vsel %vm246_vm5, %v227_v33, %v218_v39  ;;  %1058 = vrot.lane.b32.xlu1 %v1053_v60, %s2695_s4  ;;  %1056 = vrot.lane.b32.xlu0 %v1049_v61, %s2695_s4  ;;  %v1983_v17 = vsub.s32 5, %v2873_v47  ;;  %s2406_s4 = sld [smem:[#allocation3 + $0x16]]  ;;  %vm1294_vm5 = vcmask 15360  }
 0x100   :  { %v231_v30 = vrot.slane %v137_v26, %v159_v51  ;;  %v1751_v22 = vrot.slane %v650_v59, %v1750_v16  ;;  %v1755_v23 = vrot.slane %v651_v58, %v1750_v16 }
 0x101   :  { %v1984_v24 = vrot.slane %v650_v59, %v1983_v17 }
 0x102   :  { %v146_v34 = vpop.xlane.xlu1 %145  ;;  %v236_v36 = vsel %vm166_vm1, %v235_v25, %v231_v30  ;;  %v1988_v25 = vrot.slane %v651_v58, %v1983_v17 }
 0x103   :  { %v244_v37 = vrot.slane %v146_v34, %v164_v54  ;;  %v143_v38 = vpop.xlane.xlu0 %142  ;;  %v249_v46 = vsel %vm248_vm6, %v236_v36, %v247_v42  ;;  %1290 = vrot.lane.b32.xlu1 %v1283_v63, %s2696_s25  ;;  %1292 = vrot.lane.b32.xlu0 %v1287_v3, %s2696_s25  ;;  %s2407_s25 = sld [smem:[#allocation3 + $0x47]]  ;;  %vm2229_vm6 = vcmask 48128  }
 0x104   :  { %v240_v40 = vrot.slane %v143_v38, %v159_v51 }
 0x106   :  { %v245_v44 = vsel %vm166_vm1, %v244_v37, %v240_v40  ;;  %vm831_vm1 = vcmask 261120  }
 0x107   :  { %v251_v49 = vsel %vm250_vm7, %v245_v44, %v249_v46  ;;  %1526 = vrot.lane.b32.xlu1 %v1521_v10, %s2697_s27  ;;  %1524 = vrot.lane.b32.xlu0 %v1517_v11, %s2697_s27  ;;  %s2408_s27 = sld [smem:[#allocation3 + $0x1d]]  ;;  %vm1077_vm7 = vcmask 1039360  }
 0x108   :  { %v254_v50 = vsel %vm253_vm8, %v200_v48, %v251_v49  ;;  %vm1311_vm8 = vcmask 1031168  }
 0x109   :  { %2496 = vmatmul.mubr.msk.f32.vlgmr.msra.gmra.mrb[0].mxu0 %vm257_vm9, %v254_v50  ;;  %vm1545_vm9 = vcmask 1022976  }
 0x10b   :  { %1758 = vrot.lane.b32.xlu1 %v1751_v22, %s2698_s28  ;;  %1760 = vrot.lane.b32.xlu0 %v1755_v23, %s2698_s28  ;;  %s2409_s28 = sld [smem:[#allocation3 + $0x4e]] }
 0x10f   :  { %1991 = vrot.lane.b32.xlu1 %v1984_v24, %s2699_s29  ;;  %1993 = vrot.lane.b32.xlu0 %v1988_v25, %s2699_s29  ;;  %s2400_s29 = sld [smem:[#allocation3 + $0x1]] }
 0x171   :  { %v2903_v37 = vpop.permute.xlu1 %1058  ;;  %v2905_v38 = vpop.permute.xlu0 %1056 }
 0x172   :  { %4071 = vst [vmem:[#allocation21_spill] sm:$0xff] %v2905_v38 }
 0x175   :  { %v2907_v39 = vpop.permute.xlu1 %1290  ;;  %v2909_v40 = vpop.permute.xlu0 %1292 }
 0x176   :  { %4072 = vst [vmem:[#allocation22_spill] sm:$0xff] %v2907_v39 }
 0x179   :  { %v2911_v41 = vpop.permute.xlu1 %1526  ;;  %v2913_v42 = vpop.permute.xlu0 %1524 }
 0x17a   :  { %4073 = vst [vmem:[#allocation23_spill] sm:$0xff] %v2913_v42 }
 0x17d   :  { %v2915_v43 = vpop.permute.xlu1 %1758  ;;  %v2917_v44 = vpop.permute.xlu0 %1760 }
 0x17e   :  { %4074 = vst [vmem:[#allocation24_spill] sm:$0xff] %v2915_v43  ;;  %4075 = vst [vmem:[#allocation25_spill] sm:$0xff] %v2917_v44 }
 0x181   :  { %v2919_v45 = vpop.permute.xlu1 %1991  ;;  %v2921_v46 = vpop.permute.xlu0 %1993 }
 0x182   :  { %4076 = vst [vmem:[#allocation26_spill] sm:$0xff] %v2919_v45  ;;  %4077 = vst [vmem:[#allocation27_spill] sm:$0xff] %v2921_v46 }
 0x1dc   :  { %v327_v51 = vpop.f32.mrb[0].mxu0 }
 0x1dd   :  { %v331_v53 = vmax.f32 %v327_v51, 0.0  ;;  %v2497_v54 = vpop.f32.mrb[1].mxu0 }
 0x1df   :  { %v333_v55 = vrot.slane %v331_v53, 4 }
 0x1e1   :  { %v335_v56 = vadd.f32 %v333_v55, %v331_v53 }
 0x1e3   :  { %2501 = vmatmul.mubr.msk.f32.vlgmr.msra.gmra.mrb[0].mxu1 %vm337_vm10, %v335_v56 }
 0x2b6   :  { %v410_v26 = vpop.f32.mrb[0].mxu1 }
 0x2b7   :  { %v2386_v27 = vmul.f32 -1.442695, %v410_v26  ;;  %v2502_v28 = vpop.f32.mrb[1].mxu1 }
 0x2b9   :  { %2539 = vpow2.f32 %v2386_v27 }
 0x2c3   :  { %v2540_v29 = vpop.eup %2539 }
 0x2c4   :  { %v417_v30 = vadd.f32 1.0, %v2540_v29 }
 0x2c6   :  { %2541 = vrcp.f32 %v417_v30 }
 0x2d0   :  { %v2542_v32 = vpop.eup %2541 }
 0x2d1   :  { %v423_v33 = vrot.slane %v2542_v32, %v2899_v31  ;;  %v434_v34 = vrot.slane %v2542_v32, %v2890_v57  ;;  %v445_v35 = vrot.slane %v2542_v32, %v444_v62  ;;  %v456_v36 = vrot.slane %v2542_v32, %v455_v7 }
 0x2d3   :  { %429 = vbcast.lane.b32.xlu1 %v423_v33, 264  ;;  %425 = vbcast.lane.b32.xlu0 %v423_v33, 256 }
 0x2d7   :  { %436 = vbcast.lane.b32.xlu1 %v434_v34, 256  ;;  %447 = vbcast.lane.b32.xlu0 %v445_v35, 256 }
 0x2db   :  { %440 = vbcast.lane.b32.xlu1 %v434_v34, 264  ;;  %458 = vbcast.lane.b32.xlu0 %v456_v36, 256 }
 0x2df   :  { %451 = vbcast.lane.b32.xlu1 %v445_v35, 264 }
 0x2e3   :  { %462 = vbcast.lane.b32.xlu1 %v456_v36, 264 }
 0x345   :  { %v430_v48 = vpop.permute.xlu1 %429  ;;  %v426_v49 = vpop.permute.xlu0 %425 }
 0x346   :  { %v2924_v50 = vmul.f32 %v430_v48, %v2825_v8  ;;  %v2927_v52 = vmul.f32 %v430_v48, %v2827_v9  ;;  %v2930_v51 = vmul.f32 %v426_v49, %v2813_v2  ;;  %v2933_v53 = vmul.f32 %v426_v49, %v2817_v4 }
 0x348   :  { %4078 = vst [vmem:[#allocation28_spill] sm:$0xff] %v2924_v50  ;;  %4079 = vst [vmem:[#allocation29_spill] sm:$0xff] %v2927_v52  ;;  %v480_v54 = vadd.f32 %v2924_v50, %v2930_v51  ;;  %v487_v55 = vadd.f32 %v2927_v52, %v2933_v53  ;;  %v545_v56 = vmax.f32 %v2930_v51, %v2924_v50 }
 0x349   :  { %4080 = vst [vmem:[#allocation30_spill] sm:$0xff] %v2930_v51  ;;  %4081 = vst [vmem:[#allocation31_spill] sm:$0xff] %v2933_v53  ;;  %v552_v8 = vmax.f32 %v2933_v53, %v2927_v52  ;;  %v437_v9 = vpop.permute.xlu1 %436  ;;  %v448_v58 = vpop.permute.xlu0 %447 }
 0x34a   :  { %v481_v59 = vrot.slane %v480_v54, 4  ;;  %v488_v2 = vrot.slane %v487_v55, 4  ;;  %v546_v60 = vrot.slane %v545_v56, 4  ;;  %v2944_v16 = vmul.f32 %v437_v9, %v2809_v0 }
 0x34b   :  { %v553_v61 = vrot.slane %v552_v8, 4  ;;  %v2947_v17 = vmul.f32 %v437_v9, %v2811_v1  ;;  %v2950_v22 = vmul.f32 %v448_v58, %v2837_v14  ;;  %v2953_v23 = vmul.f32 %v448_v58, %v2839_v15 }
 0x34c   :  { %v482_v4 = vadd.f32 %v481_v59, %v480_v54  ;;  %v489_v62 = vadd.f32 %v488_v2, %v487_v55  ;;  %v547_v63 = vmax.f32 %v545_v56, %v546_v60  ;;  %4082 = vst [vmem:[#allocation32_spill] sm:$0xff] %v2944_v16 }
 0x34d   :  { %v554_v3 = vmax.f32 %v552_v8, %v553_v61  ;;  %v441_v7 = vpop.permute.xlu1 %440  ;;  %v459_v10 = vpop.permute.xlu0 %458  ;;  %4083 = vst [vmem:[#allocation33_spill] sm:$0xff] %v2947_v17  ;;  %4084 = vst [vmem:[#allocation34_spill] sm:$0xff] %v2950_v22 }
 0x34e   :  { %v548_v11 = vrot.slane %v547_v63, 2  ;;  %4085 = vst [vmem:[#allocation35_spill] sm:$0xff] %v2953_v23  ;;  %v2956_v24 = vmul.f32 %v441_v7, %v2819_v5  ;;  %v2959_v25 = vmul.f32 %v441_v7, %v2821_v6  ;;  %v483_v26 = vrot.slane %v482_v4, 2 }
 0x34f   :  { %v490_v27 = vrot.slane %v489_v62, 2  ;;  %v555_v28 = vrot.slane %v554_v3, 2  ;;  %v2962_v0 = vmul.f32 %v459_v10, %v2849_v20  ;;  %v2973_v30 = vmul.f32 %v459_v10, %v2851_v21 }
 0x350   :  { %4086 = vst [vmem:[#allocation36_spill] sm:$0xff] %v2956_v24  ;;  %4087 = vst [vmem:[#allocation37_spill] sm:$0xff] %v2959_v25  ;;  %v494_v1 = vadd.f32 %v2956_v24, %v2944_v16  ;;  %v501_v14 = vadd.f32 %v2959_v25, %v2947_v17  ;;  %v559_v15 = vmax.f32 %v2944_v16, %v2956_v24 }
 0x351   :  { %4088 = vst [vmem:[#allocation38_spill] sm:$0xff] %v2962_v0  ;;  %v566_v5 = vmax.f32 %v2947_v17, %v2959_v25  ;;  %v452_v6 = vpop.permute.xlu1 %451  ;;  %v549_v29 = vmax.f32 %v547_v63, %v548_v11  ;;  %4089 = vst [vmem:[#allocation39_spill] sm:$0xff] %v2973_v30  ;;  %v556_v54 = vmax.f32 %v554_v3, %v555_v28 }
 0x352   :  { %v2976_v20 = vmul.f32 %v452_v6, %v2833_v12  ;;  %v2979_v32 = vmul.f32 %v452_v6, %v2835_v13  ;;  %v495_v33 = vrot.slane %v494_v1, 4  ;;  %v502_v34 = vrot.slane %v501_v14, 4 }
 0x353   :  { %v560_v35 = vrot.slane %v559_v15, 4  ;;  %v567_v36 = vrot.slane %v566_v5, 4  ;;  %v2989_v2 = vadd.f32 %v483_v26, %v482_v4  ;;  %v491_v7 = vadd.f32 %v490_v27, %v489_v62 }
 0x354   :  { %4090 = vst [vmem:[#allocation40_spill] sm:$0xff] %v2976_v20  ;;  %4091 = vst [vmem:[#allocation41_spill] sm:$0xff] %v2979_v32  ;;  %v508_v48 = vadd.f32 %v2976_v20, %v2950_v22  ;;  %v515_v49 = vadd.f32 %v2979_v32, %v2953_v23  ;;  %v573_v21 = vmax.f32 %v2950_v22, %v2976_v20  ;;  %v557_v3 = vrot.slane %v556_v54, 1 }
 0x355   :  { %v580_v12 = vmax.f32 %v2953_v23, %v2979_v32  ;;  %v496_v55 = vadd.f32 %v495_v33, %v494_v1  ;;  %v561_v13 = vmax.f32 %v559_v15, %v560_v35  ;;  %v568_v56 = vmax.f32 %v566_v5, %v567_v36  ;;  %v463_v20 = vpop.permute.xlu1 %462 }
 0x356   :  { %v503_v8 = vadd.f32 %v502_v34, %v501_v14  ;;  %v509_v9 = vrot.slane %v508_v48, 4  ;;  %v574_v58 = vrot.slane %v573_v21, 4  ;;  %v516_v63 = vrot.slane %v515_v49, 4 }
 0x357   :  { %v581_v59 = vrot.slane %v580_v12, 4  ;;  %v562_v60 = vrot.slane %v561_v13, 2  ;;  %v569_v61 = vrot.slane %v568_v56, 2  ;;  %v497_v10 = vrot.slane %v496_v55, 2 }
 0x358   :  { %v575_v11 = vmax.f32 %v573_v21, %v574_v58  ;;  %v550_v28 = vrot.slane %v549_v29, 1  ;;  %v504_v1 = vrot.slane %v503_v8, 2  ;;  %v510_v15 = vadd.f32 %v509_v9, %v508_v48 }
 0x359   :  { %v582_v6 = vmax.f32 %v580_v12, %v581_v59  ;;  %v563_v22 = vmax.f32 %v561_v13, %v562_v60  ;;  %v570_v32 = vmax.f32 %v568_v56, %v569_v61  ;;  %v517_v33 = vadd.f32 %v516_v63, %v515_v49 }
 0x35a   :  { %v576_v14 = vrot.slane %v575_v11, 2  ;;  %v2992_v4 = vmul.f32 %v463_v20, %v2845_v18  ;;  %v2995_v26 = vmul.f32 %v463_v20, %v2847_v19  ;;  %v498_v27 = vadd.f32 %v497_v10, %v496_v55 }
 0x35b   :  { %v583_v5 = vrot.slane %v582_v6, 2  ;;  %v571_v62 = vrot.slane %v570_v32, 1  ;;  %v564_v35 = vrot.slane %v563_v22, 1  ;;  %v505_v12 = vadd.f32 %v504_v1, %v503_v8 }
 0x35c   :  { %4092 = vst [vmem:[#allocation42_spill] sm:$0xff] %v2992_v4  ;;  %4093 = vst [vmem:[#allocation43_spill] sm:$0xff] %v2995_v26  ;;  %v577_v36 = vmax.f32 %v575_v11, %v576_v14  ;;  %v522_v21 = vadd.f32 %v2992_v4, %v2962_v0  ;;  %v529_v48 = vadd.f32 %v2995_v26, %v2973_v30  ;;  %v511_v19 = vrot.slane %v510_v15, 2 }
 0x35d   :  { %v584_v34 = vmax.f32 %v582_v6, %v583_v5  ;;  %v587_v49 = vmax.f32 %v2962_v0, %v2992_v4  ;;  %v594_v18 = vmax.f32 %v2973_v30, %v2995_v26  ;;  %v572_v20 = vmax.f32 %v570_v32, %v571_v62 }
 0x35e   :  { %v518_v55 = vrot.slane %v517_v33, 2  ;;  %v530_v56 = vrot.slane %v529_v48, 4  ;;  %v523_v59 = vrot.slane %v522_v21, 4  ;;  %v558_v60 = vmax.f32 %v556_v54, %v557_v3 }
 0x35f   :  { %v585_v13 = vrot.slane %v584_v34, 1  ;;  %v588_v9 = vrot.slane %v587_v49, 4  ;;  %v595_v58 = vrot.slane %v594_v18, 4  ;;  %v551_v61 = vmax.f32 %v549_v29, %v550_v28 }
 0x360   :  { %v578_v63 = vrot.slane %v577_v36, 1  ;;  %v531_v10 = vadd.f32 %v530_v56, %v529_v48  ;;  %v565_v14 = vmax.f32 %v563_v22, %v564_v35  ;;  %v637_v4 = vsel %vm195_vm2, %v572_v20, %v558_v60 }
 0x361   :  { %v589_v11 = vmax.f32 %v587_v49, %v588_v9  ;;  %v596_v6 = vmax.f32 %v594_v18, %v595_v58  ;;  %v586_v5 = vmax.f32 %v584_v34, %v585_v13  ;;  %v492_v26 = vrot.slane %v491_v7, 1 }
 0x362   :  { %v506_v8 = vrot.slane %v505_v12, 1  ;;  %v519_v62 = vadd.f32 %v518_v55, %v517_v33  ;;  %v532_v30 = vrot.slane %v531_v10, 2  ;;  %v524_v0 = vadd.f32 %v523_v59, %v522_v21 }
 0x363   :  { %v597_v1 = vrot.slane %v596_v6, 2  ;;  %v590_v32 = vrot.slane %v589_v11, 2  ;;  %v579_v23 = vmax.f32 %v577_v36, %v578_v63  ;;  %v499_v24 = vrot.slane %v498_v27, 1 }
 0x364   :  { %v507_v25 = vadd.f32 %v506_v8, %v505_v12  ;;  %v520_v3 = vrot.slane %v519_v62, 1  ;;  %v533_v28 = vadd.f32 %v532_v30, %v531_v10  ;;  %v638_v48 = vsel %vm197_vm3, %v586_v5, %v637_v4 }
 0x365   :  { %v598_v54 = vmax.f32 %v596_v6, %v597_v1  ;;  %v591_v29 = vmax.f32 %v589_v11, %v590_v32  ;;  %v634_v22 = vsel %vm195_vm2, %v565_v14, %v551_v61  ;;  %v493_v34 = vadd.f32 %v492_v26, %v491_v7 }
 0x366   :  { %v485_v35 = vrot.slane %v2989_v2, 1  ;;  %v521_v20 = vadd.f32 %v520_v3, %v519_v62  ;;  %v534_v33 = vrot.slane %v533_v28, 1  ;;  %v635_v21 = vsel %vm197_vm3, %v579_v23, %v634_v22 }
 0x367   :  { %v599_v49 = vrot.slane %v598_v54, 1  ;;  %v592_v18 = vrot.slane %v591_v29, 1  ;;  %v500_v36 = vadd.f32 %v499_v24, %v498_v27  ;;  %v512_v12 = vadd.f32 %v511_v19, %v510_v15 }
 0x368   :  { %v525_v13 = vrot.slane %v524_v0, 2  ;;  %v535_v9 = vadd.f32 %v534_v33, %v533_v28  ;;  %v540_v30 = vmul.f32 0.0625, %v507_v25  ;;  %v542_v58 = vmul.f32 0.0625, %v521_v20 }
 0x369   :  { %v600_v55 = vmax.f32 %v598_v54, %v599_v49  ;;  %v593_v56 = vmax.f32 %v591_v29, %v592_v18  ;;  %v486_v4 = vadd.f32 %v485_v35, %v2989_v2  ;;  %v513_v59 = vrot.slane %v512_v12, 1 }
 0x36a   :  { %v526_v7 = vadd.f32 %v525_v13, %v524_v0  ;;  %v538_v61 = vmul.f32 0.0625, %v493_v34  ;;  %v544_v63 = vmul.f32 0.0625, %v535_v9  ;;  %v539_v15 = vmul.f32 0.0625, %v500_v36 }
 0x36b   :  { %v639_v26 = vsel %vm199_vm4, %v600_v55, %v638_v48  ;;  %v636_v60 = vsel %vm199_vm4, %v593_v56, %v635_v21  ;;  %v514_v23 = vadd.f32 %v513_v59, %v512_v12  ;;  %v537_v2 = vmul.f32 0.0625, %v486_v4 }
 0x36c   :  { %642 = vrot.lane.b32.xlu1 %v639_v26, %s2700_s30  ;;  %640 = vrot.lane.b32.xlu0 %v636_v60, %s2700_s30  ;;  %v527_v24 = vrot.slane %v526_v7, 1  ;;  %v612_v27 = vsel %vm195_vm2, %v540_v30, %v538_v61  ;;  %v666_v29 = vstv %s2388_s6  ;;  %v670_v3 = vstv %s2389_s7  ;;  %s2410_s6 = sld [smem:[#allocation3 + $0x24]]  ;;  %s2411_s7 = sld [smem:[#allocation3 + $0x55]] }
 0x36d   :  { %v613_v25 = vsel %vm197_vm3, %v542_v58, %v612_v27  ;;  %v541_v10 = vmul.f32 0.0625, %v514_v23  ;;  %v609_v6 = vsel %vm195_vm2, %v539_v15, %v537_v2  ;;  %v695_v35 = vstv %s2390_s8  ;;  %s2412_s8 = sld [smem:[#allocation3 + $0x2b]] }
 0x36e   :  { %v528_v19 = vadd.f32 %v527_v24, %v526_v7  ;;  %v614_v0 = vsel %vm199_vm4, %v544_v63, %v613_v25  ;;  %v699_v36 = vstv %s2391_s9  ;;  %v724_v26 = vstv %s2392_s10  ;;  %s2413_s9 = sld [smem:[#allocation3 + $0x5c]]  ;;  %s2416_s10 = sld [smem:[#allocation3 + $0x9]] }
 0x36f   :  { %v610_v14 = vsel %vm197_vm3, %v541_v10, %v609_v6  ;;  %v728_v63 = vstv %s2393_s0  ;;  %v753_v25 = vstv %s2394_s11  ;;  %v757_v10 = vstv %s2395_s13  ;;  %s2417_s0 = sld [smem:[#allocation3 + $0x3a]]  ;;  %s2415_s13 = sld [smem:[#allocation3 + $0x33]] }
 0x370   :  { %617 = vrot.lane.b32.xlu1 %v614_v0, %s2700_s30  ;;  %v543_v11 = vmul.f32 0.0625, %v528_v19  ;;  %s2414_s11 = sld [smem:[#allocation3 + $0x2]]  ;;  %vm1060_vm2 = vcmask 7168   ;;  %vm1528_vm3 = vcmask 23552  }
 0x372   :  { %v611_v5 = vsel %vm199_vm4, %v543_v11, %v610_v14  ;;  %vm1995_vm4 = vcmask 39936  }
 0x373   :  { %615 = vrot.lane.b32.xlu0 %v611_v5, %s2700_s30  ;;  %s2401_s30 = sld [smem:[#allocation3 + $0x32]] }
 0x3de   :  { %v643_v8 = vpop.permute.xlu1 %642  ;;  %v641_v1 = vpop.permute.xlu0 %640 }
 0x3df   :  { %v3020_v62 = vsel %vm619_vm11, %v641_v1, %v643_v8  ;;  %v3023_v54 = vsel %vm619_vm11, 0.0, %v641_v1  ;;  %v3039_v21 = vsel %vm619_vm11, %v643_v8, 0.0 }
 0x3e0   :  { %v671_v18 = vmul.f32 %v670_v3, %v3023_v54  ;;  %v672_v33 = vmul.f32 %v670_v3, %v3020_v62  ;;  %v673_v9 = vmul.f32 %v670_v3, %v3039_v21  ;;  %v700_v30 = vmul.f32 %v699_v36, %v3023_v54 }
 0x3e1   :  { %v701_v60 = vmul.f32 %v699_v36, %v3020_v62  ;;  %v702_v61 = vmul.f32 %v699_v36, %v3039_v21  ;;  %v729_v19 = vmul.f32 %v728_v63, %v3023_v54  ;;  %v730_v2 = vmul.f32 %v728_v63, %v3020_v62 }
 0x3e2   :  { %v618_v32 = vpop.permute.xlu1 %617  ;;  %v731_v5 = vmul.f32 %v728_v63, %v3039_v21  ;;  %v758_v8 = vmul.f32 %v757_v10, %v3023_v54 }
 0x3e3   :  { %v3026_v48 = vsel %vm619_vm11, %v618_v32, 0.0 }
 0x3e4   :  { %v669_v55 = vmul.f32 %v666_v29, %v3026_v48  ;;  %v698_v7 = vmul.f32 %v695_v35, %v3026_v48  ;;  %v727_v6 = vmul.f32 %v724_v26, %v3026_v48  ;;  %v756_v3 = vmul.f32 %v753_v25, %v3026_v48 }
 0x3e5   :  { %v616_v28 = vpop.permute.xlu0 %615 }
 0x3e6   :  { %v3029_v22 = vsel %vm619_vm11, %v616_v28, %v618_v32  ;;  %v3032_v34 = vsel %vm619_vm11, 0.0, %v616_v28  ;;  %v676_v58 = vadd.f32 %v673_v9, %v669_v55  ;;  %v705_v24 = vadd.f32 %v702_v61, %v698_v7 }
 0x3e7   :  { %v667_v49 = vmul.f32 %v666_v29, %v3032_v34  ;;  %v668_v20 = vmul.f32 %v666_v29, %v3029_v22  ;;  %v696_v56 = vmul.f32 %v695_v35, %v3032_v34  ;;  %v697_v59 = vmul.f32 %v695_v35, %v3029_v22 }
 0x3e8   :  { %v725_v15 = vmul.f32 %v724_v26, %v3032_v34  ;;  %v726_v27 = vmul.f32 %v724_v26, %v3029_v22  ;;  %v754_v14 = vmul.f32 %v753_v25, %v3032_v34  ;;  %v734_v1 = vadd.f32 %v731_v5, %v727_v6 }
 0x3e9   :  { %v674_v12 = vadd.f32 %v671_v18, %v667_v49  ;;  %v675_v13 = vadd.f32 %v672_v33, %v668_v20  ;;  %v703_v4 = vadd.f32 %v700_v30, %v696_v56  ;;  %v704_v23 = vadd.f32 %v701_v60, %v697_v59 }
 0x3ea   :  { %v732_v0 = vadd.f32 %v729_v19, %v725_v15  ;;  %v733_v11 = vadd.f32 %v730_v2, %v726_v27  ;;  %v761_v32 = vadd.f32 %v758_v8, %v754_v14  ;;  %v755_v29 = vmul.f32 %v753_v25, %v3029_v22 }
 0x3eb   :  { %680 = vrot.lane.b32.xlu0 %v674_v12, %s2701_s12  ;;  %682 = vrot.lane.b32.xlu1 %v675_v13, %s2701_s12  ;;  %v782_v28 = vstv %s2396_s14  ;;  %v759_v35 = vmul.f32 %v757_v10, %v3020_v62  ;;  %v760_v49 = vmul.f32 %v757_v10, %v3039_v21  ;;  %v786_v18 = vstv %s2397_s15  ;;  %s2418_s14 = sld [smem:[#allocation3 + $0x10]]  ;;  %s2419_s15 = sld [smem:[#allocation3 + $0x41]] }
 0x3ec   :  { %v783_v36 = vmul.f32 %v782_v28, %v3032_v34  ;;  %v784_v12 = vmul.f32 %v782_v28, %v3029_v22  ;;  %v811_v13 = vstv %s2398_s16  ;;  %v787_v55 = vmul.f32 %v786_v18, %v3023_v54  ;;  %s2420_s16 = sld [smem:[#allocation3 + $0x17]] }
 0x3ed   :  { %v762_v20 = vadd.f32 %v759_v35, %v755_v29  ;;  %v763_v33 = vadd.f32 %v760_v49, %v756_v3  ;;  %v788_v56 = vmul.f32 %v786_v18, %v3020_v62  ;;  %v815_v9 = vstv %s2399_s18  ;;  %s2421_s18 = sld [smem:[#allocation3 + $0x48]] }
 0x3ee   :  { %v790_v30 = vadd.f32 %v787_v55, %v783_v36  ;;  %v812_v59 = vmul.f32 %v811_v13, %v3032_v34  ;;  %v789_v7 = vmul.f32 %v786_v18, %v3039_v21  ;;  %v816_v26 = vmul.f32 %v815_v9, %v3023_v54 }
 0x3ef   :  { %684 = vrot.lane.b32.xlu0 %v676_v58, %s2701_s12  ;;  %709 = vrot.lane.b32.xlu1 %v703_v4, %s2702_s1  ;;  %v791_v58 = vadd.f32 %v788_v56, %v784_v12  ;;  %v785_v4 = vmul.f32 %v782_v28, %v3026_v48  ;;  %v813_v63 = vmul.f32 %v811_v13, %v3029_v22  ;;  %v872_v25 = vstv %s2403_s21  ;;  %s2423_s21 = sld [smem:[#allocation3 + $0x4f]] }
 0x3f0   :  { %v819_v61 = vadd.f32 %v816_v26, %v812_v59  ;;  %v817_v15 = vmul.f32 %v815_v9, %v3020_v62  ;;  %v818_v27 = vmul.f32 %v815_v9, %v3039_v21  ;;  %v873_v6 = vmul.f32 %v872_v25, %v3023_v54 }
 0x3f1   :  { %v792_v60 = vadd.f32 %v789_v7, %v785_v4  ;;  %v874_v14 = vmul.f32 %v872_v25, %v3020_v62  ;;  %v902_v5 = vstv %s2405_s3  ;;  %v875_v3 = vmul.f32 %v872_v25, %v3039_v21  ;;  %s2425_s3 = sld [smem:[#allocation3 + $0x56]] }
 0x3f2   :  { %v820_v19 = vadd.f32 %v817_v15, %v813_v63  ;;  %v903_v28 = vmul.f32 %v902_v5, %v3023_v54  ;;  %v904_v36 = vmul.f32 %v902_v5, %v3020_v62  ;;  %v905_v12 = vmul.f32 %v902_v5, %v3039_v21 }
 0x3f3   :  { %711 = vrot.lane.b32.xlu0 %v704_v23, %s2702_s1  ;;  %713 = vrot.lane.b32.xlu1 %v705_v24, %s2702_s1  ;;  %v814_v23 = vmul.f32 %v811_v13, %v3026_v48  ;;  %v868_v24 = vstv %s2402_s20  ;;  %v932_v13 = vstv %s2407_s25  ;;  %s2422_s20 = sld [smem:[#allocation3 + $0x1e]]  ;;  %s2427_s25 = sld [smem:[#allocation3 + $0x5d]]  ;;  %vm2012_vm11 = vcmask 1006592  }
 0x3f4   :  { %v869_v10 = vmul.f32 %v868_v24, %v3032_v34  ;;  %v933_v4 = vmul.f32 %v932_v13, %v3023_v54  ;;  %v934_v59 = vmul.f32 %v932_v13, %v3020_v62  ;;  %v962_v7 = vstv %s2409_s28  ;;  %s2431_s28 = sld [smem:[#allocation3 + $0x3b]] }
 0x3f5   :  { %v821_v2 = vadd.f32 %v818_v27, %v814_v23  ;;  %v3115_v23 = vstv %s2400_s29  ;;  %v963_v15 = vmul.f32 %v962_v7, %v3023_v54  ;;  %v3121_v27 = vstv %s2401_s30  ;;  %s2432_s29 = sld [smem:[#allocation3 + $0x11]]  ;;  %s2433_s30 = sld [smem:[#allocation3 + $0x42]] }
 0x3f6   :  { %v876_v8 = vadd.f32 %v873_v6, %v869_v10  ;;  %v857_v6 = vmul.f32 %v3121_v27, %v3023_v54  ;;  %v965_v5 = vmul.f32 %v962_v7, %v3039_v21 }
 0x3f7   :  { %738 = vrot.lane.b32.xlu0 %v732_v0, %s2703_s17  ;;  %740 = vrot.lane.b32.xlu1 %v733_v11, %s2703_s17  ;;  %v870_v0 = vmul.f32 %v868_v24, %v3029_v22  ;;  %v898_v11 = vstv %s2404_s22  ;;  %s2424_s22 = sld [smem:[#allocation3 + $0x25]] }
 0x3f8   :  { %v899_v29 = vmul.f32 %v898_v11, %v3032_v34  ;;  %v900_v18 = vmul.f32 %v898_v11, %v3029_v22 }
 0x3fa   :  { %v906_v49 = vadd.f32 %v903_v28, %v899_v29  ;;  %v907_v55 = vadd.f32 %v904_v36, %v900_v18  ;;  %v854_v29 = vmul.f32 %v3115_v23, %v3029_v22  ;;  %v1018_v18 = vstv %s2412_s8  ;;  %s2434_s8 = sld [smem:[#allocation3 + $0x18]] }
 0x3fb   :  { %742 = vrot.lane.b32.xlu0 %v734_v1, %s2703_s17  ;;  %767 = vrot.lane.b32.xlu1 %v761_v32, %s2704_s19  ;;  %v877_v1 = vadd.f32 %v874_v14, %v870_v0  ;;  %v871_v32 = vmul.f32 %v868_v24, %v3026_v48  ;;  %v935_v24 = vmul.f32 %v932_v13, %v3039_v21 }
 0x3fc   :  { %v964_v14 = vmul.f32 %v962_v7, %v3020_v62 }
 0x3fd   :  { %v878_v35 = vadd.f32 %v875_v3, %v871_v32 }
 0x3ff   :  { %769 = vrot.lane.b32.xlu0 %v762_v20, %s2704_s19  ;;  %771 = vrot.lane.b32.xlu1 %v763_v33, %s2704_s19  ;;  %v901_v20 = vmul.f32 %v898_v11, %v3026_v48  ;;  %v928_v33 = vstv %s2406_s4  ;;  %v853_v11 = vmul.f32 %v3115_v23, %v3032_v34  ;;  %s2426_s4 = sld [smem:[#allocation3 + $0x2c]] }
 0x400   :  { %v929_v9 = vmul.f32 %v928_v33, %v3032_v34 }
 0x401   :  { %v908_v56 = vadd.f32 %v905_v12, %v901_v20  ;;  %v3134_v32 = vadd.f32 %v857_v6, %v853_v11  ;;  %v1022_v12 = vstv %s2413_s9  ;;  %v1132_v11 = vstv %s2418_s14  ;;  %s2435_s9 = sld [smem:[#allocation3 + $0x49]]  ;;  %s2436_s14 = sld [smem:[#allocation3 + $0x1f]] }
 0x402   :  { %v936_v26 = vadd.f32 %v933_v4, %v929_v9  ;;  %v1019_v9 = vmul.f32 %v1018_v18, %v3032_v34  ;;  %v1102_v4 = vstv %s2416_s10  ;;  %s2446_s10 = sld [smem:[#allocation3 + $0x12]] }
 0x403   :  { %796 = vrot.lane.b32.xlu0 %v790_v30, %s2705_s23  ;;  %798 = vrot.lane.b32.xlu1 %v791_v58, %s2705_s23  ;;  %v930_v30 = vmul.f32 %v928_v33, %v3029_v22  ;;  %v958_v58 = vstv %s2408_s27  ;;  %4094 = vst [vmem:[#allocation44_spill] sm:$0xff] %v3134_v32  ;;  %s2430_s27 = sld [smem:[#allocation3 + $0xa]] }
 0x404   :  { %v959_v63 = vmul.f32 %v958_v58, %v3032_v34  ;;  %v960_v25 = vmul.f32 %v958_v58, %v3029_v22  ;;  %v961_v0 = vmul.f32 %v958_v58, %v3026_v48  ;;  %v1023_v58 = vmul.f32 %v1022_v12, %v3023_v54 }
 0x406   :  { %v966_v10 = vadd.f32 %v963_v15, %v959_v63  ;;  %v967_v3 = vadd.f32 %v964_v14, %v960_v25  ;;  %v968_v28 = vadd.f32 %v965_v5, %v961_v0  ;;  %v1026_v7 = vadd.f32 %v1023_v58, %v1019_v9 }
 0x407   :  { %800 = vrot.lane.b32.xlu0 %v792_v60, %s2705_s23  ;;  %825 = vrot.lane.b32.xlu1 %v819_v61, %s2706_s24  ;;  %v937_v60 = vadd.f32 %v934_v59, %v930_v30  ;;  %v931_v61 = vmul.f32 %v928_v33, %v3026_v48  ;;  %v1024_v63 = vmul.f32 %v1022_v12, %v3020_v62  ;;  %v3159_v15 = vstv %s2414_s11  ;;  %s2458_s11 = sld [smem:[#allocation3 + $0xc]] }
 0x408   :  { %v3161_v25 = vstv %s2415_s13  ;;  %v1103_v0 = vmul.f32 %v1102_v4, %v3032_v34  ;;  %v1087_v14 = vmul.f32 %v3159_v15, %v3032_v34  ;;  %v1135_v9 = vmul.f32 %v1132_v11, %v3026_v48  ;;  %s2459_s13 = sld [smem:[#allocation3 + $0x3d]] }
 0x409   :  { %v1091_v5 = vmul.f32 %v3161_v25, %v3023_v54  ;;  %v1162_v58 = vstv %s2420_s16  ;;  %s2448_s16 = sld [smem:[#allocation3 + $0x19]] }
 0x40b   :  { %827 = vrot.lane.b32.xlu0 %v820_v19, %s2706_s24  ;;  %829 = vrot.lane.b32.xlu1 %v821_v2, %s2706_s24  ;;  %v988_v19 = vstv %s2410_s6  ;;  %v938_v2 = vadd.f32 %v935_v24, %v931_v61  ;;  %v1106_v61 = vstv %s2417_s0  ;;  %v1025_v24 = vmul.f32 %v1022_v12, %v3039_v21  ;;  %s2444_s6 = sld [smem:[#allocation3 + $0xb]] }
 0x40c   :  { %v1108_v6 = vmul.f32 %v1106_v61, %v3020_v62  ;;  %v1109_v12 = vmul.f32 %v1106_v61, %v3039_v21  ;;  %s2447_s0 = sld [smem:[#allocation3 + $0x43]] }
 0x40f   :  { %882 = vrot.lane.b32.xlu0 %v876_v8, %s2701_s12  ;;  %884 = vrot.lane.b32.xlu1 %v877_v1, %s2701_s12  ;;  %v989_v8 = vmul.f32 %v988_v19, %v3032_v34  ;;  %v992_v1 = vstv %s2411_s7  ;;  %s2445_s7 = sld [smem:[#allocation3 + $0x3c]] }
 0x410   :  { %v993_v20 = vmul.f32 %v992_v1, %v3023_v54  ;;  %v994_v33 = vmul.f32 %v992_v1, %v3020_v62  ;;  %v995_v30 = vmul.f32 %v992_v1, %v3039_v21 }
 0x412   :  { %v996_v13 = vadd.f32 %v993_v20, %v989_v8  ;;  %v1107_v8 = vmul.f32 %v1106_v61, %v3023_v54  ;;  %v1092_v20 = vmul.f32 %v3161_v25, %v3020_v62  ;;  %v1164_v61 = vmul.f32 %v1162_v58, %v3029_v22 }
 0x413   :  { %886 = vrot.lane.b32.xlu0 %v878_v35, %s2701_s12  ;;  %912 = vrot.lane.b32.xlu1 %v906_v49, %s2702_s1  ;;  %v990_v35 = vmul.f32 %v988_v19, %v3029_v22  ;;  %v858_v49 = vmul.f32 %v3121_v27, %v3020_v62 }
 0x415   :  { %v3145_v36 = vadd.f32 %v858_v49, %v854_v29  ;;  %v1133_v29 = vmul.f32 %v1132_v11, %v3032_v34  ;;  %v1105_v49 = vmul.f32 %v1102_v4, %v3026_v48 }
 0x417   :  { %914 = vrot.lane.b32.xlu0 %v907_v55, %s2702_s1  ;;  %916 = vrot.lane.b32.xlu1 %v908_v56, %s2702_s1  ;;  %v997_v55 = vadd.f32 %v994_v33, %v990_v35  ;;  %v991_v56 = vmul.f32 %v988_v19, %v3026_v48  ;;  %v1104_v19 = vmul.f32 %v1102_v4, %v3029_v22 }
 0x418   :  { %v1110_v35 = vadd.f32 %v1107_v8, %v1103_v0 }
 0x419   :  { %v998_v59 = vadd.f32 %v995_v30, %v991_v56  ;;  %v1111_v1 = vadd.f32 %v1108_v6, %v1104_v19  ;;  %v1112_v56 = vadd.f32 %v1109_v12, %v1105_v49  ;;  %v1134_v30 = vmul.f32 %v1132_v11, %v3029_v22 }
 0x41a   :  { %v1222_v49 = vstv %s2424_s22  ;;  %s2472_s22 = sld [smem:[#allocation3 + $0xd]] }
 0x41b   :  { %942 = vrot.lane.b32.xlu0 %v936_v26, %s2703_s17  ;;  %944 = vrot.lane.b32.xlu1 %v937_v60, %s2703_s17  ;;  %v1020_v26 = vmul.f32 %v1018_v18, %v3029_v22  ;;  %v1021_v60 = vmul.f32 %v1018_v18, %v3026_v48  ;;  %v1088_v18 = vmul.f32 %v3159_v15, %v3029_v22 }
 0x41f   :  { %946 = vrot.lane.b32.xlu0 %v938_v2, %s2703_s17  ;;  %972 = vrot.lane.b32.xlu1 %v966_v10, %s2704_s19  ;;  %v1027_v2 = vadd.f32 %v1024_v63, %v1020_v26  ;;  %v1028_v10 = vadd.f32 %v1025_v24, %v1021_v60  ;;  %v1163_v63 = vmul.f32 %v1162_v58, %v3032_v34  ;;  %v1192_v24 = vstv %s2422_s20  ;;  %s2460_s20 = sld [smem:[#allocation3 + $0x13]] }
 0x420   :  { %v1193_v6 = vmul.f32 %v1192_v24, %v3032_v34 }
 0x423   :  { %974 = vrot.lane.b32.xlu0 %v967_v3, %s2704_s19  ;;  %976 = vrot.lane.b32.xlu1 %v968_v28, %s2704_s19  ;;  %v1136_v3 = vstv %s2419_s15  ;;  %v3174_v28 = vadd.f32 %v1091_v5, %v1087_v14  ;;  %v1165_v14 = vmul.f32 %v1162_v58, %v3026_v48  ;;  %s2437_s15 = sld [smem:[#allocation3 + $0x50]] }
 0x424   :  { %v1137_v33 = vmul.f32 %v1136_v3, %v3023_v54  ;;  %v1139_v4 = vmul.f32 %v1136_v3, %v3039_v21 }
 0x426   :  { %v1142_v26 = vadd.f32 %v1139_v4, %v1135_v9  ;;  %v1223_v9 = vmul.f32 %v1222_v49, %v3032_v34 }
 0x427   :  { %1002 = vrot.lane.b32.xlu0 %v996_v13, %s2705_s23  ;;  %1004 = vrot.lane.b32.xlu1 %v997_v55, %s2705_s23  ;;  %v3185_v13 = vadd.f32 %v1092_v20, %v1088_v18  ;;  %v1140_v55 = vadd.f32 %v1137_v33, %v1133_v29  ;;  %v1226_v33 = vstv %s2425_s3  ;;  %s2473_s3 = sld [smem:[#allocation3 + $0x3e]] }
 0x428   :  { %v1228_v58 = vmul.f32 %v1226_v33, %v3020_v62  ;;  %v1227_v4 = vmul.f32 %v1226_v33, %v3023_v54 }
 0x42b   :  { %1006 = vrot.lane.b32.xlu0 %v998_v59, %s2705_s23  ;;  %1032 = vrot.lane.b32.xlu1 %v1026_v7, %s2706_s24  ;;  %v1138_v59 = vmul.f32 %v1136_v3, %v3020_v62  ;;  %v1166_v7 = vstv %s2421_s18  ;;  %v1195_v3 = vmul.f32 %v1192_v24, %v3026_v48  ;;  %s2449_s18 = sld [smem:[#allocation3 + $0x4a]] }
 0x42c   :  { %v1168_v19 = vmul.f32 %v1166_v7, %v3020_v62  ;;  %v1169_v8 = vmul.f32 %v1166_v7, %v3039_v21 }
 0x42d   :  { %v1141_v60 = vadd.f32 %v1138_v59, %v1134_v30  ;;  %v1252_v30 = vstv %s2426_s4  ;;  %v1256_v59 = vstv %s2427_s25  ;;  %s2438_s4 = sld [smem:[#allocation3 + $0x26]]  ;;  %s2439_s25 = sld [smem:[#allocation3 + $0x57]] }
 0x42e   :  { %v1171_v0 = vadd.f32 %v1168_v19, %v1164_v61  ;;  %v1172_v29 = vadd.f32 %v1169_v8, %v1165_v14  ;;  %v1225_v61 = vmul.f32 %v1222_v49, %v3026_v48  ;;  %v1258_v14 = vmul.f32 %v1256_v59, %v3020_v62 }
 0x42f   :  { %1034 = vrot.lane.b32.xlu0 %v1027_v2, %s2706_s24  ;;  %1036 = vrot.lane.b32.xlu1 %v1028_v10, %s2706_s24  ;;  %v1167_v2 = vmul.f32 %v1166_v7, %v3023_v54  ;;  %v1196_v10 = vstv %s2423_s21  ;;  %s2461_s21 = sld [smem:[#allocation3 + $0x44]] }
 0x430   :  { %v1197_v5 = vmul.f32 %v1196_v10, %v3023_v54  ;;  %v1199_v18 = vmul.f32 %v1196_v10, %v3039_v21  ;;  %v1198_v20 = vmul.f32 %v1196_v10, %v3020_v62  ;;  %v1255_v10 = vmul.f32 %v1252_v30, %v3026_v48 }
 0x431   :  { %v1170_v11 = vadd.f32 %v1167_v2, %v1163_v63  ;;  %v1257_v63 = vmul.f32 %v1256_v59, %v3023_v54 }
 0x432   :  { %v1202_v12 = vadd.f32 %v1199_v18, %v1195_v3 }
 0x433   :  { %1118 = vrot.lane.b32.xlu0 %v1111_v1, %s2701_s12  ;;  %1116 = vrot.lane.b32.xlu1 %v1110_v35, %s2701_s12  ;;  %v1200_v1 = vadd.f32 %v1197_v5, %v1193_v6  ;;  %v1194_v35 = vmul.f32 %v1192_v24, %v3029_v22  ;;  %v1229_v24 = vmul.f32 %v1226_v33, %v3039_v21  ;;  %v1340_v5 = vstv %s2431_s28  ;;  %s2451_s28 = sld [smem:[#allocation3 + $0x51]] }
 0x434   :  { %v1259_v6 = vmul.f32 %v1256_v59, %v3039_v21  ;;  %v1342_v18 = vmul.f32 %v1340_v5, %v3020_v62 }
 0x435   :  { %v1232_v2 = vadd.f32 %v1229_v24, %v1225_v61 }
 0x436   :  { %v1262_v8 = vadd.f32 %v1259_v6, %v1255_v10  ;;  %v1396_v6 = vstv %s2434_s8  ;;  %s2441_s8 = sld [smem:[#allocation3 + $0x5e]] }
 0x437   :  { %1146 = vrot.lane.b32.xlu0 %v1140_v55, %s2702_s1  ;;  %1120 = vrot.lane.b32.xlu1 %v1112_v56, %s2701_s12  ;;  %v1201_v55 = vadd.f32 %v1198_v20, %v1194_v35  ;;  %v1224_v56 = vmul.f32 %v1222_v49, %v3029_v22  ;;  %v1366_v35 = vstv %s2432_s29  ;;  %v1341_v49 = vmul.f32 %v1340_v5, %v3023_v54  ;;  %s2462_s29 = sld [smem:[#allocation3 + $0x1a]] }
 0x438   :  { %v1370_v20 = vstv %s2433_s30  ;;  %v1368_v59 = vmul.f32 %v1366_v35, %v3029_v22  ;;  %s2463_s30 = sld [smem:[#allocation3 + $0x4b]] }
 0x439   :  { %v1231_v7 = vadd.f32 %v1228_v58, %v1224_v56  ;;  %v1367_v56 = vmul.f32 %v1366_v35, %v3032_v34  ;;  %v1373_v61 = vmul.f32 %v1370_v20, %v3039_v21 }
 0x43b   :  { %1150 = vrot.lane.b32.xlu0 %v1142_v26, %s2702_s1  ;;  %1148 = vrot.lane.b32.xlu1 %v1141_v60, %s2702_s1  ;;  %v1230_v26 = vadd.f32 %v1227_v4, %v1223_v9  ;;  %v1253_v60 = vmul.f32 %v1252_v30, %v3032_v34  ;;  %v1343_v9 = vmul.f32 %v1340_v5, %v3039_v21 }
 0x43d   :  { %v1260_v19 = vadd.f32 %v1257_v63, %v1253_v60  ;;  %v1372_v60 = vmul.f32 %v1370_v20, %v3020_v62  ;;  %v1574_v63 = vstv %s2445_s7  ;;  %s2440_s7 = sld [smem:[#allocation3 + $0x2d]] }
 0x43e   :  { %v1576_v5 = vmul.f32 %v1574_v63, %v3020_v62 }
 0x43f   :  { %1178 = vrot.lane.b32.xlu0 %v1171_v0, %s2703_s17  ;;  %1176 = vrot.lane.b32.xlu1 %v1170_v11, %s2703_s17  ;;  %v1254_v0 = vmul.f32 %v1252_v30, %v3029_v22  ;;  %v1336_v11 = vstv %s2430_s27  ;;  %v1371_v30 = vmul.f32 %v1370_v20, %v3023_v54  ;;  %v1577_v20 = vmul.f32 %v1574_v63, %v3039_v21  ;;  %s2450_s27 = sld [smem:[#allocation3 + $0x20]] }
 0x440   :  { %v1338_v3 = vmul.f32 %v1336_v11, %v3029_v22 }
 0x441   :  { %v1374_v4 = vadd.f32 %v1371_v30, %v1367_v56  ;;  %v1398_v30 = vmul.f32 %v1396_v6, %v3029_v22 }
 0x443   :  { %1206 = vrot.lane.b32.xlu0 %v1200_v1, %s2704_s19  ;;  %1180 = vrot.lane.b32.xlu1 %v1172_v29, %s2703_s17  ;;  %v1261_v1 = vadd.f32 %v1258_v14, %v1254_v0  ;;  %v1337_v29 = vmul.f32 %v1336_v11, %v3032_v34  ;;  %v1575_v14 = vmul.f32 %v1574_v63, %v3023_v54 }
 0x445   :  { %v1344_v33 = vadd.f32 %v1341_v49, %v1337_v29 }
 0x447   :  { %1210 = vrot.lane.b32.xlu0 %v1202_v12, %s2704_s19  ;;  %1208 = vrot.lane.b32.xlu1 %v1201_v55, %s2704_s19  ;;  %v1345_v12 = vadd.f32 %v1342_v18, %v1338_v3  ;;  %v1339_v55 = vmul.f32 %v1336_v11, %v3026_v48  ;;  %v1397_v18 = vmul.f32 %v1396_v6, %v3032_v34 }
 0x449   :  { %v1346_v58 = vadd.f32 %v1343_v9, %v1339_v55 }
 0x44b   :  { %1238 = vrot.lane.b32.xlu0 %v1231_v7, %s2705_s23  ;;  %1236 = vrot.lane.b32.xlu1 %v1230_v26, %s2705_s23  ;;  %v1369_v7 = vmul.f32 %v1366_v35, %v3026_v48  ;;  %v1570_v26 = vstv %s2444_s6  ;;  %s2474_s6 = sld [smem:[#allocation3 + $0x14]] }
 0x44c   :  { %v1571_v0 = vmul.f32 %v1570_v26, %v3032_v34  ;;  %v1572_v11 = vmul.f32 %v1570_v26, %v3029_v22  ;;  %v1573_v49 = vmul.f32 %v1570_v26, %v3026_v48  ;;  %v1604_v26 = vstv %s2447_s0  ;;  %s2464_s0 = sld [smem:[#allocation3 + $0x21]] }
 0x44d   :  { %v1376_v10 = vadd.f32 %v1373_v61, %v1369_v7 }
 0x44e   :  { %v1578_v3 = vadd.f32 %v1575_v14, %v1571_v0  ;;  %v1579_v35 = vadd.f32 %v1576_v5, %v1572_v11  ;;  %v1580_v56 = vadd.f32 %v1577_v20, %v1573_v49  ;;  %v1803_v11 = vstv %s2458_s11  ;;  %s2465_s11 = sld [smem:[#allocation3 + $0x52]] }
 0x44f   :  { %1266 = vrot.lane.b32.xlu0 %v1260_v19, %s2706_s24  ;;  %1240 = vrot.lane.b32.xlu1 %v1232_v2, %s2705_s23  ;;  %v1375_v2 = vadd.f32 %v1372_v60, %v1368_v59  ;;  %v1606_v14 = vmul.f32 %v1604_v26, %v3020_v62  ;;  %v1807_v5 = vstv %s2459_s13  ;;  %v1804_v20 = vmul.f32 %v1803_v11, %v3032_v34  ;;  %s2476_s13 = sld [smem:[#allocation3 + $0x1b]] }
 0x453   :  { %1270 = vrot.lane.b32.xlu0 %v1262_v8, %s2706_s24  ;;  %1268 = vrot.lane.b32.xlu1 %v1261_v1, %s2706_s24  ;;  %v1400_v8 = vstv %s2435_s9  ;;  %s2452_s9 = sld [smem:[#allocation3 + $0x27]] }
 0x454   :  { %v1402_v59 = vmul.f32 %v1400_v8, %v3020_v62  ;;  %v1403_v7 = vmul.f32 %v1400_v8, %v3039_v21 }
 0x456   :  { %v1405_v63 = vadd.f32 %v1402_v59, %v1398_v30 }
 0x457   :  { %1350 = vrot.lane.b32.xlu0 %v1344_v33, %s2701_s12  ;;  %1352 = vrot.lane.b32.xlu1 %v1345_v12, %s2701_s12  ;;  %v1401_v33 = vmul.f32 %v1400_v8, %v3023_v54 }
 0x459   :  { %v1404_v9 = vadd.f32 %v1401_v33, %v1397_v18  ;;  %v1607_v33 = vmul.f32 %v1604_v26, %v3039_v21 }
 0x45b   :  { %1354 = vrot.lane.b32.xlu0 %v1346_v58, %s2701_s12  ;;  %1380 = vrot.lane.b32.xlu1 %v1374_v4, %s2702_s1  ;;  %v1399_v58 = vmul.f32 %v1396_v6, %v3026_v48  ;;  %v1600_v4 = vstv %s2446_s10  ;;  %v1605_v6 = vmul.f32 %v1604_v26, %v3023_v54  ;;  %v1809_v26 = vmul.f32 %v1807_v5, %v3020_v62  ;;  %s2453_s10 = sld [smem:[#allocation3 + $0x58]] }
 0x45c   :  { %v1602_v0 = vmul.f32 %v1600_v4, %v3029_v22  ;;  %v1603_v18 = vmul.f32 %v1600_v4, %v3026_v48 }
 0x45d   :  { %v3247_v24 = vpop.permute.xlu0 %680  ;;  %v3249_v19 = vpop.permute.xlu1 %682 }
 0x45e   :  { %4095 = vst [vmem:[#allocation45_spill] sm:$0xff] %v3247_v24  ;;  %4096 = vst [vmem:[#allocation46_spill] sm:$0xff] %v3249_v19  ;;  %v1609_v49 = vadd.f32 %v1606_v14, %v1602_v0 }
 0x45f   :  { %1382 = vrot.lane.b32.xlu0 %v1375_v2, %s2702_s1  ;;  %1384 = vrot.lane.b32.xlu1 %v1376_v10, %s2702_s1  ;;  %v1406_v2 = vadd.f32 %v1403_v7, %v1399_v58  ;;  %v1601_v10 = vmul.f32 %v1600_v4, %v3032_v34  ;;  %v1610_v58 = vadd.f32 %v1607_v33, %v1603_v18  ;;  %v1630_v18 = vstv %s2448_s16  ;;  %s3466_s16 = sld [smem:[#allocation3 + $0x28]] }
 0x460   :  { %v1805_v4 = vmul.f32 %v1803_v11, %v3029_v22  ;;  %v1806_v7 = vmul.f32 %v1803_v11, %v3026_v48  ;;  %v1634_v33 = vstv %s2449_s18  ;;  %s3478_s18 = sld [smem:[#allocation3 + $0x59]] }
 0x461   :  { %v3257_v1 = vpop.permute.xlu0 %684  ;;  %v3259_v29 = vpop.permute.xlu1 %709 }
 0x462   :  { %4097 = vst [vmem:[#allocation47_spill] sm:$0xff] %v3257_v1  ;;  %4098 = vst [vmem:[#allocation48_spill] sm:$0xff] %v3259_v29  ;;  %v1812_v14 = vadd.f32 %v1809_v26, %v1805_v4  ;;  %v1631_v26 = vmul.f32 %v1630_v18, %v3032_v34 }
 0x463   :  { %1584 = vrot.lane.b32.xlu0 %v1578_v3, %s2701_s12  ;;  %1586 = vrot.lane.b32.xlu1 %v1579_v35, %s2701_s12  ;;  %v1608_v35 = vadd.f32 %v1605_v6, %v1601_v10  ;;  %v1430_v10 = vstv %s2437_s15  ;;  %s3457_s15 = sld [smem:[#allocation3 + $0x5f]] }
 0x465   :  { %v3267_v12 = vpop.permute.xlu0 %711  ;;  %v3269_v55 = vpop.permute.xlu1 %713 }
 0x466   :  { %4099 = vst [vmem:[#allocation49_spill] sm:$0xff] %v3267_v12  ;;  %4100 = vst [vmem:[#allocation50_spill] sm:$0xff] %v3269_v55 }
 0x467   :  { %1588 = vrot.lane.b32.xlu0 %v1580_v56, %s2701_s12  ;;  %1410 = vrot.lane.b32.xlu1 %v1404_v9, %s2703_s17  ;;  %v1808_v56 = vmul.f32 %v1807_v5, %v3023_v54 }
 0x469   :  { %v3277_v60 = vpop.permute.xlu0 %738  ;;  %v3279_v61 = vpop.permute.xlu1 %740  ;;  %v1811_v59 = vadd.f32 %v1808_v56, %v1804_v20  ;;  %v1431_v20 = vmul.f32 %v1430_v10, %v3023_v54 }
 0x46a   :  { %4101 = vst [vmem:[#allocation51_spill] sm:$0xff] %v3277_v60  ;;  %4102 = vst [vmem:[#allocation52_spill] sm:$0xff] %v3279_v61 }
 0x46b   :  { %1412 = vrot.lane.b32.xlu0 %v1405_v63, %s2703_s17  ;;  %1414 = vrot.lane.b32.xlu1 %v1406_v2, %s2703_s17  ;;  %v1426_v63 = vstv %s2436_s14  ;;  %v1810_v2 = vmul.f32 %v1807_v5, %v3039_v21  ;;  %v1432_v5 = vmul.f32 %v1430_v10, %v3020_v62  ;;  %s2454_s14 = sld [smem:[#allocation3 + $0x2e]] }
 0x46c   :  { %v1428_v11 = vmul.f32 %v1426_v63, %v3029_v22 }
 0x46d   :  { %v3287_v8 = vpop.permute.xlu0 %742  ;;  %v3289_v3 = vpop.permute.xlu1 %767 }
 0x46e   :  { %4103 = vst [vmem:[#allocation53_spill] sm:$0xff] %v3287_v8  ;;  %4104 = vst [vmem:[#allocation54_spill] sm:$0xff] %v3289_v3  ;;  %v1435_v4 = vadd.f32 %v1432_v5, %v1428_v11  ;;  %v1833_v5 = vstv %s2460_s20  ;;  %s3501_s20 = sld [smem:[#allocation3 + $0x22]] }
 0x46f   :  { %1614 = vrot.lane.b32.xlu0 %v1608_v35, %s2702_s1  ;;  %1616 = vrot.lane.b32.xlu1 %v1609_v49, %s2702_s1  ;;  %v1813_v35 = vadd.f32 %v1810_v2, %v1806_v7  ;;  %v1427_v49 = vmul.f32 %v1426_v63, %v3032_v34  ;;  %v1429_v7 = vmul.f32 %v1426_v63, %v3026_v48 }
 0x470   :  { %v1433_v2 = vmul.f32 %v1430_v10, %v3039_v21  ;;  %v1632_v63 = vmul.f32 %v1630_v18, %v3029_v22  ;;  %v1636_v10 = vmul.f32 %v1634_v33, %v3020_v62 }
 0x471   :  { %v3297_v9 = vpop.permute.xlu0 %769  ;;  %v3299_v30 = vpop.permute.xlu1 %771 }
 0x472   :  { %4105 = vst [vmem:[#allocation55_spill] sm:$0xff] %v3297_v9  ;;  %4106 = vst [vmem:[#allocation56_spill] sm:$0xff] %v3299_v30 }
 0x473   :  { %1618 = vrot.lane.b32.xlu0 %v1610_v58, %s2702_s1  ;;  %1817 = vrot.lane.b32.xlu1 %v1811_v59, %s2701_s12  ;;  %v1434_v59 = vadd.f32 %v1431_v20, %v1427_v49  ;;  %v1436_v49 = vadd.f32 %v1433_v2, %v1429_v7  ;;  %v1633_v20 = vmul.f32 %v1630_v18, %v3026_v48 }
 0x474   :  { %v1639_v7 = vadd.f32 %v1636_v10, %v1632_v63  ;;  %v1834_v2 = vmul.f32 %v1833_v5, %v3032_v34  ;;  %v1835_v18 = vmul.f32 %v1833_v5, %v3029_v22 }
 0x475   :  { %v3307_v0 = vpop.permute.xlu0 %796  ;;  %v3309_v6 = vpop.permute.xlu1 %798 }
 0x476   :  { %4107 = vst [vmem:[#allocation57_spill] sm:$0xff] %v3307_v0  ;;  %4108 = vst [vmem:[#allocation58_spill] sm:$0xff] %v3309_v6 }
 0x477   :  { %1819 = vrot.lane.b32.xlu0 %v1812_v14, %s2701_s12  ;;  %1821 = vrot.lane.b32.xlu1 %v1813_v35, %s2701_s12  ;;  %v1635_v14 = vmul.f32 %v1634_v33, %v3023_v54 }
 0x479   :  { %v3317_v56 = vpop.permute.xlu0 %800  ;;  %v3319_v58 = vpop.permute.xlu1 %825  ;;  %v1638_v11 = vadd.f32 %v1635_v14, %v1631_v26  ;;  %v2037_v14 = vstv %s2472_s22  ;;  %s3510_s22 = sld [smem:[#allocation3 + $0x34]] }
 0x47a   :  { %4109 = vst [vmem:[#allocation59_spill] sm:$0xff] %v3317_v56  ;;  %4110 = vst [vmem:[#allocation60_spill] sm:$0xff] %v3319_v58  ;;  %v2038_v53 = vmul.f32 %v2037_v14, %v3032_v34 }
 0x47b   :  { %1440 = vrot.lane.b32.xlu0 %v1434_v59, %s2704_s19  ;;  %1442 = vrot.lane.b32.xlu1 %v1435_v4, %s2704_s19  ;;  %v1637_v59 = vmul.f32 %v1634_v33, %v3039_v21  ;;  %v1837_v4 = vstv %s2461_s21  ;;  %s3506_s21 = sld [smem:[#allocation3 + $0x3]] }
 0x47c   :  { %v1839_v33 = vmul.f32 %v1837_v4, %v3020_v62 }
 0x47d   :  { %v3327_v35 = vpop.permute.xlu0 %827  ;;  %v3329_v17 = vpop.permute.xlu1 %829  ;;  %v1640_v26 = vadd.f32 %v1637_v59, %v1633_v20  ;;  %v1836_v59 = vmul.f32 %v1833_v5, %v3026_v48  ;;  %v2039_v5 = vmul.f32 %v2037_v14, %v3029_v22 }
 0x47e   :  { %4111 = vst [vmem:[#allocation61_spill] sm:$0xff] %v3327_v35  ;;  %4112 = vst [vmem:[#allocation62_spill] sm:$0xff] %v3329_v17  ;;  %v1842_v10 = vadd.f32 %v1839_v33, %v1835_v18  ;;  %v1456_v33 = vstv %s2438_s4  ;;  %s3525_s4 = sld [smem:[#allocation3 + $0x60]] }
 0x47f   :  { %1444 = vrot.lane.b32.xlu0 %v1436_v49, %s2704_s19  ;;  %1644 = vrot.lane.b32.xlu1 %v1638_v11, %s2703_s17  ;;  %v1838_v49 = vmul.f32 %v1837_v4, %v3023_v54  ;;  %v2041_v11 = vstv %s2473_s3  ;;  %s3512_s3 = sld [smem:[#allocation3 + $0x53]] }
 0x481   :  { %v3337_v16 = vpop.permute.xlu0 %882  ;;  %v3339_v52 = vpop.permute.xlu1 %884  ;;  %v1841_v20 = vadd.f32 %v1838_v49, %v1834_v2  ;;  %v2040_v49 = vmul.f32 %v2037_v14, %v3026_v48  ;;  %v1458_v14 = vmul.f32 %v1456_v33, %v3029_v22 }
 0x482   :  { %4113 = vst [vmem:[#allocation63_spill] sm:$0xff] %v3337_v16 }
 0x483   :  { %1646 = vrot.lane.b32.xlu0 %v1639_v7, %s2703_s17  ;;  %1648 = vrot.lane.b32.xlu1 %v1640_v26, %s2703_s17  ;;  %v1840_v7 = vmul.f32 %v1837_v4, %v3039_v21  ;;  %v2042_v26 = vmul.f32 %v2041_v11, %v3023_v54  ;;  %v2043_v4 = vmul.f32 %v2041_v11, %v3020_v62 }
 0x485   :  { %v3347_v50 = vpop.permute.xlu0 %886  ;;  %v3349_v63 = vpop.permute.xlu1 %912  ;;  %v1843_v2 = vadd.f32 %v1840_v7, %v1836_v59  ;;  %v2045_v18 = vadd.f32 %v2042_v26, %v2038_v53  ;;  %v2046_v59 = vadd.f32 %v2043_v4, %v2039_v5  ;;  %v1457_v7 = vmul.f32 %v1456_v33, %v3032_v34 }
 0x486   :  { %4114 = vst [vmem:[#allocation64_spill] sm:$0xff] %v3349_v63  ;;  %v1660_v26 = vstv %s2450_s27  ;;  %s3546_s27 = sld [smem:[#allocation3 + $0x4]] }
 0x487   :  { %1847 = vrot.lane.b32.xlu0 %v1841_v20, %s2702_s1  ;;  %1849 = vrot.lane.b32.xlu1 %v1842_v10, %s2702_s1  ;;  %v2044_v20 = vmul.f32 %v2041_v11, %v3039_v21  ;;  %v1460_v10 = vstv %s2439_s25  ;;  %v1661_v35 = vmul.f32 %v1660_v26, %v3032_v34  ;;  %s3536_s25 = sld [smem:[#allocation3 + $0x35]] }
 0x488   :  { %v1462_v11 = vmul.f32 %v1460_v10, %v3020_v62 }
 0x489   :  { %v3357_v51 = vpop.permute.xlu0 %914  ;;  %v3359_v57 = vpop.permute.xlu1 %916  ;;  %v2047_v53 = vadd.f32 %v2044_v20, %v2040_v49  ;;  %v1459_v20 = vmul.f32 %v1456_v33, %v3026_v48  ;;  %v1662_v33 = vmul.f32 %v1660_v26, %v3029_v22 }
 0x48a   :  { %v1465_v4 = vadd.f32 %v1462_v11, %v1458_v14  ;;  %v1863_v11 = vstv %s2462_s29  ;;  %s3563_s29 = sld [smem:[#allocation3 + $0x5a]] }
 0x48b   :  { %1851 = vrot.lane.b32.xlu0 %v1843_v2, %s2702_s1  ;;  %2051 = vrot.lane.b32.xlu1 %v2045_v18, %s2701_s12  ;;  %v1461_v2 = vmul.f32 %v1460_v10, %v3023_v54  ;;  %v1664_v18 = vstv %s2451_s28  ;;  %s3550_s28 = sld [smem:[#allocation3 + $0x29]] }
 0x48d   :  { %v3367_v58 = vpop.permute.xlu0 %942  ;;  %v3369_v31 = vpop.permute.xlu1 %944  ;;  %v1464_v49 = vadd.f32 %v1461_v2, %v1457_v7  ;;  %v1663_v2 = vmul.f32 %v1660_v26, %v3026_v48  ;;  %v1865_v26 = vmul.f32 %v1863_v11, %v3029_v22  ;;  %v3576_v32 = vstv %s3536_s25 }
 0x48e   :  { %4115 = vst [vmem:[#allocation65_spill] sm:$0xff] %v3367_v58  ;;  %v1560_v16 = vmul.f32 %v3576_v32, %v3020_v62 }
 0x48f   :  { %2053 = vrot.lane.b32.xlu0 %v2046_v59, %s2701_s12  ;;  %2055 = vrot.lane.b32.xlu1 %v2047_v53, %s2701_s12  ;;  %v1463_v59 = vmul.f32 %v1460_v10, %v3039_v21  ;;  %v1665_v53 = vmul.f32 %v1664_v18, %v3023_v54  ;;  %s2475_s12 = sld [smem:[#allocation3 + $0x45]]  ;;  %v1666_v10 = vmul.f32 %v1664_v18, %v3020_v62 }
 0x491   :  { %v3377_v0 = vpop.permute.xlu0 %946  ;;  %v3379_v5 = vpop.permute.xlu1 %972  ;;  %v1466_v7 = vadd.f32 %v1463_v59, %v1459_v20  ;;  %v1668_v14 = vadd.f32 %v1665_v53, %v1661_v35  ;;  %v1669_v20 = vadd.f32 %v1666_v10, %v1662_v33  ;;  %v1864_v59 = vmul.f32 %v1863_v11, %v3032_v34 }
 0x492   :  { %4116 = vst [vmem:[#allocation66_spill] sm:$0xff] %v3379_v5  ;;  %v2067_v53 = vstv %s2474_s6  ;;  %s3582_s6 = sld [smem:[#allocation3 + $0x61]] }
 0x493   :  { %1470 = vrot.lane.b32.xlu0 %v1464_v49, %s2705_s23  ;;  %1472 = vrot.lane.b32.xlu1 %v1465_v4, %s2705_s23  ;;  %v1667_v49 = vmul.f32 %v1664_v18, %v3039_v21  ;;  %v1867_v4 = vstv %s2463_s30  ;;  %v2068_v9 = vmul.f32 %v2067_v53, %v3032_v34  ;;  %s3569_s30 = sld [smem:[#allocation3 + $0x30]] }
 0x494   :  { %v1869_v18 = vmul.f32 %v1867_v4, %v3020_v62 }
 0x495   :  { %v3387_v17 = vpop.permute.xlu0 %974  ;;  %v3389_v3 = vpop.permute.xlu1 %976  ;;  %v1670_v35 = vadd.f32 %v1667_v49, %v1663_v2  ;;  %v1866_v49 = vmul.f32 %v1863_v11, %v3026_v48  ;;  %v2069_v11 = vmul.f32 %v2067_v53, %v3029_v22 }
 0x496   :  { %v1872_v10 = vadd.f32 %v1869_v18, %v1865_v26  ;;  %v1486_v18 = vstv %s2440_s7  ;;  %s2709_s7 = smov 126  }
 0x497   :  { %1474 = vrot.lane.b32.xlu0 %v1466_v7, %s2705_s23  ;;  %1674 = vrot.lane.b32.xlu1 %v1668_v14, %s2704_s19  ;;  %v1868_v7 = vmul.f32 %v1867_v4, %v3023_v54  ;;  %v2071_v14 = vstv %s2475_s12  ;;  %s2708_s12 = smov 127  }
 0x499   :  { %v3397_v6 = vpop.permute.xlu0 %1002  ;;  %v3399_v56 = vpop.permute.xlu1 %1004  ;;  %v1871_v2 = vadd.f32 %v1868_v7, %v1864_v59  ;;  %v2070_v7 = vmul.f32 %v2067_v53, %v3026_v48  ;;  %v1690_v53 = vstv %s2452_s9  ;;  %s2470_s9 = sld [smem:[#allocation3 + $0x6]] }
 0x49a   :  { %4117 = vst [vmem:[#allocation67_spill] sm:$0xff] %v3397_v6 }
 0x49b   :  { %1676 = vrot.lane.b32.xlu0 %v1669_v20, %s2704_s19  ;;  %1678 = vrot.lane.b32.xlu1 %v1670_v35, %s2704_s19  ;;  %v1870_v20 = vmul.f32 %v1867_v4, %v3039_v21  ;;  %v2072_v35 = vmul.f32 %v2071_v14, %v3023_v54  ;;  %v2073_v4 = vmul.f32 %v2071_v14, %v3020_v62 }
 0x49d   :  { %v3407_v60 = vpop.permute.xlu0 %1006  ;;  %v3409_v33 = vpop.permute.xlu1 %1032  ;;  %v1873_v59 = vadd.f32 %v1870_v20, %v1866_v49  ;;  %v2075_v26 = vadd.f32 %v2072_v35, %v2068_v9  ;;  %v2076_v24 = vadd.f32 %v2073_v4, %v2069_v11  ;;  %v1487_v9 = vmul.f32 %v1486_v18, %v3032_v34 }
 0x49e   :  { %4118 = vst [vmem:[#allocation68_spill] sm:$0xff] %v3409_v33  ;;  %v1488_v20 = vmul.f32 %v1486_v18, %v3029_v22  ;;  %v1489_v4 = vmul.f32 %v1486_v18, %v3026_v48  ;;  %v1693_v18 = vmul.f32 %v1690_v53, %v3026_v48  ;;  %v1720_v33 = vstv %s2454_s14  ;;  %s2387_s14 = sld [smem:[#allocation3 + $0x31]] }
 0x49f   :  { %1877 = vrot.lane.b32.xlu0 %v1871_v2, %s2703_s17  ;;  %1879 = vrot.lane.b32.xlu1 %v1872_v10, %s2703_s17  ;;  %v2074_v2 = vmul.f32 %v2071_v14, %v3039_v21  ;;  %v1490_v10 = vstv %s2441_s8  ;;  %s2710_s8 = smov 125  }
 0x4a0   :  { %v1491_v35 = vmul.f32 %v1490_v10, %v3023_v54  ;;  %v1492_v14 = vmul.f32 %v1490_v10, %v3020_v62 }
 0x4a1   :  { %v3417_v30 = vpop.permute.xlu0 %1034  ;;  %v3419_v29 = vpop.permute.xlu1 %1036  ;;  %v2077_v49 = vadd.f32 %v2074_v2, %v2070_v7  ;;  %v1691_v2 = vmul.f32 %v1690_v53, %v3032_v34 }
 0x4a2   :  { %v1494_v11 = vadd.f32 %v1491_v35, %v1487_v9  ;;  %v1495_v7 = vadd.f32 %v1492_v14, %v1488_v20  ;;  %v1692_v20 = vmul.f32 %v1690_v53, %v3029_v22  ;;  %v1893_v35 = vstv %s2464_s0  ;;  %s2711_s0 = smov 124  }
 0x4a3   :  { %1881 = vrot.lane.b32.xlu0 %v1873_v59, %s2703_s17  ;;  %2081 = vrot.lane.b32.xlu1 %v2075_v26, %s2702_s1  ;;  %v1694_v59 = vstv %s2453_s10  ;;  %v2097_v53 = vstv %s2476_s13  ;;  %s2471_s10 = sld [smem:[#allocation3 + $0x37]]  ;;  %s2713_s13 = smov 122  }
 0x4a4   :  { %v1697_v14 = vmul.f32 %v1694_v59, %v3039_v21 }
 0x4a5   :  { %v3427_v61 = vpop.permute.xlu0 %1118  ;;  %v1117_v8 = vpop.permute.xlu1 %1116 }
 0x4a7   :  { %2083 = vrot.lane.b32.xlu0 %v2076_v24, %s2702_s1  ;;  %2085 = vrot.lane.b32.xlu1 %v2077_v49, %s2702_s1  ;;  %v1493_v24 = vmul.f32 %v1490_v10, %v3039_v21  ;;  %v1695_v49 = vmul.f32 %v1694_v59, %v3023_v54  ;;  %s2477_s1 = sld [smem:[#allocation3 + $0x4c]]  ;;  %v1696_v10 = vmul.f32 %v1694_v59, %v3020_v62 }
 0x4a8   :  { %v1122_v59 = vsel %vm686_vm12, %v1117_v8, %v3427_v61 }
 0x4a9   :  { %v1147_v26 = vpop.permute.xlu0 %1146  ;;  %v3435_v12 = vpop.permute.xlu1 %1120  ;;  %v1496_v1 = vadd.f32 %v1493_v24, %v1489_v4  ;;  %v1698_v9 = vadd.f32 %v1695_v49, %v1691_v2  ;;  %v1699_v46 = vadd.f32 %v1696_v10, %v1692_v20  ;;  %v1700_v4 = vadd.f32 %v1697_v14, %v1693_v18 }
 0x4aa   :  { %v1894_v2 = vmul.f32 %v1893_v35, %v3032_v34  ;;  %v1895_v24 = vmul.f32 %v1893_v35, %v3029_v22  ;;  %v1127_v6 = vadd.f32 %v1122_v59, %v3174_v28 }
 0x4ab   :  { %1500 = vrot.lane.b32.xlu0 %v1494_v11, %s2706_s24  ;;  %1502 = vrot.lane.b32.xlu1 %v1495_v7, %s2706_s24  ;;  %v1897_v11 = vstv %s2465_s11  ;;  %s2712_s11 = smov 123  }
 0x4ac   :  { %v1899_v49 = vmul.f32 %v1897_v11, %v3020_v62  ;;  %v1900_v8 = vmul.f32 %v1897_v11, %v3039_v21 }
 0x4ad   :  { %v3443_v55 = vpop.permute.xlu0 %1150  ;;  %v1149_v19 = vpop.permute.xlu1 %1148 }
 0x4ae   :  { %v1902_v14 = vadd.f32 %v1899_v49, %v1895_v24  ;;  %v1152_v43 = vsel %vm715_vm13, %v1147_v26, %v1149_v19  ;;  %v2099_v24 = vmul.f32 %v2097_v53, %v3029_v22 }
 0x4af   :  { %1504 = vrot.lane.b32.xlu0 %v1496_v1, %s2706_s24  ;;  %1704 = vrot.lane.b32.xlu1 %v1698_v9, %s2705_s23  ;;  %v1898_v1 = vmul.f32 %v1897_v11, %v3023_v54  ;;  %v2101_v9 = vstv %s2477_s1  ;;  %v1157_v28 = vadd.f32 %v1152_v43, %v1127_v6  ;;  %v1724_v6 = vstv %s3457_s15  ;;  %s652_s1 = sld [smem:[#allocation3]]  ;;  %s2715_s15 = smov [#allocation12]  }
 0x4b0   :  { %v2104_v43 = vmul.f32 %v2101_v9, %v3039_v21 }
 0x4b1   :  { %v1179_v7 = vpop.permute.xlu0 %1178  ;;  %v1177_v45 = vpop.permute.xlu1 %1176  ;;  %v1901_v10 = vadd.f32 %v1898_v1, %v1894_v2  ;;  %v2102_v2 = vmul.f32 %v2101_v9, %v3023_v54 }
 0x4b2   :  { %v1182_v26 = vsel %vm744_vm14, %v1177_v45, %v1179_v7  ;;  %v2103_v45 = vmul.f32 %v2101_v9, %v3020_v62 }
 0x4b3   :  { %1706 = vrot.lane.b32.xlu0 %v1699_v46, %s2705_s23  ;;  %1708 = vrot.lane.b32.xlu1 %v1700_v4, %s2705_s23  ;;  %v1896_v46 = vmul.f32 %v1893_v35, %v3026_v48  ;;  %v2098_v4 = vmul.f32 %v2097_v53, %v3032_v34  ;;  %v1123_v35 = vsel %vm686_vm12, %v3427_v61, %v3435_v12 }
 0x4b4   :  { %v1128_v39 = vadd.f32 %v1123_v35, %v3185_v13  ;;  %v1187_v5 = vadd.f32 %v1182_v26, %v1157_v28  ;;  %v1722_v35 = vmul.f32 %v1720_v33, %v3029_v22  ;;  %v1725_v28 = vmul.f32 %v1724_v6, %v3023_v54 }
 0x4b5   :  { %v1207_v20 = vpop.permute.xlu0 %1206  ;;  %v3461_v18 = vpop.permute.xlu1 %1180  ;;  %v1903_v59 = vadd.f32 %v1900_v8, %v1896_v46  ;;  %v2105_v11 = vadd.f32 %v2102_v2, %v2098_v4 }
 0x4b7   :  { %1907 = vrot.lane.b32.xlu0 %v1901_v10, %s2704_s19  ;;  %1909 = vrot.lane.b32.xlu1 %v1902_v14, %s2704_s19  ;;  %v2100_v10 = vmul.f32 %v2097_v53, %v3026_v48  ;;  %v1153_v14 = vsel %vm715_vm13, %v1149_v19, %v3443_v55  ;;  %v1183_v53 = vsel %vm744_vm14, %v1179_v7, %v3461_v18 }
 0x4b8   :  { %v2106_v19 = vadd.f32 %v2103_v45, %v2099_v24  ;;  %v1158_v46 = vadd.f32 %v1153_v14, %v1128_v39  ;;  %v1726_v39 = vmul.f32 %v1724_v6, %v3020_v62 }
 0x4b9   :  { %v3480_v1 = vpop.permute.xlu0 %1210  ;;  %v1209_v49 = vpop.permute.xlu1 %1208  ;;  %v2107_v2 = vadd.f32 %v2104_v43, %v2100_v10 }
 0x4ba   :  { %v1212_v61 = vsel %vm773_vm15, %v1207_v20, %v1209_v49  ;;  %v1721_v20 = vmul.f32 %v1720_v33, %v3032_v34  ;;  %v1213_v26 = vsel %vm773_vm15, %v1209_v49, %v3480_v1  ;;  %v1188_v7 = vadd.f32 %v1183_v53, %v1158_v46 }
 0x4bb   :  { %1911 = vrot.lane.b32.xlu0 %v1903_v59, %s2704_s19  ;;  %2111 = vrot.lane.b32.xlu1 %v2105_v11, %s2703_s17  ;;  %v1217_v4 = vadd.f32 %v1212_v61, %v1187_v5  ;;  %v1923_v59 = vstv %s3466_s16  ;;  %v1723_v5 = vmul.f32 %v1720_v33, %v3026_v48  ;;  %v1927_v49 = vstv %s3478_s18  ;;  %s2369_s16 = sshll.u32 %s2715_s15, 4  ;;  %s2370_s16 = int_to_ptr.vmem [resolvable:$true] %s2369_s16 }
 0x4bc   :  { %v1218_v11 = vadd.f32 %v1213_v26, %v1188_v7  ;;  %v1728_v61 = vadd.f32 %v1725_v28, %v1721_v20  ;;  %v1729_v45 = vadd.f32 %v1726_v39, %v1722_v35  ;;  %v1924_v43 = vmul.f32 %v1923_v59, %v3032_v34  ;;  %s2651_s18 = scalar_lea.vmem %s2370_s16, 2048  ;;  %p2656_p8 = scmp.lt.s32.totalorder %s2370_s16, %s2370_s16 }
 0x4bd   :  { %v1239_v8 = vpop.permute.xlu0 %1238  ;;  %v1237_v13 = vpop.permute.xlu1 %1236  ;;  %v1727_v33 = vmul.f32 %v1724_v6, %v3039_v21  ;;  %v1928_v46 = vmul.f32 %v1927_v49, %v3023_v54  ;;  %v1926_v35 = vmul.f32 %v1923_v59, %v3026_v48  ;;  %v2127_v28 = vstv %s3501_s20  ;;  %p2652_p7 = scmp.ne.s32.totalorder %s2370_s16, %s2651_s18  ;;  %p2657_p9 = scmp.lt.s32.totalorder %s2651_s18, %s2651_s18 }
 0x4be   :  { %v1242_v9 = vsel %vm802_vm0, %v1237_v13, %v1239_v8 }
 0x4bf   :  { %v1247_v24 = vadd.f32 %v1242_v9, %v1217_v4  ;;  %2113 = vrot.lane.b32.xlu0 %v2106_v19, %s2703_s17  ;;  %2115 = vrot.lane.b32.xlu1 %v2107_v2, %s2703_s17  ;;  %s3519_s17 = sld [smem:[#allocation3 + $0x2f]]  ;;  %v1931_v13 = vadd.f32 %v1928_v46, %v1924_v43  ;;  %v1925_v2 = vmul.f32 %v1923_v59, %v3029_v22  ;;  %v1320_v59 = vstv %s3506_s21  ;;  %p2658_p10 = por %p2657_p9, %p2656_p8 }
 0x4c0   :  { %v1929_v9 = vmul.f32 %v1927_v49, %v3020_v62 }
 0x4c1   :  { %v1267_v10 = vpop.permute.xlu0 %1266  ;;  %v3514_v14 = vpop.permute.xlu1 %1240  ;;  %p2659_p11 = pnand %p2658_p10, %p2652_p7 }
 0x4c2   :  { %v1243_v53 = vsel %vm802_vm0, %v1239_v8, %v3514_v14  ;;  %v1730_v8 = vadd.f32 %v1727_v33, %v1723_v5  ;;  %v1930_v5 = vmul.f32 %v1927_v49, %v3039_v21  ;;  %v1321_v33 = vmul.f32 %v1320_v59, %v3032_v34 }
 0x4c3   :  { %v1248_v19 = vadd.f32 %v1243_v53, %v1218_v11  ;;  %1734 = vrot.lane.b32.xlu0 %v1728_v61, %s2706_s24  ;;  %1736 = vrot.lane.b32.xlu1 %v1729_v45, %s2706_s24  ;;  %v1324_v11 = vstv %s3510_s22  ;;  %v2128_v53 = vmul.f32 %v2127_v28, %v3032_v34  ;;  %v1323_v49 = vmul.f32 %v1320_v59, %v3026_v48 }
 0x4c4   :  { %v1933_v43 = vadd.f32 %v1930_v5, %v1926_v35  ;;  %v1325_v35 = vmul.f32 %v1324_v11, %v3023_v54  ;;  %v1326_v5 = vmul.f32 %v1324_v11, %v3020_v62 }
 0x4c5   :  { %v3527_v20 = vpop.permute.xlu0 %1270  ;;  %v1269_v4 = vpop.permute.xlu1 %1268 }
 0x4c6   :  { %v1272_v26 = vsel %vm831_vm1, %v1267_v10, %v1269_v4  ;;  %v1273_v6 = vsel %vm831_vm1, %v1269_v4, %v3527_v20  ;;  %v2131_v10 = vstv %s3512_s3  ;;  %v1953_v4 = vstv %s3519_s17 }
 0x4c7   :  { %v3538_v7 = vadd.f32 %v1272_v26, %v1247_v24  ;;  %v3540_v39 = vadd.f32 %v1273_v6, %v1248_v19  ;;  %1738 = vrot.lane.b32.xlu0 %v1730_v8, %s2706_s24  ;;  %1937 = vrot.lane.b32.xlu1 %v1931_v13, %s2705_s23  ;;  %v1932_v24 = vadd.f32 %v1929_v9, %v1925_v2  ;;  %v1957_v9 = vstv %s3525_s4 }
 0x4c8   :  { %v2129_v19 = vmul.f32 %v2127_v28, %v3029_v22  ;;  %v1322_v8 = vmul.f32 %v1320_v59, %v3029_v22  ;;  %v2132_v13 = vmul.f32 %v2131_v10, %v3023_v54  ;;  %v2133_v2 = vmul.f32 %v2131_v10, %v3020_v62 }
 0x4c9   :  { %4119 = vst [vmem:[#allocation69_spill] sm:$0xff] %v3538_v7  ;;  %4120 = vst [vmem:[#allocation70_spill] sm:$0xff] %v3540_v39  ;;  %v1351_v61 = vpop.permute.xlu0 %1350  ;;  %v1353_v45 = vpop.permute.xlu1 %1352  ;;  %v1327_v26 = vmul.f32 %v1324_v11, %v3039_v21  ;;  %v2130_v6 = vmul.f32 %v2127_v28, %v3026_v48  ;;  %v1954_v39 = vmul.f32 %v1953_v4, %v3032_v34 }
 0x4ca   :  { %v1356_v46 = vsel %vm686_vm12, %v1351_v61, %v1353_v45  ;;  %v2134_v42 = vmul.f32 %v2131_v10, %v3039_v21  ;;  %v1328_v28 = vadd.f32 %v1325_v35, %v1321_v33  ;;  %v1329_v63 = vadd.f32 %v1326_v5, %v1322_v8 }
 0x4cb   :  { %1939 = vrot.lane.b32.xlu0 %v1932_v24, %s2705_s23  ;;  %1941 = vrot.lane.b32.xlu1 %v1933_v43, %s2705_s23  ;;  %v2135_v24 = vadd.f32 %v2132_v13, %v2128_v53  ;;  %v2136_v43 = vadd.f32 %v2133_v2, %v2129_v19  ;;  %v1330_v7 = vadd.f32 %v1327_v26, %v1323_v49  ;;  %v1554_v53 = vstv %s3546_s27 }
 0x4cc   :  { %v1958_v11 = vmul.f32 %v1957_v9, %v3023_v54  ;;  %v2137_v13 = vadd.f32 %v2134_v42, %v2130_v6  ;;  %v1955_v49 = vmul.f32 %v1953_v4, %v3029_v22  ;;  %v1361_v10 = vadd.f32 %v1356_v46, %v1328_v28 }
 0x4cd   :  { %v1355_v59 = vpop.permute.xlu0 %1354  ;;  %v1381_v61 = vpop.permute.xlu1 %1380  ;;  %v1956_v35 = vmul.f32 %v1953_v4, %v3026_v48  ;;  %v1959_v42 = vmul.f32 %v1957_v9, %v3020_v62  ;;  %v1089_v46 = vmul.f32 %v3159_v15, %v3026_v48  ;;  %v1555_v4 = vmul.f32 %v1554_v53, %v3032_v34 }
 0x4ce   :  { %v1357_v58 = vsel %vm686_vm12, %v1353_v45, %v1355_v59  ;;  %v1363_v19 = vadd.f32 %v1355_v59, %v1330_v7  ;;  %v2157_v45 = vstv %s3550_s28  ;;  %v1961_v8 = vadd.f32 %v1958_v11, %v1954_v39 }
 0x4cf   :  { %2141 = vrot.lane.b32.xlu0 %v2135_v24, %s2704_s19  ;;  %2143 = vrot.lane.b32.xlu1 %v2136_v43, %s2704_s19  ;;  %v1362_v2 = vadd.f32 %v1357_v58, %v1329_v63  ;;  %v1960_v58 = vmul.f32 %v1957_v9, %v3039_v21  ;;  %v2161_v63 = vstv %s3563_s29  ;;  %v855_v39 = vmul.f32 %v3115_v23, %v3026_v48 }
 0x4d0   :  { %v2187_v59 = vstv %s3569_s30  ;;  %v1962_v11 = vadd.f32 %v1959_v42, %v1955_v49  ;;  %v859_v9 = vmul.f32 %v3121_v27, %v3039_v21  ;;  %v1093_v23 = vmul.f32 %v3161_v25, %v3039_v21 }
 0x4d1   :  { %v1383_v26 = vpop.permute.xlu0 %1382  ;;  %v1385_v33 = vpop.permute.xlu1 %1384  ;;  %v1559_v15 = vmul.f32 %v3576_v32, %v3023_v54  ;;  %v2162_v49 = vmul.f32 %v2161_v63, %v3023_v54  ;;  %v1557_v38 = vmul.f32 %v1554_v53, %v3026_v48 }
 0x4d2   :  { %v1386_v5 = vsel %vm715_vm13, %v1381_v61, %v1383_v26  ;;  %v1387_v24 = vsel %vm715_vm13, %v1383_v26, %v1385_v33  ;;  %v3589_v43 = vadd.f32 %v1385_v33, %v1363_v19  ;;  %v1963_v19 = vadd.f32 %v1960_v58, %v1956_v35 }
 0x4d3   :  { %v1391_v7 = vadd.f32 %v1386_v5, %v1361_v10  ;;  %v1392_v6 = vadd.f32 %v1387_v24, %v1362_v2  ;;  %2145 = vrot.lane.b32.xlu0 %v2137_v13, %s2704_s19  ;;  %1967 = vrot.lane.b32.xlu1 %v1961_v8, %s2706_s24  ;;  %v2158_v13 = vmul.f32 %v2157_v45, %v3032_v34  ;;  %v2191_v33 = vstv %s3582_s6  ;;  %s2707_s19 = smov 6  }
 0x4d4   :  { %v2159_v10 = vmul.f32 %v2157_v45, %v3029_v22  ;;  %v2163_v26 = vmul.f32 %v2161_v63, %v3020_v62  ;;  %v862_v8 = vadd.f32 %v859_v9, %v855_v39  ;;  %v1096_v35 = vadd.f32 %v1093_v23, %v1089_v46 }
 0x4d5   :  { %v1585_v61 = vpop.permute.xlu0 %1584  ;;  %v1587_v28 = vpop.permute.xlu1 %1586  ;;  %v1562_v27 = vadd.f32 %v1559_v15, %v1555_v4  ;;  %v1556_v5 = vmul.f32 %v1554_v53, %v3029_v22  ;;  %v2165_v42 = vadd.f32 %v2162_v49, %v2158_v13  ;;  %v2164_v4 = vmul.f32 %v2161_v63, %v3039_v21 }
 0x4d6   :  { %v1590_v2 = vsel %vm686_vm12, %v1585_v61, %v1587_v28  ;;  %v2166_v58 = vadd.f32 %v2163_v26, %v2159_v10  ;;  %v2160_v61 = vmul.f32 %v2157_v45, %v3026_v48  ;;  %v1129_v46 = vadd.f32 %v3435_v12, %v1096_v35 }
 0x4d7   :  { %1969 = vrot.lane.b32.xlu0 %v1962_v11, %s2706_s24  ;;  %1971 = vrot.lane.b32.xlu1 %v1963_v19, %s2706_s24  ;;  %v2188_v11 = vmul.f32 %v2187_v59, %v3032_v34  ;;  %v895_v19 = vadd.f32 %v3347_v50, %v862_v8  ;;  %v2192_v45 = vmul.f32 %v2191_v33, %v3023_v54 }
 0x4d8   :  { %v2189_v10 = vmul.f32 %v2187_v59, %v3029_v22  ;;  %v2193_v53 = vmul.f32 %v2191_v33, %v3020_v62  ;;  %v2190_v9 = vmul.f32 %v2187_v59, %v3026_v48  ;;  %v2167_v15 = vadd.f32 %v2164_v4, %v2160_v61 }
 0x4d9   :  { %v1589_v25 = vpop.permute.xlu0 %1588  ;;  %v1411_v24 = vpop.permute.xlu1 %1410  ;;  %v925_v13 = vadd.f32 %v3359_v57, %v895_v19  ;;  %v2195_v49 = vadd.f32 %v2192_v45, %v2188_v11  ;;  %v2194_v26 = vmul.f32 %v2191_v33, %v3039_v21  ;;  %v1561_v33 = vmul.f32 %v3576_v32, %v3039_v21 }
 0x4da   :  { %v1591_v39 = vsel %vm686_vm12, %v1587_v28, %v1589_v25  ;;  %v1159_v28 = vadd.f32 %v3443_v55, %v1129_v46  ;;  %v1563_v61 = vadd.f32 %v1560_v16, %v1556_v5  ;;  %v2196_v11 = vadd.f32 %v2193_v53, %v2189_v10 }
 0x4db   :  { %2171 = vrot.lane.b32.xlu0 %v2165_v42, %s2705_s23  ;;  %2173 = vrot.lane.b32.xlu1 %v2166_v58, %s2705_s23  ;;  %v955_v63 = vadd.f32 %v3377_v0, %v925_v13  ;;  %v2217_v42 = vsub.s32 6, %v2873_v47  ;;  %v1595_v46 = vadd.f32 %v1590_v2, %v1562_v27  ;;  %v2197_v13 = vadd.f32 %v2194_v26, %v2190_v9 }
 0x4dc   :  { %v1189_v59 = vadd.f32 %v3461_v18, %v1159_v28  ;;  %v1564_v18 = vadd.f32 %v1561_v33, %v1557_v38  ;;  %v1596_v10 = vadd.f32 %v1591_v39, %v1563_v61 }
 0x4dd   :  { %v1413_v23 = vpop.permute.xlu0 %1412  ;;  %v3634_v12 = vpop.permute.xlu1 %1414 }
 0x4de   :  { %v1416_v8 = vsel %vm744_vm14, %v1411_v24, %v1413_v23  ;;  %v1417_v35 = vsel %vm744_vm14, %v1413_v23, %v3634_v12  ;;  %v985_v24 = vadd.f32 %v3389_v3, %v955_v63  ;;  %v1219_v19 = vadd.f32 %v3480_v1, %v1189_v59  ;;  %v3653_v23 = vld [vmem:[#allocation10 + $0x8] sm:$0x7f] }
 0x4df   :  { %v1421_v58 = vadd.f32 %v1416_v8, %v1391_v7  ;;  %v1422_v55 = vadd.f32 %v1417_v35, %v1392_v6  ;;  %2175 = vrot.lane.b32.xlu0 %v2167_v15, %s2705_s23  ;;  %2201 = vrot.lane.b32.xlu1 %v2195_v49, %s2706_s24  ;;  %v3650_v6 = vld [vmem:[#allocation10] sm:$0x7f]  ;;  %4122 = vst [vmem:[#allocation72_spill] sm:$0xff] %v3653_v23  ;;  %s2456_s23 = sld [smem:[#allocation3 + $0x5]] }
 0x4e0   :  { %4121 = vst [vmem:[#allocation71_spill] sm:$0xff] %v3650_v6  ;;  %v2218_v28 = vrot.slane %v3650_v6, %v2217_v42  ;;  %v2222_v16 = vrot.slane %v3653_v23, %v2217_v42  ;;  %v1015_v32 = vadd.f32 %v3407_v60, %v985_v24  ;;  %v1249_v5 = vadd.f32 %v3514_v14, %v1219_v19 }
 0x4e1   :  { %v1615_v4 = vpop.permute.xlu0 %1614  ;;  %v1617_v45 = vpop.permute.xlu1 %1616  ;;  %v1597_v38 = vadd.f32 %v1589_v25, %v1564_v18 }
 0x4e2   :  { %v1620_v7 = vsel %vm715_vm13, %v1615_v4, %v1617_v45  ;;  %v1045_v2 = vadd.f32 %v3419_v29, %v1015_v32  ;;  %v1279_v27 = vadd.f32 %v3527_v20, %v1249_v5 }
 0x4e3   :  { %v1625_v1 = vadd.f32 %v1620_v7, %v1595_v46  ;;  %2203 = vrot.lane.b32.xlu0 %v2196_v11, %s2706_s24  ;;  %2205 = vrot.lane.b32.xlu1 %v2197_v13, %s2706_s24  ;;  %s2457_s24 = sld [smem:[#allocation3 + $0x36]] }
 0x4e4   :  { %v1067_v14 = vmul.f32 %v2903_v37, %v1045_v2  ;;  %v1301_v25 = vmul.f32 %v2909_v40, %v1279_v27 }
 0x4e5   :  { %v1619_v53 = vpop.permute.xlu0 %1618  ;;  %v1818_v9 = vpop.permute.xlu1 %1817  ;;  %v1787_v61 = vstv %s2456_s23 }
 0x4e6   :  { %v1621_v15 = vsel %vm715_vm13, %v1617_v45, %v1619_v53  ;;  %v3663_v49 = vadd.f32 %v1619_v53, %v1597_v38  ;;  %v1788_v4 = vmul.f32 %v1787_v61, %v3032_v34  ;;  %v1789_v5 = vmul.f32 %v1787_v61, %v3029_v22 }
 0x4e7   :  { %v1626_v26 = vadd.f32 %v1621_v15, %v1596_v10  ;;  %2225 = vrot.lane.b32.xlu0 %v2218_v28, %s2707_s19  ;;  %2227 = vrot.lane.b32.xlu1 %v2222_v16, %s2707_s19  ;;  %v1790_v28 = vmul.f32 %v1787_v61, %v3026_v48 }
 0x4e9   :  { %v1820_v63 = vpop.permute.xlu0 %1819  ;;  %v1822_v8 = vpop.permute.xlu1 %1821  ;;  %v1791_v19 = vstv %s2457_s24 }
 0x4ea   :  { %v1823_v20 = vsel %vm686_vm12, %v1818_v9, %v1820_v63  ;;  %v1824_v39 = vsel %vm686_vm12, %v1820_v63, %v1822_v8  ;;  %v1792_v13 = vmul.f32 %v1791_v19, %v3023_v54  ;;  %v1793_v10 = vmul.f32 %v1791_v19, %v3020_v62 }
 0x4eb   :  { %1075 = vrot.lane.b32.xlu0 %v1067_v14, %s2708_s12  ;;  %1309 = vrot.lane.b32.xlu1 %v1301_v25, %s2709_s7 }
 0x4ec   :  { %v1795_v32 = vadd.f32 %v1792_v13, %v1788_v4  ;;  %v1796_v25 = vadd.f32 %v1793_v10, %v1789_v5 }
 0x4ed   :  { %v1441_v35 = vpop.permute.xlu0 %1440  ;;  %v1443_v42 = vpop.permute.xlu1 %1442 }
 0x4ee   :  { %v1446_v59 = vsel %vm773_vm15, %v1441_v35, %v1443_v42  ;;  %v1828_v27 = vadd.f32 %v1823_v20, %v1795_v32 }
 0x4ef   :  { %v1451_v33 = vadd.f32 %v1446_v59, %v1421_v58 }
 0x4f1   :  { %v1445_v11 = vpop.permute.xlu0 %1444  ;;  %v1645_v24 = vpop.permute.xlu1 %1644 }
 0x4f2   :  { %v1447_v46 = vsel %vm773_vm15, %v1443_v42, %v1445_v11  ;;  %v1829_v42 = vadd.f32 %v1824_v39, %v1796_v25 }
 0x4f3   :  { %v3674_v45 = vadd.f32 %v1447_v46, %v1422_v55  ;;  %v1794_v55 = vmul.f32 %v1791_v19, %v3039_v21 }
 0x4f5   :  { %v1647_v18 = vpop.permute.xlu0 %1646  ;;  %v3677_v7 = vpop.permute.xlu1 %1648  ;;  %v1797_v15 = vadd.f32 %v1794_v55, %v1790_v28 }
 0x4f6   :  { %v1650_v16 = vsel %vm744_vm14, %v1645_v24, %v1647_v18  ;;  %v1651_v58 = vsel %vm744_vm14, %v1647_v18, %v3677_v7  ;;  %v1657_v6 = vadd.f32 %v3677_v7, %v3663_v49  ;;  %v1039_v49 = vsel %vm831_vm1, %v3417_v30, %v3419_v29 }
 0x4f7   :  { %v3684_v38 = vadd.f32 %v1650_v16, %v1625_v1  ;;  %v1656_v2 = vadd.f32 %v1651_v58, %v1626_v26  ;;  %v1830_v35 = vadd.f32 %v1822_v8, %v1797_v15 }
 0x4f9   :  { %v1848_v53 = vpop.permute.xlu0 %1847  ;;  %v1850_v9 = vpop.permute.xlu1 %1849 }
 0x4fa   :  { %v1853_v14 = vsel %vm715_vm13, %v1848_v53, %v1850_v9 }
 0x4fb   :  { %v1858_v63 = vadd.f32 %v1853_v14, %v1828_v27 }
 0x4fd   :  { %v1852_v59 = vpop.permute.xlu0 %1851  ;;  %v2052_v24 = vpop.permute.xlu1 %2051 }
 0x4fe   :  { %v1854_v1 = vsel %vm715_vm13, %v1850_v9, %v1852_v59  ;;  %v3690_v61 = vadd.f32 %v1852_v59, %v1830_v35 }
 0x4ff   :  { %v3692_v26 = vadd.f32 %v1854_v1, %v1829_v42 }
 0x501   :  { %v2054_v20 = vpop.permute.xlu0 %2053  ;;  %v3694_v46 = vpop.permute.xlu1 %2055 }
 0x502   :  { %v3697_v19 = vsel %vm686_vm12, %v2052_v24, %v2054_v20  ;;  %v3701_v4 = vsel %vm686_vm12, %v2054_v20, %v3694_v46 }
 0x503   :  { %4123 = vst [vmem:[#allocation73_spill] sm:$0xff] %v3701_v4 }
 0x505   :  { %v1471_v8 = vpop.permute.xlu0 %1470  ;;  %v3703_v39 = vpop.permute.xlu1 %1472 }
 0x506   :  { %v1476_v13 = vsel %vm802_vm0, %v1471_v8, %v3703_v39 }
 0x507   :  { %v3707_v18 = vadd.f32 %v1476_v13, %v1451_v33 }
 0x509   :  { %v3709_v28 = vpop.permute.xlu0 %1474  ;;  %v3711_v16 = vpop.permute.xlu1 %1674 }
 0x50d   :  { %v3713_v58 = vpop.permute.xlu0 %1676  ;;  %v1679_v32 = vpop.permute.xlu1 %1678 }
 0x50e   :  { %v1681_v5 = vsel %vm773_vm15, %v3713_v58, %v1679_v32  ;;  %v1687_v4 = vadd.f32 %v1679_v32, %v1657_v6 }
 0x50f   :  { %v3717_v55 = vadd.f32 %v1681_v5, %v1656_v2  ;;  %v1423_v2 = vadd.f32 %v3634_v12, %v3589_v43 }
 0x511   :  { %v1878_v27 = vpop.permute.xlu0 %1877  ;;  %v3719_v10 = vpop.permute.xlu1 %1879  ;;  %v1453_v59 = vadd.f32 %v1445_v11, %v1423_v2  ;;  %v919_v2 = vsel %vm715_vm13, %v3357_v51, %v3359_v57 }
 0x512   :  { %v1883_v53 = vsel %vm744_vm14, %v1878_v27, %v3719_v10 }
 0x513   :  { %v3723_v33 = vadd.f32 %v1883_v53, %v1858_v63  ;;  %v1483_v24 = vadd.f32 %v3709_v28, %v1453_v59  ;;  %v889_v53 = vsel %vm686_vm12, %v3339_v52, %v3347_v50  ;;  %v979_v50 = vsel %vm773_vm15, %v3387_v17, %v3389_v3 }
 0x515   :  { %4124 = vst [vmem:[#allocation74_spill] sm:$0xff] %v3723_v33  ;;  %v3725_v9 = vpop.permute.xlu0 %1881  ;;  %v3727_v15 = vpop.permute.xlu1 %2081 }
 0x519   :  { %v3729_v14 = vpop.permute.xlu0 %2083  ;;  %v3731_v25 = vpop.permute.xlu1 %2085 }
 0x51d   :  { %v3735_v35 = vpop.permute.xlu0 %1500  ;;  %v3737_v42 = vpop.permute.xlu1 %1502 }
 0x521   :  { %v1505_v63 = vpop.permute.xlu0 %1504  ;;  %v1705_v1 = vpop.permute.xlu1 %1704 }
 0x522   :  { %v1513_v20 = vadd.f32 %v1505_v63, %v1483_v24 }
 0x524   :  { %v1535_v8 = vmul.f32 %v2911_v41, %v1513_v20  ;;  %v894_v20 = vadd.f32 %v889_v53, %v3145_v36  ;;  %v1009_v36 = vsel %vm802_vm0, %v3399_v56, %v3407_v60 }
 0x525   :  { %v3741_v13 = vpop.permute.xlu0 %1706  ;;  %v3743_v5 = vpop.permute.xlu1 %1708 }
 0x526   :  { %1543 = vrot.lane.b32.xlu0 %v1535_v8, %s2710_s8  ;;  %v949_v8 = vsel %vm744_vm14, %v3369_v31, %v3377_v0  ;;  %v924_v47 = vadd.f32 %v919_v2, %v894_v20  ;;  %v1717_v0 = vadd.f32 %v3743_v5, %v1687_v4  ;;  %v4126_v20 = vld [vmem:[#allocation21_spill] sm:$0xff] }
 0x528   :  { %v954_v33 = vadd.f32 %v949_v8, %v924_v47  ;;  %v1061_v8 = vsel %vm1060_vm2, %v4126_v20, %v2903_v37 }
 0x529   :  { %v3746_v43 = vpop.permute.xlu0 %1907  ;;  %v3748_v12 = vpop.permute.xlu1 %1909 }
 0x52a   :  { %v984_v53 = vadd.f32 %v979_v50, %v954_v33  ;;  %v4125_v33 = vld [vmem:[#allocation63_spill] sm:$0xff]  ;;  %v1477_v50 = vsel %vm802_vm0, %v3703_v39, %v3709_v28 }
 0x52b   :  { %v888_v29 = vsel %vm686_vm12, %v4125_v33, %v3339_v52  ;;  %v1680_v52 = vsel %vm773_vm15, %v3711_v16, %v3713_v58  ;;  %v4129_v39 = vld [vmem:[#allocation23_spill] sm:$0xff]  ;;  %v4130_v33 = vld [vmem:[#allocation65_spill] sm:$0xff]  ;;  %v4131_v58 = vld [vmem:[#allocation66_spill] sm:$0xff] }
 0x52c   :  { %v1014_v3 = vadd.f32 %v1009_v36, %v984_v53  ;;  %v4127_v36 = vld [vmem:[#allocation64_spill] sm:$0xff]  ;;  %v1529_v28 = vsel %vm1528_vm3, %v4129_v39, %v2911_v41  ;;  %v1710_v41 = vsel %vm802_vm0, %v1705_v1, %v3741_v13 }
 0x52d   :  { %v3750_v27 = vpop.permute.xlu0 %1911  ;;  %v3752_v11 = vpop.permute.xlu1 %2111  ;;  %v918_v53 = vsel %vm715_vm13, %v4127_v36, %v3357_v51  ;;  %v948_v51 = vsel %vm744_vm14, %v4130_v33, %v3369_v31  ;;  %v4132_v36 = vld [vmem:[#allocation69_spill] sm:$0xff]  ;;  %v1685_v33 = vadd.f32 %v1680_v52, %v3684_v38 }
 0x52e   :  { %v1044_v6 = vadd.f32 %v1039_v49, %v1014_v3  ;;  %v4128_v49 = vld [vmem:[#allocation44_spill] sm:$0xff] }
 0x52f   :  { %v893_v3 = vadd.f32 %v888_v29, %v4128_v49  ;;  %v1482_v29 = vadd.f32 %v1477_v50, %v3674_v45  ;;  %v4133_v49 = vld [vmem:[#allocation22_spill] sm:$0xff]  ;;  %v1890_v45 = vadd.f32 %v3725_v9, %v3690_v61 }
 0x530   :  { %v1299_v31 = vmul.f32 %v4133_v49, %v4132_v36 }
 0x531   :  { %v3760_v59 = vpop.permute.xlu0 %2113  ;;  %v3762_v24 = vpop.permute.xlu1 %2115  ;;  %v923_v16 = vadd.f32 %v918_v53, %v893_v3  ;;  %v1920_v52 = vadd.f32 %v3750_v27, %v1890_v45 }
 0x533   :  { %v953_v53 = vadd.f32 %v948_v51, %v923_v16  ;;  %v4135_v51 = vld [vmem:[#allocation68_spill] sm:$0xff] }
 0x535   :  { %v1735_v23 = vpop.permute.xlu0 %1734  ;;  %v3773_v57 = vpop.permute.xlu1 %1736 }
 0x539   :  { %v3782_v7 = vpop.permute.xlu0 %1738  ;;  %v3784_v2 = vpop.permute.xlu1 %1937 }
 0x53a   :  { %v1747_v47 = vadd.f32 %v3782_v7, %v1717_v0  ;;  %v1066_v0 = vmul.f32 %v1061_v8, %v1044_v6  ;;  %v2021_v6 = vstv %s2470_s9  ;;  %v1884_v8 = vsel %vm744_vm14, %v3719_v10, %v3725_v9 }
 0x53b   :  { %v1740_v10 = vsel %vm831_vm1, %v1735_v23, %v3773_v57  ;;  %v1889_v61 = vadd.f32 %v1884_v8, %v3692_v26  ;;  %v1715_v9 = vadd.f32 %v1710_v41, %v1685_v33  ;;  %v1038_v23 = vsel %vm831_vm1, %v4135_v51, %v3417_v30 }
 0x53c   :  { %v1768_v32 = vmul.f32 %v2917_v44, %v1747_v47  ;;  %v1507_v47 = vsel %vm831_vm1, %v3737_v42, %v1505_v63  ;;  %v978_v63 = vsel %vm773_vm15, %v4131_v58, %v3387_v17  ;;  %v1914_v17 = vsel %vm773_vm15, %v3748_v12, %v3750_v27  ;;  %v4134_v58 = vld [vmem:[#allocation67_spill] sm:$0xff] }
 0x53d   :  { %v3788_v60 = vpop.permute.xlu0 %1939  ;;  %v1942_v4 = vpop.permute.xlu1 %1941  ;;  %v1512_v50 = vadd.f32 %v1507_v47, %v1482_v29  ;;  %v1008_v38 = vsel %vm802_vm0, %v4134_v58, %v3399_v56  ;;  %v983_v47 = vadd.f32 %v978_v63, %v953_v53  ;;  %v2022_v29 = vmul.f32 %v2021_v6, %v3032_v34 }
 0x53e   :  { %1776 = vrot.lane.b32.xlu1 %v1768_v32, %s2711_s0  ;;  %v1944_v16 = vsel %vm802_vm0, %v3788_v60, %v1942_v4  ;;  %v1919_v44 = vadd.f32 %v1914_v17, %v1889_v61  ;;  %v1745_v56 = vadd.f32 %v1740_v10, %v1715_v9  ;;  %v1950_v58 = vadd.f32 %v1942_v4, %v1920_v52  ;;  %v4137_v10 = vld [vmem:[#allocation27_spill] sm:$0xff] }
 0x53f   :  { %v1534_v36 = vmul.f32 %v1529_v28, %v1512_v50  ;;  %v1013_v26 = vadd.f32 %v1008_v38, %v983_v47  ;;  %v2024_v28 = vmul.f32 %v2021_v6, %v3026_v48  ;;  %v2087_v4 = vsel %vm715_vm13, %v3727_v15, %v3729_v14  ;;  %v4136_v50 = vld [vmem:[#allocation24_spill] sm:$0xff]  ;;  %v4138_v15 = vld [vmem:[#allocation26_spill] sm:$0xff] }
 0x540   :  { %v1949_v63 = vadd.f32 %v1944_v16, %v1919_v44  ;;  %v1766_v53 = vmul.f32 %v4136_v50, %v1745_v56  ;;  %v2117_v48 = vsel %vm744_vm14, %v3752_v11, %v3760_v59  ;;  %v1996_v47 = vsel %vm1995_vm4, %v4138_v15, %v4137_v10 }
 0x541   :  { %v3808_v37 = vpop.permute.xlu0 %2141  ;;  %v3810_v32 = vpop.permute.xlu1 %2143  ;;  %v1043_v33 = vadd.f32 %v1038_v23, %v1013_v26  ;;  %v2023_v11 = vmul.f32 %v2021_v6, %v3029_v22  ;;  %v1506_v16 = vsel %vm831_vm1, %v3735_v35, %v3737_v42  ;;  %v1711_v35 = vsel %vm802_vm0, %v3741_v13, %v3743_v5 }
 0x542   :  { %1073 = vrot.lane.b32.xlu1 %v1066_v0, %s2708_s12  ;;  %v2025_v0 = vstv %s2471_s10  ;;  %v1716_v13 = vadd.f32 %v1711_v35, %v3717_v55  ;;  %v4141_v55 = vld [vmem:[#allocation74_spill] sm:$0xff] }
 0x543   :  { %v2026_v8 = vmul.f32 %v2025_v0, %v3023_v54  ;;  %v2028_v52 = vmul.f32 %v2025_v0, %v3039_v21  ;;  %v1065_v51 = vmul.f32 %v4126_v20, %v1043_v33  ;;  %v2147_v21 = vsel %vm773_vm15, %v3808_v37, %v3810_v32 }
 0x544   :  { %v1295_v37 = vsel %vm1294_vm5, %v4133_v49, %v2909_v40  ;;  %v2027_v6 = vmul.f32 %v2025_v0, %v3020_v62  ;;  %v1741_v40 = vsel %vm831_vm1, %v3773_v57, %v3782_v7 }
 0x545   :  { %v3837_v3 = vpop.permute.xlu0 %2145  ;;  %v3839_v1 = vpop.permute.xlu1 %1967  ;;  %v2029_v45 = vadd.f32 %v2026_v8, %v2022_v29  ;;  %v2031_v23 = vadd.f32 %v2028_v52, %v2024_v28  ;;  %v4139_v8 = vld [vmem:[#allocation70_spill] sm:$0xff] }
 0x546   :  { %1305 = vrot.lane.b32.xlu1 %v1299_v31, %s2709_s7  ;;  %v2148_v52 = vsel %vm773_vm15, %v3810_v32, %v3837_v3 }
 0x547   :  { %v2062_v38 = vadd.f32 %v3697_v19, %v2029_v45  ;;  %v2064_v26 = vadd.f32 %v3694_v46, %v2031_v23  ;;  %v1300_v46 = vmul.f32 %v1295_v37, %v4139_v8  ;;  %v4144_v37 = vld [vmem:[#allocation46_spill] sm:$0xff] }
 0x548   :  { %v4145_v8 = vld [vmem:[#allocation50_spill] sm:$0xff] }
 0x549   :  { %v3854_v27 = vpop.permute.xlu0 %1969  ;;  %v1972_v41 = vpop.permute.xlu1 %1971  ;;  %v2092_v19 = vadd.f32 %v2087_v4, %v2062_v38 }
 0x54a   :  { %v1974_v31 = vsel %vm831_vm1, %v3854_v27, %v1972_v41  ;;  %v1980_v30 = vadd.f32 %v1972_v41, %v1950_v58  ;;  %1541 = vrot.lane.b32.xlu1 %v1534_v36, %s2710_s8  ;;  %v2094_v41 = vadd.f32 %v3731_v25, %v2064_v26 }
 0x54b   :  { %v1979_v17 = vadd.f32 %v1974_v31, %v1949_v63  ;;  %v2122_v36 = vadd.f32 %v2117_v48, %v2092_v19  ;;  %v1511_v63 = vadd.f32 %v1506_v16, %v3707_v18  ;;  %v2030_v31 = vadd.f32 %v2027_v6, %v2023_v11  ;;  %v4140_v18 = vld [vmem:[#allocation73_spill] sm:$0xff] }
 0x54c   :  { %v2002_v44 = vmul.f32 %v4137_v10, %v1980_v30  ;;  %v1913_v30 = vsel %vm773_vm15, %v3746_v43, %v3748_v12  ;;  %v2124_v5 = vadd.f32 %v3762_v24, %v2094_v41  ;;  %v2088_v43 = vsel %vm715_vm13, %v3729_v14, %v3731_v25 }
 0x54d   :  { %v2172_v61 = vpop.permute.xlu0 %2171  ;;  %v3866_v9 = vpop.permute.xlu1 %2173  ;;  %v2001_v29 = vmul.f32 %v1996_v47, %v1979_v17  ;;  %v2152_v42 = vadd.f32 %v2147_v21, %v2122_v36  ;;  %v2063_v28 = vadd.f32 %v4140_v18, %v2030_v31  ;;  %v1943_v12 = vsel %vm802_vm0, %v3784_v2, %v3788_v60  ;;  %v4151_v18 = vld [vmem:[#allocation56_spill] sm:$0xff] }
 0x54e   :  { %1772 = vrot.lane.b32.xlu1 %v1766_v53, %s2711_s0  ;;  %2010 = vrot.lane.b32.xlu0 %v2002_v44, %s2712_s11  ;;  %v2177_v20 = vsel %vm802_vm0, %v2172_v61, %v3866_v9  ;;  %v1533_v7 = vmul.f32 %v4129_v39, %v1511_v63  ;;  %v1918_v4 = vadd.f32 %v1913_v30, %v4141_v55  ;;  %v4142_v39 = vld [vmem:[#allocation25_spill] sm:$0xff]  ;;  %v654_v16 = vstv %s652_s1 }
 0x54f   :  { %v2182_v49 = vadd.f32 %v2177_v20, %v2152_v42  ;;  %v1746_v53 = vadd.f32 %v1741_v40, %v1716_v13  ;;  %v2154_v17 = vadd.f32 %v3837_v3, %v2124_v5  ;;  %v2118_v10 = vsel %vm744_vm14, %v3760_v59, %v3762_v24  ;;  %v4143_v20 = vld [vmem:[#allocation47_spill] sm:$0xff]  ;;  %v4147_v40 = vld [vmem:[#allocation45_spill] sm:$0xff]  ;;  %v4150_v5 = vld [vmem:[#allocation48_spill] sm:$0xff] }
 0x550   :  { %v1973_v14 = vsel %vm831_vm1, %v3839_v1, %v3854_v27  ;;  %v2093_v44 = vadd.f32 %v2088_v43, %v2063_v28  ;;  %v1948_v38 = vadd.f32 %v1943_v12, %v1918_v4  ;;  %v1762_v61 = vsel %vm337_vm10, %v4136_v50, %v4142_v39  ;;  %v4152_v28 = vld [vmem:[#allocation55_spill] sm:$0xff] }
 0x551   :  { %v2176_v56 = vpop.permute.xlu0 %2175  ;;  %v2202_v58 = vpop.permute.xlu1 %2201  ;;  %v1767_v48 = vmul.f32 %v1762_v61, %v1746_v53  ;;  %v657_v36 = vstv %s2387_s14  ;;  %v688_v6 = vsel %vm686_vm12, %v4144_v37, %v4143_v20  ;;  %v655_v35 = vmul.f32 %v654_v16, %v3032_v34  ;;  %v4154_v4 = vld [vmem:[#allocation59_spill] sm:$0xff]  ;;  %v4155_v53 = vld [vmem:[#allocation58_spill] sm:$0xff] }
 0x552   :  { %1071 = vrot.lane.b32.xlu0 %v1065_v51, %s2708_s12  ;;  %2008 = vrot.lane.b32.xlu1 %v2001_v29, %s2712_s11  ;;  %v2184_v2 = vadd.f32 %v2176_v56, %v2154_v17  ;;  %v2123_v24 = vadd.f32 %v2118_v10, %v2093_v44  ;;  %v1978_v47 = vadd.f32 %v1973_v14, %v1948_v38  ;;  %v4156_v44 = vld [vmem:[#allocation54_spill] sm:$0xff]  ;;  %vm1778_vm10 = vcmask 1014784  }
 0x553   :  { %v2178_v27 = vsel %vm802_vm0, %v3866_v9, %v2176_v56  ;;  %v656_v56 = vmul.f32 %v654_v16, %v3029_v22  ;;  %v658_v63 = vmul.f32 %v657_v36, %v3023_v54  ;;  %v775_v54 = vsel %vm773_vm15, %v4152_v28, %v4151_v18 }
 0x554   :  { %v2153_v19 = vadd.f32 %v2148_v52, %v2123_v24  ;;  %v2000_v23 = vmul.f32 %v4138_v15, %v1978_v47  ;;  %v659_v15 = vmul.f32 %v657_v36, %v3020_v62  ;;  %v687_v62 = vsel %vm686_vm12, %v4147_v40, %v4144_v37  ;;  %v4159_v24 = vld [vmem:[#allocation57_spill] sm:$0xff] }
 0x555   :  { %v2204_v0 = vpop.permute.xlu0 %2203  ;;  %v2206_v33 = vpop.permute.xlu1 %2205  ;;  %v660_v13 = vadd.f32 %v658_v63, %v655_v35  ;;  %v804_v17 = vsel %vm802_vm0, %v4155_v53, %v4154_v4  ;;  %v774_v38 = vsel %vm773_vm15, %v4156_v44, %v4152_v28  ;;  %vm2246_vm12 = vcmask 998400  }
 0x556   :  { %v2207_v45 = vsel %vm831_vm1, %v2202_v58, %v2204_v0  ;;  %1307 = vrot.lane.b32.xlu0 %v1300_v46, %s2709_s7  ;;  %v2214_v1 = vadd.f32 %v2206_v33, %v2184_v2  ;;  %v2208_v50 = vsel %vm831_vm1, %v2204_v0, %v2206_v33  ;;  %v2183_v32 = vadd.f32 %v2178_v27, %v2153_v19  ;;  %v4146_v46 = vld [vmem:[#allocation49_spill] sm:$0xff]  ;;  %v4149_v0 = vld [vmem:[#allocation52_spill] sm:$0xff]  ;;  %v4157_v2 = vld [vmem:[#allocation62_spill] sm:$0xff] }
 0x557   :  { %v2212_v57 = vadd.f32 %v2207_v45, %v2182_v49  ;;  %v661_v42 = vadd.f32 %v659_v15, %v656_v56  ;;  %v717_v41 = vsel %vm715_vm13, %v4146_v46, %v4145_v8  ;;  %v4148_v49 = vld [vmem:[#allocation53_spill] sm:$0xff]  ;;  %v716_v45 = vsel %vm715_vm13, %v4150_v5, %v4146_v46  ;;  %v4160_v27 = vld [vmem:[#allocation20_spill] sm:$0xff]  ;;  %v4163_v56 = vld [vmem:[#allocation71_spill] sm:$0xff] }
 0x558   :  { %v2213_v21 = vadd.f32 %v2208_v50, %v2183_v32  ;;  %v746_v33 = vsel %vm744_vm14, %v4149_v0, %v4148_v49  ;;  %v691_v43 = vadd.f32 %v687_v62, %v660_v13  ;;  %v4161_v19 = vld [vmem:[#allocation72_spill] sm:$0xff]  ;;  %v841_v15 = vrot.slane %v4163_v56, %v4160_v27 }
 0x559   :  { %v2226_v25 = vpop.permute.xlu0 %2225  ;;  %v2228_v59 = vpop.permute.xlu1 %2227  ;;  %v692_v31 = vadd.f32 %v688_v6, %v661_v42  ;;  %v4162_v50 = vld [vmem:[#allocation60_spill] sm:$0xff] }
 0x55a   :  { %v2234_v60 = vmul.f32 %v2226_v25, %v2212_v57  ;;  %1539 = vrot.lane.b32.xlu0 %v1533_v7, %s2710_s8  ;;  %v2236_v51 = vmul.f32 %v2228_v59, %v2214_v1  ;;  %v2230_v3 = vsel %vm2229_vm6, %v2226_v25, %v2228_v59  ;;  %v4153_v7 = vld [vmem:[#allocation51_spill] sm:$0xff]  ;;  %v720_v10 = vadd.f32 %v716_v45, %v691_v43 }
 0x55b   :  { %v2235_v29 = vmul.f32 %v2230_v3, %v2213_v21  ;;  %v721_v34 = vadd.f32 %v717_v41, %v692_v31  ;;  %v745_v55 = vsel %vm744_vm14, %v4153_v7, %v4149_v0 }
 0x55c   :  { %2240 = vrot.lane.b32.xlu1 %v2234_v60, %s2713_s13  ;;  %v4158_v60 = vld [vmem:[#allocation61_spill] sm:$0xff]  ;;  %v749_v61 = vadd.f32 %v745_v55, %v720_v10 }
 0x55d   :  { %v1310_v11 = vpop.permute.xlu1 %1309  ;;  %v1076_v26 = vpop.permute.xlu0 %1075  ;;  %v750_v12 = vadd.f32 %v746_v33, %v721_v34  ;;  %v833_v39 = vsel %vm831_vm1, %v4158_v60, %v4157_v2  ;;  %v4164_v2 = vld [vmem:[#allocation18_spill] sm:$0xff] }
 0x55e   :  { %1774 = vrot.lane.b32.xlu0 %v1767_v48, %s2711_s0  ;;  %v803_v48 = vsel %vm802_vm0, %v4159_v24, %v4155_v53  ;;  %v778_v47 = vadd.f32 %v774_v38, %v749_v61 }
 0x55f   :  { %v779_v14 = vadd.f32 %v775_v54, %v750_v12 }
 0x560   :  { %2244 = vrot.lane.b32.xlu1 %v2236_v51, %s2713_s13  ;;  %v845_v51 = vrot.slane %v4161_v19, %v4160_v27  ;;  %v807_v32 = vadd.f32 %v803_v48, %v778_v47  ;;  %v4165_v19 = vld [vmem:[#allocation19_spill] sm:$0xff] }
 0x561   :  { %v808_v52 = vadd.f32 %v804_v17, %v779_v14 }
 0x562   :  { %2006 = vrot.lane.b32.xlu0 %v2000_v23, %s2712_s11  ;;  %v832_v23 = vsel %vm831_vm1, %v4162_v50, %v4158_v60 }
 0x563   :  { %v837_v1 = vadd.f32 %v833_v39, %v808_v52  ;;  %v836_v16 = vadd.f32 %v832_v23, %v807_v32 }
 0x565   :  { %v847_v36 = vmul.f32 %v845_v51, %v837_v1  ;;  %v846_v42 = vmul.f32 %v841_v15, %v836_v16  ;;  %v4168_v15 = vld [vmem:[#allocation28_spill] sm:$0xff] }
 0x566   :  { %2242 = vrot.lane.b32.xlu0 %v2235_v29, %s2713_s13 }
 0x598   :  { %v1544_v30 = vpop.permute.xlu0 %1543 }
 0x5b0   :  { %v3939_v9 = vpop.permute.xlu1 %1776 }
 0x5b4   :  { %v1074_v58 = vpop.permute.xlu1 %1073 }
 0x5b5   :  { %v1079_v29 = vsel %vm1077_vm7, %v1074_v58, %v1076_v26 }
 0x5b6   :  { %v1083_v37 = vadd.f32 %v1079_v29, %v847_v36  ;;  %v4166_v29 = vld [vmem:[#allocation30_spill] sm:$0xff]  ;;  %v4167_v36 = vld [vmem:[#allocation31_spill] sm:$0xff] }
 0x5b8   :  { %v1306_v22 = vpop.permute.xlu1 %1305 }
 0x5bc   :  { %v1542_v25 = vpop.permute.xlu1 %1541 }
 0x5bd   :  { %v1547_v40 = vsel %vm1545_vm9, %v1542_v25, %v1544_v30 }
 0x5c0   :  { %v2011_v57 = vpop.permute.xlu0 %2010  ;;  %v1773_v3 = vpop.permute.xlu1 %1772 }
 0x5c4   :  { %v1072_v59 = vpop.permute.xlu0 %1071  ;;  %v2009_v8 = vpop.permute.xlu1 %2008 }
 0x5c5   :  { %v1078_v35 = vsel %vm1077_vm7, %v1072_v59, %v1074_v58  ;;  %v2014_v18 = vsel %vm2012_vm11, %v2009_v8, %v2011_v57 }
 0x5c6   :  { %v1082_v63 = vadd.f32 %v1078_v35, %v846_v42  ;;  %v4169_v35 = vld [vmem:[#allocation29_spill] sm:$0xff] }
 0x5c8   :  { %v1308_v21 = vpop.permute.xlu0 %1307 }
 0x5c9   :  { %v1313_v20 = vsel %vm1311_vm8, %v1308_v21, %v1310_v11  ;;  %v1312_v41 = vsel %vm1311_vm8, %v1306_v22, %v1308_v21 }
 0x5ca   :  { %v1317_v46 = vadd.f32 %v1313_v20, %v1083_v37  ;;  %v1316_v49 = vadd.f32 %v1312_v41, %v1082_v63  ;;  %v4171_v41 = vld [vmem:[#allocation33_spill] sm:$0xff] }
 0x5cc   :  { %v1540_v6 = vpop.permute.xlu0 %1539  ;;  %v1551_v33 = vadd.f32 %v1547_v40, %v1317_v46 }
 0x5cd   :  { %v1546_v62 = vsel %vm1545_vm9, %v1540_v6, %v1542_v25  ;;  %v2714_v25 = vmov 1966171168  }
 0x5ce   :  { %v2241_v0 = vpop.permute.xlu1 %2240  ;;  %v1550_v11 = vadd.f32 %v1546_v62, %v1316_v49  ;;  %v2269_v57 = vunpack.c.l.s4 %v2714_v25  ;;  %v4173_v62 = vld [vmem:[#allocation37_spill] sm:$0xff]  ;;  %v4174_v49 = vld [vmem:[#allocation34_spill] sm:$0xff] }
 0x5d0   :  { %v1775_v31 = vpop.permute.xlu0 %1774  ;;  %v2270_v44 = vunpack.c.0.s8 %v2269_v57 }
 0x5d1   :  { %v1780_v26 = vsel %vm1778_vm10, %v1775_v31, %v3939_v9  ;;  %v1779_v13 = vsel %vm1778_vm10, %v1773_v3, %v1775_v31  ;;  %v4172_v31 = vld [vmem:[#allocation36_spill] sm:$0xff] }
 0x5d2   :  { %v1784_v34 = vadd.f32 %v1780_v26, %v1551_v33  ;;  %v1783_v45 = vadd.f32 %v1779_v13, %v1550_v11  ;;  %v2245_v28 = vpop.permute.xlu1 %2244  ;;  %v2273_v60 = vsub.s32 %v2270_v44, %v4164_v2  ;;  %v4176_v13 = vld [vmem:[#allocation40_spill] sm:$0xff] }
 0x5d4   :  { %v2007_v58 = vpop.permute.xlu0 %2006  ;;  %v2018_v43 = vadd.f32 %v2014_v18, %v1784_v34  ;;  %v4177_v34 = vld [vmem:[#allocation41_spill] sm:$0xff]  ;;  %v4179_v18 = vld [vmem:[#allocation39_spill] sm:$0xff] }
 0x5d5   :  { %v2013_v5 = vsel %vm2012_vm11, %v2007_v58, %v2009_v8  ;;  %v4170_v8 = vld [vmem:[#allocation32_spill] sm:$0xff] }
 0x5d6   :  { %v2017_v22 = vadd.f32 %v2013_v5, %v1783_v45  ;;  %v4178_v5 = vld [vmem:[#allocation38_spill] sm:$0xff] }
 0x5d8   :  { %v2243_v54 = vpop.permute.xlu0 %2242 }
 0x5d9   :  { %v2247_v30 = vsel %vm2246_vm12, %v2241_v0, %v2243_v54  ;;  %v2248_v12 = vsel %vm2246_vm12, %v2243_v54, %v2245_v28 }
 0x5da   :  { %v2251_v7 = vadd.f32 %v2247_v30, %v2017_v22  ;;  %v2252_v9 = vadd.f32 %v2248_v12, %v2018_v43  ;;  %v4180_v22 = vld [vmem:[#allocation42_spill] sm:$0xff]  ;;  %v4181_v43 = vld [vmem:[#allocation43_spill] sm:$0xff] }
 0x5dc   :  { %v2484_v55 = vmul.f32 -1.442695, %v2251_v7  ;;  %v2485_v4 = vmul.f32 -1.442695, %v2252_v9 }
 0x5de   :  { %2543 = vpow2.f32 %v2484_v55 }
 0x5df   :  { %2545 = vpow2.f32 %v2485_v4 }
 0x5e8   :  { %v2544_v53 = vpop.eup %2543 }
 0x5e9   :  { %v2546_v17 = vpop.eup %2545  ;;  %v2259_v10 = vadd.f32 1.0, %v2544_v53 }
 0x5ea   :  { %v2260_v14 = vadd.f32 1.0, %v2546_v17 }
 0x5eb   :  { %2547 = vrcp.f32 %v2259_v10 }
 0x5ec   :  { %2549 = vrcp.f32 %v2260_v14 }
 0x5f5   :  { %v2548_v38 = vpop.eup %2547 }
 0x5f6   :  { %v2550_v39 = vpop.eup %2549 }
 0x5f7   :  { %v2267_v61 = vcombine.low %v2548_v38, %v2550_v39 }
 0x5f9   :  { %v2274_v52 = vrot.slane %v2267_v61, %v2273_v60 }
 0x5fb   :  { %v2275_v59 = vcombine.high %v2274_v52, %v2274_v52  ;;  %v2282_v24 = vrot.slane %v2274_v52, %v2273_v60 }
 0x5fd   :  { %v2289_v48 = vrot.slane %v2275_v59, %v2273_v60  ;;  %v2290_v47 = vcombine.high %v2282_v24, %v2282_v24  ;;  %v2295_v1 = vrot.slane %v2282_v24, %v4160_v27  ;;  %v2299_v51 = vrot.slane %v2282_v24, %v4165_v19 }
 0x5ff   :  { %v2291_v50 = vcombine.high %v2289_v48, %v2289_v48  ;;  %v2303_v23 = vrot.slane %v2289_v48, %v4160_v27  ;;  %v2307_v32 = vrot.slane %v2289_v48, %v4165_v19  ;;  %v2311_v3 = vrot.slane %v2290_v47, %v4160_v27 }
 0x600   :  { %v2315_v21 = vrot.slane %v2290_v47, %v4165_v19  ;;  %v2332_v16 = vmul.f32 %v2295_v1, %v4166_v29  ;;  %v2333_v56 = vmul.f32 %v2299_v51, %v4167_v36  ;;  %v2334_v20 = vmul.f32 %v2295_v1, %v4168_v15 }
 0x601   :  { %v2319_v37 = vrot.slane %v2291_v50, %v4160_v27  ;;  %v2323_v6 = vrot.slane %v2291_v50, %v4165_v19  ;;  %v2335_v42 = vmul.f32 %v2299_v51, %v4169_v35  ;;  %v2336_v46 = vmul.f32 %v2303_v23, %v4170_v8  ;;  %v4175_v27 = vld [vmem:[#allocation35_spill] sm:$0xff] }
 0x602   :  { %v2337_v63 = vmul.f32 %v2307_v32, %v4171_v41  ;;  %v2338_v40 = vmul.f32 %v2303_v23, %v4172_v31  ;;  %v2339_v26 = vmul.f32 %v2307_v32, %v4173_v62  ;;  %v2340_v0 = vmul.f32 %v2311_v3, %v4174_v49  ;;  %2348 = vst [vmem:[#allocation12] sm:$0xff] %v2332_v16 }
 0x603   :  { %2349 = vst [vmem:[#allocation12 + $0x8] sm:$0xff] %v2333_v56  ;;  %2350 = vst [vmem:[#allocation12 + $0x10] sm:$0xff] %v2334_v20  ;;  %v2341_v33 = vmul.f32 %v2315_v21, %v4175_v27  ;;  %v2342_v11 = vmul.f32 %v2311_v3, %v4176_v13  ;;  %v2343_v58 = vmul.f32 %v2315_v21, %v4177_v34 }
 0x604   :  { %v2344_v45 = vmul.f32 %v2319_v37, %v4178_v5  ;;  %2351 = vst [vmem:[#allocation12 + $0x18] sm:$0xff] %v2335_v42  ;;  %2352 = vst [vmem:[#allocation12 + $0x20] sm:$0xff] %v2336_v46  ;;  %v2345_v28 = vmul.f32 %v2323_v6, %v4179_v18  ;;  %v2346_v54 = vmul.f32 %v2319_v37, %v4180_v22 }
 0x605   :  { %v2347_v30 = vmul.f32 %v2323_v6, %v4181_v43  ;;  %2353 = vst [vmem:[#allocation12 + $0x28] sm:$0xff] %v2337_v63  ;;  %2354 = vst [vmem:[#allocation12 + $0x30] sm:$0xff] %v2338_v40 }
 0x606   :  { %2355 = vst [vmem:[#allocation12 + $0x38] sm:$0xff] %v2339_v26  ;;  %2356 = vst [vmem:[#allocation12 + $0x40] sm:$0xff] %v2340_v0 }
 0x607   :  { %2357 = vst [vmem:[#allocation12 + $0x48] sm:$0xff] %v2341_v33  ;;  %2358 = vst [vmem:[#allocation12 + $0x50] sm:$0xff] %v2342_v11 }
 0x608   :  { %2359 = vst [vmem:[#allocation12 + $0x58] sm:$0xff] %v2343_v58  ;;  %2360 = vst [vmem:[#allocation12 + $0x60] sm:$0xff] %v2344_v45 }
 0x609   :  { %2361 = vst [vmem:[#allocation12 + $0x68] sm:$0xff] %v2345_v28  ;;  %2362 = vst [vmem:[#allocation12 + $0x70] sm:$0xff] %v2346_v54 }
 0x60a   :  { %2363 = vst [vmem:[#allocation12 + $0x78] sm:$0xff] %v2347_v30 }
 0x60b   :  { %2662 = shalt.err (!%p2659_p11)
}
 0x60c   :  { %s2663_s22 = scalar_lea.hbm %s4031_s5, 2048 }
 0x60d   :  { %p2664_p12 = scmp.ne.s32.totalorder %s4031_s5, %s2663_s22  ;;  %p2667_p13 = scmp.lt.u32.totalorder %s2663_s22, %s4031_s5 }
 0x60f   :  { %p2669_p0 = pnand %p2667_p13, %p2664_p12 }
 0x611   :  { %2672 = shalt.err (!%p2669_p0)
}
 0x612   :  { %2375 = dma.vmem_to_hbm [thread:$0]  %s2370_s16, 2048, %s4031_s5, [#allocation6], %s2688_s2, %s2688_s2, %s2689_s26  }
 0x613   :  { %2681 = dma.done.wait [#allocation6], 2048  }
 0x614   :  { %2682 = vsyncadd [#allocation6], 4294965248 }
 0x615   :  { %2379 = vsyncpa [#allocation5], 1 }
 0x616   :  { %2380 = vsyncpa [#allocation8], 1 }
 0x617   :  { %2381 = vsyncpa [#allocation11], 1 }
 0x618   :  { %2382 = vsyncpa [#allocation6], 1 }

</bundles_post_ra>
